<compile_context>
chip_gen: v7x
topology: tpu7x:2x2x1
jax: 0.10.0
libtpu: 0.0.40
codegen_flags: <defaults>
</compile_context>

<pallas_src>
import functools

import jax
import jax.numpy as jnp
from jax.experimental import pallas as pl
from jax.experimental.pallas import tpu as pltpu

# --- DARTS_V1 genotype, normal cell (reduction=False, reduction_prev=False) ---
OP_NAMES = ('sep_conv_3x3', 'sep_conv_3x3', 'skip_connect', 'sep_conv_3x3',
            'skip_connect', 'sep_conv_3x3', 'sep_conv_3x3', 'skip_connect')
INDICES = (1, 0, 0, 1, 0, 1, 0, 2)
CONCAT = (2, 3, 4, 5)
STEPS = len(OP_NAMES) // 2

SEP_SLOT = {}
_s = 0
for _pos, _name in enumerate(OP_NAMES):
    if _name == 'sep_conv_3x3':
        SEP_SLOT[_pos] = _s
        _s += 1
NUM_SEP = _s                     # 5 SepConvs -> 10 (dw3x3 + pw1x1 + BN) halves


# ------------------------------ fused cell kernel -----------------------------

def _cell_kernel(s0_ref, s1_ref, pre0_w_ref, pre0_b_ref, pre1_w_ref, pre1_b_ref,
                 sep_m_ref, sep_b_ref, out_ref, pad_ref, *, H, B):
    """Whole DARTS normal cell for a block of B images, all states in VMEM/vregs.

    Activation layout: (B*H, W*C) slab, rows = (image, h), channels fastest on lanes.
    """
    M = B * H
    WC = out_ref.shape[1] // len(CONCAT)

    # Hygiene: zero the shift scratch once (only never-written guard rows are
    # ever read, and those reads are masked, but keep it deterministic).
    @pl.when(pl.program_id(0) == 0)
    def _():
        pad_ref[...] = jnp.zeros(pad_ref.shape, pad_ref.dtype)

    # Row masks: row r of the slab is image r // H, height h = r % H.  Vertical
    # taps must not leak across image boundaries inside the batched slab.
    h_idx = jax.lax.broadcasted_iota(jnp.int32, (B, H, WC), 1).reshape(M, WC)
    not_top = h_idx != 0          # rows with a valid row above (h - 1)
    not_bot = h_idx != H - 1      # rows with a valid row below (h + 1)

    def mm(a, b):                 # bf16 MXU matmul, f32 accumulation
        return jnp.dot(a.astype(jnp.bfloat16), b, preferred_element_type=jnp.float32)

    def preprocess(x_ref, w_ref, b_ref):   # ReLUConvBN(1x1): ReLU -> 1x1 conv -> folded BN
        return mm(jnp.maximum(x_ref[...], 0.0), w_ref[...]) + b_ref[...]

    def half_sep(x, idx):                  # ReLU -> dw3x3 -> pw1x1 -> folded BN
        xr = jnp.maximum(x, 0.0)
        # Vertical +-1 shifts: aligned scratch store + two sublane-shifted reads.
        pad_ref[pl.ds(8, M), :] = xr
        x_up = jnp.where(not_top, pad_ref[pl.ds(7, M), :], 0.0)   # row h-1 (0 at h == 0)
        x_dn = jnp.where(not_bot, pad_ref[pl.ds(9, M), :], 0.0)   # row h+1 (0 at h == H-1)
        big = jnp.concatenate([x_up, xr, x_dn], axis=1)           # (M, 3*WC)
        return mm(big, sep_m_ref[idx]) + sep_b_ref[idx]           # single K=3*WC matmul

    def sep_conv(x, slot):
        return half_sep(half_sep(x, 2 * slot), 2 * slot + 1)

    s0 = preprocess(s0_ref, pre0_w_ref, pre0_b_ref)
    s1 = preprocess(s1_ref, pre1_w_ref, pre1_b_ref)
    states = [s0, s1]
    for i in range(STEPS):
        hs = []
        for k in (2 * i, 2 * i + 1):
            x_in = states[INDICES[k]]
            if OP_NAMES[k] == 'sep_conv_3x3':
                hs.append(sep_conv(x_in, SEP_SLOT[k]))
            else:                          # skip_connect with stride 1 -> Identity
                hs.append(x_in)
        states.append(hs[0] + hs[1])

    # Channel concat of the four intermediate nodes -> one lane-dense wide store.
    out_ref[...] = jnp.concatenate([states[n] for n in CONCAT], axis=1)


# ------------------------- offline weight re-packing --------------------------

def pack_params(params, H, W, C):
    """Fold BN + pointwise + depthwise-band structure into lane-dense bf16 matrices."""
    WC = W * C
    hi = jax.lax.Precision.HIGHEST
    eye_w = jnp.eye(W, dtype=jnp.float32)

    def pw_block(w, scale, bias):
        # 1x1 conv (x @ w) with BN scale folded in, block-diagonal over W pixels.
        ws = w * scale[None, :]
        return jnp.kron(eye_w, ws), jnp.tile(bias, W)[None, :]     # (W*Cin, W*Cout), (1, W*Cout)

    def dw_band(taps):
        # taps: (3, C) = depthwise weights for one vertical offset.
        # Banded (WC, WC) matrix implementing the horizontal 3-tap conv per channel.
        tile = lambda v: jnp.tile(v, W)
        return (jnp.diag(tile(taps[1]))                            # pixel w   (kw=1)
                + jnp.diag(tile(taps[0])[:WC - C], k=C)            # pixel w-1 (kw=0)
                + jnp.diag(tile(taps[2])[:WC - C], k=-C))          # pixel w+1 (kw=2)

    def sep_half(dw, pw, scale, bias):
        wb, bb = pw_block(pw, scale, bias)
        # Stack the three vertical taps along the contraction axis so the kernel
        # does ONE (M, 3*WC) x (3*WC, WC) matmul per half: rows [0:WC] multiply
        # the h-1 shifted input, [WC:2WC] the centre row, [2WC:3WC] the h+1 shift.
        m = jnp.concatenate(
            [jnp.matmul(dw_band(dw[kh]), wb, precision=hi) for kh in range(3)], axis=0)
        return m, bb                                               # (3*WC, WC), (1, WC)

    pre0_w, pre0_b = pw_block(params['pre0']['w'], params['pre0']['scale'], params['pre0']['bias'])
    pre1_w, pre1_b = pw_block(params['pre1']['w'], params['pre1']['scale'], params['pre1']['bias'])

    sep_m, sep_b = [], []
    for pos, name in enumerate(OP_NAMES):
        if name != 'sep_conv_3x3':
            continue
        p = params['ops'][pos]
        m1, b1 = sep_half(p['dw1'], p['pw1'], p['bn1_scale'], p['bn1_bias'])
        m2, b2 = sep_half(p['dw2'], p['pw2'], p['bn2_scale'], p['bn2_bias'])
        sep_m += [m1, m2]
        sep_b += [b1, b2]

    bf16 = jnp.bfloat16
    return dict(pre0_w=pre0_w.astype(bf16), pre0_b=pre0_b,
                pre1_w=pre1_w.astype(bf16), pre1_b=pre1_b,
                sep_m=jnp.stack(sep_m).astype(bf16),               # (2*NUM_SEP, 3*WC, WC) bf16
                sep_b=jnp.stack(sep_b))                            # (2*NUM_SEP, 1, WC)  f32


# ----------------------------------- wrapper ----------------------------------

def cell_forward(packed, s0_nchw, s1_nchw, drop_prob=0.0, block_n=8):
    # drop_path is a no-op here: the PyTorch forward gates it on `self.training`.
    del drop_prob
    N, C_pp, H, W = s0_nchw.shape
    C_p = s1_nchw.shape[1]
    WC = packed['sep_b'].shape[-1]
    C = WC // W
    n_nodes = len(CONCAT)
    assert H % 8 == 0, "lane-dense layout assumes H % 8 == 0"

    # Images per grid step: B*H rows feed the MXU (B=8 -> M=128; use block_n=16
    # on v6e/v7x for M=256).  Batch is zero-padded to a whole number of blocks.
    B = max(1, min(block_n, N))
    n_blk = pl.cdiv(N, B)
    N_pad = n_blk * B
    M = B * H

    def to_rows(x, Cin):          # NCHW -> lane-dense (N*H, W*Cin), channels fastest
        r = jnp.transpose(x, (0, 2, 3, 1)).reshape(N * H, W * Cin).astype(jnp.float32)
        return jnp.pad(r, ((0, (N_pad - N) * H), (0, 0)))

    s0 = to_rows(s0_nchw, C_pp)
    s1 = to_rows(s1_nchw, C_p)

    flops = n_blk * 2 * M * WC * (W * C_pp + W * C_p + 2 * NUM_SEP * 3 * WC)
    bytes_accessed = ((s0.size + s1.size) * 4 + N_pad * H * n_nodes * WC * 4
                      + sum(int(packed[k].size) * packed[k].dtype.itemsize
                            for k in ('pre0_w', 'pre0_b', 'pre1_w', 'pre1_b',
                                      'sep_m', 'sep_b')))

    out = pl.pallas_call(
        functools.partial(_cell_kernel, H=H, B=B),
        out_shape=jax.ShapeDtypeStruct((N_pad * H, n_nodes * WC), jnp.float32),
        grid=(n_blk,),
        in_specs=[
            pl.BlockSpec((M, W * C_pp), lambda n: (n, 0)),
            pl.BlockSpec((M, W * C_p), lambda n: (n, 0)),
            # Grid-invariant weights (constant index_map; ~2 MiB total, far under
            # every scoped-VMEM limit, so default buffering is kept).
            pl.BlockSpec((W * C_pp, WC), lambda n: (0, 0)),
            pl.BlockSpec((1, WC), lambda n: (0, 0)),
            pl.BlockSpec((W * C_p, WC), lambda n: (0, 0)),
            pl.BlockSpec((1, WC), lambda n: (0, 0)),
            pl.BlockSpec((2 * NUM_SEP, 3 * WC, WC), lambda n: (0, 0, 0)),
            pl.BlockSpec((2 * NUM_SEP, 1, WC), lambda n: (0, 0, 0)),
        ],
        out_specs=pl.BlockSpec((M, n_nodes * WC), lambda n: (n, 0)),
        scratch_shapes=[pltpu.VMEM((M + 16, WC), jnp.float32)],    # vertical-shift pad
        compiler_params=pltpu.CompilerParams(dimension_semantics=("parallel",)),
        cost_estimate=pl.CostEstimate(flops=int(flops), transcendentals=0,
                                      bytes_accessed=int(bytes_accessed)),
    )(s0, s1, packed['pre0_w'], packed['pre0_b'], packed['pre1_w'], packed['pre1_b'],
      packed['sep_m'], packed['sep_b'])

    # (N*H, node*W*C) lane order (node, w, c) -> NCHW (N, node*C, H, W); same
    # channel order as torch.cat([states[i] for i in concat], dim=1).
    out = out[:N * H].reshape(N, H, n_nodes, W, C)
    return jnp.transpose(out, (0, 2, 4, 1, 3)).reshape(N, n_nodes * C, H, W)


# ------------------------------ parameter init --------------------------------

def init_params(key, C_pp, C_p, C):
    keys = jax.random.split(key, 128)
    ctr = [0]

    def nxt():
        k = keys[ctr[0]]
        ctr[0] += 1
        return k

    def nrm(shape, s=0.3):
        return (s * jax.random.normal(nxt(), shape)).astype(jnp.float32)

    def bn(Cn, eps=1e-5):
        gamma = 1.0 + nrm((Cn,), 0.05)
        beta = nrm((Cn,), 0.05)
        mean = nrm((Cn,), 0.05)
        var = 1.0 + jnp.abs(nrm((Cn,), 0.05))
        scale = gamma / jnp.sqrt(var + eps)
        return scale, beta - mean * scale

    params = {}
    s, b = bn(C)
    params['pre0'] = dict(w=nrm((C_pp, C)), scale=s, bias=b)
    s, b = bn(C)
    params['pre1'] = dict(w=nrm((C_p, C)), scale=s, bias=b)
    ops = []
    for name in OP_NAMES:
        if name == 'sep_conv_3x3':
            s1_, b1_ = bn(C)
            s2_, b2_ = bn(C)
            ops.append(dict(dw1=nrm((3, 3, C)), pw1=nrm((C, C)), bn1_scale=s1_, bn1_bias=b1_,
                            dw2=nrm((3, 3, C)), pw2=nrm((C, C)), bn2_scale=s2_, bn2_bias=b2_))
        else:
            ops.append(None)
    params['ops'] = ops
    return params


# --------------------- pure-JAX reference (eval-mode PyTorch) -----------------

def cell_forward_reference(params, s0_nchw, s1_nchw):
    hi = jax.lax.Precision.HIGHEST

    def relu_conv_bn(x, w, scale, bias):                     # x: NHWC
        y = jnp.einsum('nhwi,io->nhwo', jnp.maximum(x, 0.0), w, precision=hi)
        return y * scale + bias

    def dw3x3(x, wt):                                        # x: NHWC, wt: (3,3,C)
        H, W = x.shape[1], x.shape[2]
        xp = jnp.pad(x, ((0, 0), (1, 1), (1, 1), (0, 0)))
        acc = jnp.zeros_like(x)
        for kh in range(3):
            for kw in range(3):
                acc = acc + xp[:, kh:kh + H, kw:kw + W, :] * wt[kh, kw]
        return acc

    def sep_conv(x, p):
        y = dw3x3(jnp.maximum(x, 0.0), p['dw1'])
        y = jnp.einsum('nhwi,io->nhwo', y, p['pw1'], precision=hi) * p['bn1_scale'] + p['bn1_bias']
        y = dw3x3(jnp.maximum(y, 0.0), p['dw2'])
        y = jnp.einsum('nhwi,io->nhwo', y, p['pw2'], precision=hi) * p['bn2_scale'] + p['bn2_bias']
        return y

    s0 = jnp.transpose(s0_nchw, (0, 2, 3, 1)).astype(jnp.float32)
    s1 = jnp.transpose(s1_nchw, (0, 2, 3, 1)).astype(jnp.float32)
    s0 = relu_conv_bn(s0, params['pre0']['w'], params['pre0']['scale'], params['pre0']['bias'])
    s1 = relu_conv_bn(s1, params['pre1']['w'], params['pre1']['scale'], params['pre1']['bias'])
    states = [s0, s1]
    for i in range(STEPS):
        hs = []
        for k in (2 * i, 2 * i + 1):
            x_in = states[INDICES[k]]
            if OP_NAMES[k] == 'sep_conv_3x3':
                hs.append(sep_conv(x_in, params['ops'][k]))
            else:
                hs.append(x_in)
        states.append(hs[0] + hs[1])
    out = jnp.concatenate([states[i] for i in CONCAT], axis=-1)
    return jnp.transpose(out, (0, 3, 1, 2))


# ----------------------------------- main -------------------------------------

if __name__ == "__main__":
    key = jax.random.PRNGKey(0)
    k0, k1, kp = jax.random.split(key, 3)

    # Small shapes, but enough images (16) for 2 batched grid steps of B=8.
    N, C_pp, C_p, C, H, W = 16, 4, 4, 8, 16, 16
    s0 = jax.random.normal(k0, (N, C_pp, H, W), jnp.float32)     # NCHW, like PyTorch
    s1 = jax.random.normal(k1, (N, C_p, H, W), jnp.float32)

    params = init_params(kp, C_pp, C_p, C)
    packed = pack_params(params, H, W, C)                        # one-time weight re-layout

    out = jax.jit(cell_forward)(packed, s0, s1)
    jax.block_until_ready(out)
    assert out.shape == (N, C * len(CONCAT), H, W), out.shape

    ref = cell_forward_reference(params, s0, s1)
    # bf16 matmul operands (f32 accumulation) vs. f32 HIGHEST-precision reference:
    # loose but still meaningful tolerance (any structural bug is O(0.1+)).
    err = float(jnp.max(jnp.abs(out - ref)))
    assert jnp.allclose(out, ref, rtol=5e-2, atol=5e-2), err

    print("KERNEL_OK")
</pallas_src>

<mosaic_0001>
module attributes {stable_mosaic.version = 11 : i64} {
  func.func @_cell_kernel(%arg0: i32, %arg1: memref<128x64xf32, #tpu.memory_space<vmem>>, %arg2: memref<128x64xf32, #tpu.memory_space<vmem>>, %arg3: memref<64x128xbf16, #tpu.memory_space<vmem>>, %arg4: memref<1x128xf32, #tpu.memory_space<vmem>>, %arg5: memref<64x128xbf16, #tpu.memory_space<vmem>>, %arg6: memref<1x128xf32, #tpu.memory_space<vmem>>, %arg7: memref<10x384x128xbf16, #tpu.memory_space<vmem>>, %arg8: memref<10x1x128xf32, #tpu.memory_space<vmem>>, %arg9: memref<128x512xf32, #tpu.memory_space<vmem>>, %arg10: memref<144x128xf32, #tpu.memory_space<vmem>>) attributes {dimension_semantics = [#tpu.dimension_semantics<parallel>], iteration_bounds = array<i64: 2>, scalar_prefetch = 0 : i64, scratch_operands = 1 : i64, tpu.core_type = #tpu.core_type<tc>, window_params = [{transform_indices = @transform_0, window_bounds = array<i64: 128, 64>}, {transform_indices = @transform_1, window_bounds = array<i64: 128, 64>}, {pipeline_mode = #tpu.pipeline_mode<synchronous>, transform_indices = @transform_2, window_bounds = array<i64: 64, 128>}, {pipeline_mode = #tpu.pipeline_mode<synchronous>, transform_indices = @transform_3, window_bounds = array<i64: 1, 128>}, {pipeline_mode = #tpu.pipeline_mode<synchronous>, transform_indices = @transform_4, window_bounds = array<i64: 64, 128>}, {pipeline_mode = #tpu.pipeline_mode<synchronous>, transform_indices = @transform_5, window_bounds = array<i64: 1, 128>}, {pipeline_mode = #tpu.pipeline_mode<synchronous>, transform_indices = @transform_6, window_bounds = array<i64: 10, 384, 128>}, {pipeline_mode = #tpu.pipeline_mode<synchronous>, transform_indices = @transform_7, window_bounds = array<i64: 10, 1, 128>}, {transform_indices = @transform_8, window_bounds = array<i64: 128, 512>}]} {
    %c0_i32 = arith.constant 0 : i32
    %0 = arith.cmpi eq, %arg0, %c0_i32 : i32
    %1 = arith.extui %0 : i1 to i32
    %c0_i32_0 = arith.constant 0 : i32
    %2 = arith.cmpi ne, %1, %c0_i32_0 : i32
    scf.if %2 {
      %cst_169 = arith.constant 0.000000e+00 : f32
      %213 = vector.broadcast %cst_169 : f32 to vector<144x128xf32>
      %c0_170 = arith.constant 0 : index
      %c0_171 = arith.constant 0 : index
      %214 = vector.load %arg10[%c0_170, %c0_171] : memref<144x128xf32, #tpu.memory_space<vmem>>, vector<144x128xf32>
      tpu.vector_store %arg10[%c0_170, %c0_171], %213 {strides = array<i32>} : memref<144x128xf32, #tpu.memory_space<vmem>>, vector<144x128xf32>,
    } else {
    }
    %3 = tpu.iota {dimensions = array<i32: 1>} : vector<8x16x128xi32>
    %4 = vector.shape_cast %3 : vector<8x16x128xi32> to vector<128x128xi32>
    %c0_i32_1 = arith.constant 0 : i32
    %5 = vector.broadcast %c0_i32_1 : i32 to vector<128x128xi32>
    %6 = arith.cmpi ne, %4, %5 : vector<128x128xi32>
    %c15_i32 = arith.constant 15 : i32
    %7 = vector.broadcast %c15_i32 : i32 to vector<128x128xi32>
    %8 = arith.cmpi ne, %4, %7 : vector<128x128xi32>
    %c0 = arith.constant 0 : index
    %c0_2 = arith.constant 0 : index
    %9 = vector.load %arg1[%c0, %c0_2] : memref<128x64xf32, #tpu.memory_space<vmem>>, vector<128x64xf32>
    %cst = arith.constant 0.000000e+00 : f32
    %10 = vector.broadcast %cst : f32 to vector<128x64xf32>
    %11 = arith.maximumf %9, %10 : vector<128x64xf32>
    %c0_3 = arith.constant 0 : index
    %c0_4 = arith.constant 0 : index
    %12 = vector.load %arg3[%c0_3, %c0_4] : memref<64x128xbf16, #tpu.memory_space<vmem>>, vector<64x128xbf16>
    %13 = arith.truncf %11 : vector<128x64xf32> to vector<128x64xbf16>
    %cst_5 = arith.constant dense<0.000000e+00> : vector<128x128xf32>
    %14 = tpu.matmul %13, %12, %cst_5 {dimension_numbers = #tpu.dot_dimension_numbers<[1], [0], [0], [1], [0, 0, 1, 1], [], []>} : vector<128x64xbf16>, vector<64x128xbf16>, vector<128x128xf32> -> vector<128x128xf32>
    %c0_6 = arith.constant 0 : index
    %c0_7 = arith.constant 0 : index
    %15 = vector.load %arg4[%c0_6, %c0_7] : memref<1x128xf32, #tpu.memory_space<vmem>>, vector<1x128xf32>
    %16 = vector.broadcast %15 : vector<1x128xf32> to vector<128x128xf32>
    %17 = arith.addf %14, %16 : vector<128x128xf32>
    %c0_8 = arith.constant 0 : index
    %c0_9 = arith.constant 0 : index
    %18 = vector.load %arg2[%c0_8, %c0_9] : memref<128x64xf32, #tpu.memory_space<vmem>>, vector<128x64xf32>
    %cst_10 = arith.constant 0.000000e+00 : f32
    %19 = vector.broadcast %cst_10 : f32 to vector<128x64xf32>
    %20 = arith.maximumf %18, %19 : vector<128x64xf32>
    %c0_11 = arith.constant 0 : index
    %c0_12 = arith.constant 0 : index
    %21 = vector.load %arg5[%c0_11, %c0_12] : memref<64x128xbf16, #tpu.memory_space<vmem>>, vector<64x128xbf16>
    %22 = arith.truncf %20 : vector<128x64xf32> to vector<128x64xbf16>
    %cst_13 = arith.constant dense<0.000000e+00> : vector<128x128xf32>
    %23 = tpu.matmul %22, %21, %cst_13 {dimension_numbers = #tpu.dot_dimension_numbers<[1], [0], [0], [1], [0, 0, 1, 1], [], []>} : vector<128x64xbf16>, vector<64x128xbf16>, vector<128x128xf32> -> vector<128x128xf32>
    %c0_14 = arith.constant 0 : index
    %c0_15 = arith.constant 0 : index
    %24 = vector.load %arg6[%c0_14, %c0_15] : memref<1x128xf32, #tpu.memory_space<vmem>>, vector<1x128xf32>
    %25 = vector.broadcast %24 : vector<1x128xf32> to vector<128x128xf32>
    %26 = arith.addf %23, %25 : vector<128x128xf32>
    %cst_16 = arith.constant 0.000000e+00 : f32
    %27 = vector.broadcast %cst_16 : f32 to vector<128x128xf32>
    %28 = arith.maximumf %26, %27 : vector<128x128xf32>
    %c8 = arith.constant 8 : index
    %c0_17 = arith.constant 0 : index
    %29 = vector.load %arg10[%c8, %c0_17] : memref<144x128xf32, #tpu.memory_space<vmem>>, vector<128x128xf32>
    tpu.vector_store %arg10[%c8, %c0_17], %28 {strides = array<i32>} : memref<144x128xf32, #tpu.memory_space<vmem>>, vector<128x128xf32>,
    %c7 = arith.constant 7 : index
    %c0_18 = arith.constant 0 : index
    %30 = vector.load %arg10[%c7, %c0_18] : memref<144x128xf32, #tpu.memory_space<vmem>>, vector<128x128xf32>
    %cst_19 = arith.constant 0.000000e+00 : f32
    %31 = vector.broadcast %cst_19 : f32 to vector<128x128xf32>
    %32 = arith.select %6, %30, %31 : vector<128x128xi1>, vector<128x128xf32>
    %c9 = arith.constant 9 : index
    %c0_20 = arith.constant 0 : index
    %33 = vector.load %arg10[%c9, %c0_20] : memref<144x128xf32, #tpu.memory_space<vmem>>, vector<128x128xf32>
    %cst_21 = arith.constant 0.000000e+00 : f32
    %34 = vector.broadcast %cst_21 : f32 to vector<128x128xf32>
    %35 = arith.select %8, %33, %34 : vector<128x128xi1>, vector<128x128xf32>
    %36 = tpu.concatenate %32, %28, %35 in 1 : vector<128x128xf32>, vector<128x128xf32>, vector<128x128xf32> -> vector<128x384xf32>
    %c0_22 = arith.constant 0 : index
    %c0_23 = arith.constant 0 : index
    %c0_24 = arith.constant 0 : index
    %37 = vector.load %arg7[%c0_22, %c0_23, %c0_24] : memref<10x384x128xbf16, #tpu.memory_space<vmem>>, vector<1x384x128xbf16>
    %38 = vector.shape_cast %37 : vector<1x384x128xbf16> to vector<384x128xbf16>
    %39 = arith.truncf %36 : vector<128x384xf32> to vector<128x384xbf16>
    %cst_25 = arith.constant dense<0.000000e+00> : vector<128x128xf32>
    %40 = tpu.matmul %39, %38, %cst_25 {dimension_numbers = #tpu.dot_dimension_numbers<[1], [0], [0], [1], [0, 0, 1, 1], [], []>} : vector<128x384xbf16>, vector<384x128xbf16>, vector<128x128xf32> -> vector<128x128xf32>
    %c0_26 = arith.constant 0 : index
    %c0_27 = arith.constant 0 : index
    %c0_28 = arith.constant 0 : index
    %41 = vector.load %arg8[%c0_26, %c0_27, %c0_28] : memref<10x1x128xf32, #tpu.memory_space<vmem>>, vector<1x1x128xf32>
    %42 = vector.shape_cast %41 : vector<1x1x128xf32> to vector<1x128xf32>
    %43 = vector.broadcast %42 : vector<1x128xf32> to vector<128x128xf32>
    %44 = arith.addf %40, %43 : vector<128x128xf32>
    %cst_29 = arith.constant 0.000000e+00 : f32
    %45 = vector.broadcast %cst_29 : f32 to vector<128x128xf32>
    %46 = arith.maximumf %44, %45 : vector<128x128xf32>
    %c8_30 = arith.constant 8 : index
    %c0_31 = arith.constant 0 : index
    %47 = vector.load %arg10[%c8_30, %c0_31] : memref<144x128xf32, #tpu.memory_space<vmem>>, vector<128x128xf32>
    tpu.vector_store %arg10[%c8_30, %c0_31], %46 {strides = array<i32>} : memref<144x128xf32, #tpu.memory_space<vmem>>, vector<128x128xf32>,
    %c7_32 = arith.constant 7 : index
    %c0_33 = arith.constant 0 : index
    %48 = vector.load %arg10[%c7_32, %c0_33] : memref<144x128xf32, #tpu.memory_space<vmem>>, vector<128x128xf32>
    %cst_34 = arith.constant 0.000000e+00 : f32
    %49 = vector.broadcast %cst_34 : f32 to vector<128x128xf32>
    %50 = arith.select %6, %48, %49 : vector<128x128xi1>, vector<128x128xf32>
    %c9_35 = arith.constant 9 : index
    %c0_36 = arith.constant 0 : index
    %51 = vector.load %arg10[%c9_35, %c0_36] : memref<144x128xf32, #tpu.memory_space<vmem>>, vector<128x128xf32>
    %cst_37 = arith.constant 0.000000e+00 : f32
    %52 = vector.broadcast %cst_37 : f32 to vector<128x128xf32>
    %53 = arith.select %8, %51, %52 : vector<128x128xi1>, vector<128x128xf32>
    %54 = tpu.concatenate %50, %46, %53 in 1 : vector<128x128xf32>, vector<128x128xf32>, vector<128x128xf32> -> vector<128x384xf32>
    %c1 = arith.constant 1 : index
    %c0_38 = arith.constant 0 : index
    %c0_39 = arith.constant 0 : index
    %55 = vector.load %arg7[%c1, %c0_38, %c0_39] : memref<10x384x128xbf16, #tpu.memory_space<vmem>>, vector<1x384x128xbf16>
    %56 = vector.shape_cast %55 : vector<1x384x128xbf16> to vector<384x128xbf16>
    %57 = arith.truncf %54 : vector<128x384xf32> to vector<128x384xbf16>
    %cst_40 = arith.constant dense<0.000000e+00> : vector<128x128xf32>
    %58 = tpu.matmul %57, %56, %cst_40 {dimension_numbers = #tpu.dot_dimension_numbers<[1], [0], [0], [1], [0, 0, 1, 1], [], []>} : vector<128x384xbf16>, vector<384x128xbf16>, vector<128x128xf32> -> vector<128x128xf32>
    %c1_41 = arith.constant 1 : index
    %c0_42 = arith.constant 0 : index
    %c0_43 = arith.constant 0 : index
    %59 = vector.load %arg8[%c1_41, %c0_42, %c0_43] : memref<10x1x128xf32, #tpu.memory_space<vmem>>, vector<1x1x128xf32>
    %60 = vector.shape_cast %59 : vector<1x1x128xf32> to vector<1x128xf32>
    %61 = vector.broadcast %60 : vector<1x128xf32> to vector<128x128xf32>
    %62 = arith.addf %58, %61 : vector<128x128xf32>
    %cst_44 = arith.constant 0.000000e+00 : f32
    %63 = vector.broadcast %cst_44 : f32 to vector<128x128xf32>
    %64 = arith.maximumf %17, %63 : vector<128x128xf32>
    %c8_45 = arith.constant 8 : index
    %c0_46 = arith.constant 0 : index
    %65 = vector.load %arg10[%c8_45, %c0_46] : memref<144x128xf32, #tpu.memory_space<vmem>>, vector<128x128xf32>
    tpu.vector_store %arg10[%c8_45, %c0_46], %64 {strides = array<i32>} : memref<144x128xf32, #tpu.memory_space<vmem>>, vector<128x128xf32>,
    %c7_47 = arith.constant 7 : index
    %c0_48 = arith.constant 0 : index
    %66 = vector.load %arg10[%c7_47, %c0_48] : memref<144x128xf32, #tpu.memory_space<vmem>>, vector<128x128xf32>
    %cst_49 = arith.constant 0.000000e+00 : f32
    %67 = vector.broadcast %cst_49 : f32 to vector<128x128xf32>
    %68 = arith.select %6, %66, %67 : vector<128x128xi1>, vector<128x128xf32>
    %c9_50 = arith.constant 9 : index
    %c0_51 = arith.constant 0 : index
    %69 = vector.load %arg10[%c9_50, %c0_51] : memref<144x128xf32, #tpu.memory_space<vmem>>, vector<128x128xf32>
    %cst_52 = arith.constant 0.000000e+00 : f32
    %70 = vector.broadcast %cst_52 : f32 to vector<128x128xf32>
    %71 = arith.select %8, %69, %70 : vector<128x128xi1>, vector<128x128xf32>
    %72 = tpu.concatenate %68, %64, %71 in 1 : vector<128x128xf32>, vector<128x128xf32>, vector<128x128xf32> -> vector<128x384xf32>
    %c2 = arith.constant 2 : index
    %c0_53 = arith.constant 0 : index
    %c0_54 = arith.constant 0 : index
    %73 = vector.load %arg7[%c2, %c0_53, %c0_54] : memref<10x384x128xbf16, #tpu.memory_space<vmem>>, vector<1x384x128xbf16>
    %74 = vector.shape_cast %73 : vector<1x384x128xbf16> to vector<384x128xbf16>
    %75 = arith.truncf %72 : vector<128x384xf32> to vector<128x384xbf16>
    %cst_55 = arith.constant dense<0.000000e+00> : vector<128x128xf32>
    %76 = tpu.matmul %75, %74, %cst_55 {dimension_numbers = #tpu.dot_dimension_numbers<[1], [0], [0], [1], [0, 0, 1, 1], [], []>} : vector<128x384xbf16>, vector<384x128xbf16>, vector<128x128xf32> -> vector<128x128xf32>
    %c2_56 = arith.constant 2 : index
    %c0_57 = arith.constant 0 : index
    %c0_58 = arith.constant 0 : index
    %77 = vector.load %arg8[%c2_56, %c0_57, %c0_58] : memref<10x1x128xf32, #tpu.memory_space<vmem>>, vector<1x1x128xf32>
    %78 = vector.shape_cast %77 : vector<1x1x128xf32> to vector<1x128xf32>
    %79 = vector.broadcast %78 : vector<1x128xf32> to vector<128x128xf32>
    %80 = arith.addf %76, %79 : vector<128x128xf32>
    %cst_59 = arith.constant 0.000000e+00 : f32
    %81 = vector.broadcast %cst_59 : f32 to vector<128x128xf32>
    %82 = arith.maximumf %80, %81 : vector<128x128xf32>
    %c8_60 = arith.constant 8 : index
    %c0_61 = arith.constant 0 : index
    %83 = vector.load %arg10[%c8_60, %c0_61] : memref<144x128xf32, #tpu.memory_space<vmem>>, vector<128x128xf32>
    tpu.vector_store %arg10[%c8_60, %c0_61], %82 {strides = array<i32>} : memref<144x128xf32, #tpu.memory_space<vmem>>, vector<128x128xf32>,
    %c7_62 = arith.constant 7 : index
    %c0_63 = arith.constant 0 : index
    %84 = vector.load %arg10[%c7_62, %c0_63] : memref<144x128xf32, #tpu.memory_space<vmem>>, vector<128x128xf32>
    %cst_64 = arith.constant 0.000000e+00 : f32
    %85 = vector.broadcast %cst_64 : f32 to vector<128x128xf32>
    %86 = arith.select %6, %84, %85 : vector<128x128xi1>, vector<128x128xf32>
    %c9_65 = arith.constant 9 : index
    %c0_66 = arith.constant 0 : index
    %87 = vector.load %arg10[%c9_65, %c0_66] : memref<144x128xf32, #tpu.memory_space<vmem>>, vector<128x128xf32>
    %cst_67 = arith.constant 0.000000e+00 : f32
    %88 = vector.broadcast %cst_67 : f32 to vector<128x128xf32>
    %89 = arith.select %8, %87, %88 : vector<128x128xi1>, vector<128x128xf32>
    %90 = tpu.concatenate %86, %82, %89 in 1 : vector<128x128xf32>, vector<128x128xf32>, vector<128x128xf32> -> vector<128x384xf32>
    %c3 = arith.constant 3 : index
    %c0_68 = arith.constant 0 : index
    %c0_69 = arith.constant 0 : index
    %91 = vector.load %arg7[%c3, %c0_68, %c0_69] : memref<10x384x128xbf16, #tpu.memory_space<vmem>>, vector<1x384x128xbf16>
    %92 = vector.shape_cast %91 : vector<1x384x128xbf16> to vector<384x128xbf16>
    %93 = arith.truncf %90 : vector<128x384xf32> to vector<128x384xbf16>
    %cst_70 = arith.constant dense<0.000000e+00> : vector<128x128xf32>
    %94 = tpu.matmul %93, %92, %cst_70 {dimension_numbers = #tpu.dot_dimension_numbers<[1], [0], [0], [1], [0, 0, 1, 1], [], []>} : vector<128x384xbf16>, vector<384x128xbf16>, vector<128x128xf32> -> vector<128x128xf32>
    %c3_71 = arith.constant 3 : index
    %c0_72 = arith.constant 0 : index
    %c0_73 = arith.constant 0 : index
    %95 = vector.load %arg8[%c3_71, %c0_72, %c0_73] : memref<10x1x128xf32, #tpu.memory_space<vmem>>, vector<1x1x128xf32>
    %96 = vector.shape_cast %95 : vector<1x1x128xf32> to vector<1x128xf32>
    %97 = vector.broadcast %96 : vector<1x128xf32> to vector<128x128xf32>
    %98 = arith.addf %94, %97 : vector<128x128xf32>
    %99 = arith.addf %62, %98 : vector<128x128xf32>
    %cst_74 = arith.constant 0.000000e+00 : f32
    %100 = vector.broadcast %cst_74 : f32 to vector<128x128xf32>
    %101 = arith.maximumf %26, %100 : vector<128x128xf32>
    %c8_75 = arith.constant 8 : index
    %c0_76 = arith.constant 0 : index
    %102 = vector.load %arg10[%c8_75, %c0_76] : memref<144x128xf32, #tpu.memory_space<vmem>>, vector<128x128xf32>
    tpu.vector_store %arg10[%c8_75, %c0_76], %101 {strides = array<i32>} : memref<144x128xf32, #tpu.memory_space<vmem>>, vector<128x128xf32>,
    %c7_77 = arith.constant 7 : index
    %c0_78 = arith.constant 0 : index
    %103 = vector.load %arg10[%c7_77, %c0_78] : memref<144x128xf32, #tpu.memory_space<vmem>>, vector<128x128xf32>
    %cst_79 = arith.constant 0.000000e+00 : f32
    %104 = vector.broadcast %cst_79 : f32 to vector<128x128xf32>
    %105 = arith.select %6, %103, %104 : vector<128x128xi1>, vector<128x128xf32>
    %c9_80 = arith.constant 9 : index
    %c0_81 = arith.constant 0 : index
    %106 = vector.load %arg10[%c9_80, %c0_81] : memref<144x128xf32, #tpu.memory_space<vmem>>, vector<128x128xf32>
    %cst_82 = arith.constant 0.000000e+00 : f32
    %107 = vector.broadcast %cst_82 : f32 to vector<128x128xf32>
    %108 = arith.select %8, %106, %107 : vector<128x128xi1>, vector<128x128xf32>
    %109 = tpu.concatenate %105, %101, %108 in 1 : vector<128x128xf32>, vector<128x128xf32>, vector<128x128xf32> -> vector<128x384xf32>
    %c4 = arith.constant 4 : index
    %c0_83 = arith.constant 0 : index
    %c0_84 = arith.constant 0 : index
    %110 = vector.load %arg7[%c4, %c0_83, %c0_84] : memref<10x384x128xbf16, #tpu.memory_space<vmem>>, vector<1x384x128xbf16>
    %111 = vector.shape_cast %110 : vector<1x384x128xbf16> to vector<384x128xbf16>
    %112 = arith.truncf %109 : vector<128x384xf32> to vector<128x384xbf16>
    %cst_85 = arith.constant dense<0.000000e+00> : vector<128x128xf32>
    %113 = tpu.matmul %112, %111, %cst_85 {dimension_numbers = #tpu.dot_dimension_numbers<[1], [0], [0], [1], [0, 0, 1, 1], [], []>} : vector<128x384xbf16>, vector<384x128xbf16>, vector<128x128xf32> -> vector<128x128xf32>
    %c4_86 = arith.constant 4 : index
    %c0_87 = arith.constant 0 : index
    %c0_88 = arith.constant 0 : index
    %114 = vector.load %arg8[%c4_86, %c0_87, %c0_88] : memref<10x1x128xf32, #tpu.memory_space<vmem>>, vector<1x1x128xf32>
    %115 = vector.shape_cast %114 : vector<1x1x128xf32> to vector<1x128xf32>
    %116 = vector.broadcast %115 : vector<1x128xf32> to vector<128x128xf32>
    %117 = arith.addf %113, %116 : vector<128x128xf32>
    %cst_89 = arith.constant 0.000000e+00 : f32
    %118 = vector.broadcast %cst_89 : f32 to vector<128x128xf32>
    %119 = arith.maximumf %117, %118 : vector<128x128xf32>
    %c8_90 = arith.constant 8 : index
    %c0_91 = arith.constant 0 : index
    %120 = vector.load %arg10[%c8_90, %c0_91] : memref<144x128xf32, #tpu.memory_space<vmem>>, vector<128x128xf32>
    tpu.vector_store %arg10[%c8_90, %c0_91], %119 {strides = array<i32>} : memref<144x128xf32, #tpu.memory_space<vmem>>, vector<128x128xf32>,
    %c7_92 = arith.constant 7 : index
    %c0_93 = arith.constant 0 : index
    %121 = vector.load %arg10[%c7_92, %c0_93] : memref<144x128xf32, #tpu.memory_space<vmem>>, vector<128x128xf32>
    %cst_94 = arith.constant 0.000000e+00 : f32
    %122 = vector.broadcast %cst_94 : f32 to vector<128x128xf32>
    %123 = arith.select %6, %121, %122 : vector<128x128xi1>, vector<128x128xf32>
    %c9_95 = arith.constant 9 : index
    %c0_96 = arith.constant 0 : index
    %124 = vector.load %arg10[%c9_95, %c0_96] : memref<144x128xf32, #tpu.memory_space<vmem>>, vector<128x128xf32>
    %cst_97 = arith.constant 0.000000e+00 : f32
    %125 = vector.broadcast %cst_97 : f32 to vector<128x128xf32>
    %126 = arith.select %8, %124, %125 : vector<128x128xi1>, vector<128x128xf32>
    %127 = tpu.concatenate %123, %119, %126 in 1 : vector<128x128xf32>, vector<128x128xf32>, vector<128x128xf32> -> vector<128x384xf32>
    %c5 = arith.constant 5 : index
    %c0_98 = arith.constant 0 : index
    %c0_99 = arith.constant 0 : index
    %128 = vector.load %arg7[%c5, %c0_98, %c0_99] : memref<10x384x128xbf16, #tpu.memory_space<vmem>>, vector<1x384x128xbf16>
    %129 = vector.shape_cast %128 : vector<1x384x128xbf16> to vector<384x128xbf16>
    %130 = arith.truncf %127 : vector<128x384xf32> to vector<128x384xbf16>
    %cst_100 = arith.constant dense<0.000000e+00> : vector<128x128xf32>
    %131 = tpu.matmul %130, %129, %cst_100 {dimension_numbers = #tpu.dot_dimension_numbers<[1], [0], [0], [1], [0, 0, 1, 1], [], []>} : vector<128x384xbf16>, vector<384x128xbf16>, vector<128x128xf32> -> vector<128x128xf32>
    %c5_101 = arith.constant 5 : index
    %c0_102 = arith.constant 0 : index
    %c0_103 = arith.constant 0 : index
    %132 = vector.load %arg8[%c5_101, %c0_102, %c0_103] : memref<10x1x128xf32, #tpu.memory_space<vmem>>, vector<1x1x128xf32>
    %133 = vector.shape_cast %132 : vector<1x1x128xf32> to vector<1x128xf32>
    %134 = vector.broadcast %133 : vector<1x128xf32> to vector<128x128xf32>
    %135 = arith.addf %131, %134 : vector<128x128xf32>
    %136 = arith.addf %17, %135 : vector<128x128xf32>
    %cst_104 = arith.constant 0.000000e+00 : f32
    %137 = vector.broadcast %cst_104 : f32 to vector<128x128xf32>
    %138 = arith.maximumf %26, %137 : vector<128x128xf32>
    %c8_105 = arith.constant 8 : index
    %c0_106 = arith.constant 0 : index
    %139 = vector.load %arg10[%c8_105, %c0_106] : memref<144x128xf32, #tpu.memory_space<vmem>>, vector<128x128xf32>
    tpu.vector_store %arg10[%c8_105, %c0_106], %138 {strides = array<i32>} : memref<144x128xf32, #tpu.memory_space<vmem>>, vector<128x128xf32>,
    %c7_107 = arith.constant 7 : index
    %c0_108 = arith.constant 0 : index
    %140 = vector.load %arg10[%c7_107, %c0_108] : memref<144x128xf32, #tpu.memory_space<vmem>>, vector<128x128xf32>
    %cst_109 = arith.constant 0.000000e+00 : f32
    %141 = vector.broadcast %cst_109 : f32 to vector<128x128xf32>
    %142 = arith.select %6, %140, %141 : vector<128x128xi1>, vector<128x128xf32>
    %c9_110 = arith.constant 9 : index
    %c0_111 = arith.constant 0 : index
    %143 = vector.load %arg10[%c9_110, %c0_111] : memref<144x128xf32, #tpu.memory_space<vmem>>, vector<128x128xf32>
    %cst_112 = arith.constant 0.000000e+00 : f32
    %144 = vector.broadcast %cst_112 : f32 to vector<128x128xf32>
    %145 = arith.select %8, %143, %144 : vector<128x128xi1>, vector<128x128xf32>
    %146 = tpu.concatenate %142, %138, %145 in 1 : vector<128x128xf32>, vector<128x128xf32>, vector<128x128xf32> -> vector<128x384xf32>
    %c6 = arith.constant 6 : index
    %c0_113 = arith.constant 0 : index
    %c0_114 = arith.constant 0 : index
    %147 = vector.load %arg7[%c6, %c0_113, %c0_114] : memref<10x384x128xbf16, #tpu.memory_space<vmem>>, vector<1x384x128xbf16>
    %148 = vector.shape_cast %147 : vector<1x384x128xbf16> to vector<384x128xbf16>
    %149 = arith.truncf %146 : vector<128x384xf32> to vector<128x384xbf16>
    %cst_115 = arith.constant dense<0.000000e+00> : vector<128x128xf32>
    %150 = tpu.matmul %149, %148, %cst_115 {dimension_numbers = #tpu.dot_dimension_numbers<[1], [0], [0], [1], [0, 0, 1, 1], [], []>} : vector<128x384xbf16>, vector<384x128xbf16>, vector<128x128xf32> -> vector<128x128xf32>
    %c6_116 = arith.constant 6 : index
    %c0_117 = arith.constant 0 : index
    %c0_118 = arith.constant 0 : index
    %151 = vector.load %arg8[%c6_116, %c0_117, %c0_118] : memref<10x1x128xf32, #tpu.memory_space<vmem>>, vector<1x1x128xf32>
    %152 = vector.shape_cast %151 : vector<1x1x128xf32> to vector<1x128xf32>
    %153 = vector.broadcast %152 : vector<1x128xf32> to vector<128x128xf32>
    %154 = arith.addf %150, %153 : vector<128x128xf32>
    %cst_119 = arith.constant 0.000000e+00 : f32
    %155 = vector.broadcast %cst_119 : f32 to vector<128x128xf32>
    %156 = arith.maximumf %154, %155 : vector<128x128xf32>
    %c8_120 = arith.constant 8 : index
    %c0_121 = arith.constant 0 : index
    %157 = vector.load %arg10[%c8_120, %c0_121] : memref<144x128xf32, #tpu.memory_space<vmem>>, vector<128x128xf32>
    tpu.vector_store %arg10[%c8_120, %c0_121], %156 {strides = array<i32>} : memref<144x128xf32, #tpu.memory_space<vmem>>, vector<128x128xf32>,
    %c7_122 = arith.constant 7 : index
    %c0_123 = arith.constant 0 : index
    %158 = vector.load %arg10[%c7_122, %c0_123] : memref<144x128xf32, #tpu.memory_space<vmem>>, vector<128x128xf32>
    %cst_124 = arith.constant 0.000000e+00 : f32
    %159 = vector.broadcast %cst_124 : f32 to vector<128x128xf32>
    %160 = arith.select %6, %158, %159 : vector<128x128xi1>, vector<128x128xf32>
    %c9_125 = arith.constant 9 : index
    %c0_126 = arith.constant 0 : index
    %161 = vector.load %arg10[%c9_125, %c0_126] : memref<144x128xf32, #tpu.memory_space<vmem>>, vector<128x128xf32>
    %cst_127 = arith.constant 0.000000e+00 : f32
    %162 = vector.broadcast %cst_127 : f32 to vector<128x128xf32>
    %163 = arith.select %8, %161, %162 : vector<128x128xi1>, vector<128x128xf32>
    %164 = tpu.concatenate %160, %156, %163 in 1 : vector<128x128xf32>, vector<128x128xf32>, vector<128x128xf32> -> vector<128x384xf32>
    %c7_128 = arith.constant 7 : index
    %c0_129 = arith.constant 0 : index
    %c0_130 = arith.constant 0 : index
    %165 = vector.load %arg7[%c7_128, %c0_129, %c0_130] : memref<10x384x128xbf16, #tpu.memory_space<vmem>>, vector<1x384x128xbf16>
    %166 = vector.shape_cast %165 : vector<1x384x128xbf16> to vector<384x128xbf16>
    %167 = arith.truncf %164 : vector<128x384xf32> to vector<128x384xbf16>
    %cst_131 = arith.constant dense<0.000000e+00> : vector<128x128xf32>
    %168 = tpu.matmul %167, %166, %cst_131 {dimension_numbers = #tpu.dot_dimension_numbers<[1], [0], [0], [1], [0, 0, 1, 1], [], []>} : vector<128x384xbf16>, vector<384x128xbf16>, vector<128x128xf32> -> vector<128x128xf32>
    %c7_132 = arith.constant 7 : index
    %c0_133 = arith.constant 0 : index
    %c0_134 = arith.constant 0 : index
    %169 = vector.load %arg8[%c7_132, %c0_133, %c0_134] : memref<10x1x128xf32, #tpu.memory_space<vmem>>, vector<1x1x128xf32>
    %170 = vector.shape_cast %169 : vector<1x1x128xf32> to vector<1x128xf32>
    %171 = vector.broadcast %170 : vector<1x128xf32> to vector<128x128xf32>
    %172 = arith.addf %168, %171 : vector<128x128xf32>
    %173 = arith.addf %17, %172 : vector<128x128xf32>
    %cst_135 = arith.constant 0.000000e+00 : f32
    %174 = vector.broadcast %cst_135 : f32 to vector<128x128xf32>
    %175 = arith.maximumf %17, %174 : vector<128x128xf32>
    %c8_136 = arith.constant 8 : index
    %c0_137 = arith.constant 0 : index
    %176 = vector.load %arg10[%c8_136, %c0_137] : memref<144x128xf32, #tpu.memory_space<vmem>>, vector<128x128xf32>
    tpu.vector_store %arg10[%c8_136, %c0_137], %175 {strides = array<i32>} : memref<144x128xf32, #tpu.memory_space<vmem>>, vector<128x128xf32>,
    %c7_138 = arith.constant 7 : index
    %c0_139 = arith.constant 0 : index
    %177 = vector.load %arg10[%c7_138, %c0_139] : memref<144x128xf32, #tpu.memory_space<vmem>>, vector<128x128xf32>
    %cst_140 = arith.constant 0.000000e+00 : f32
    %178 = vector.broadcast %cst_140 : f32 to vector<128x128xf32>
    %179 = arith.select %6, %177, %178 : vector<128x128xi1>, vector<128x128xf32>
    %c9_141 = arith.constant 9 : index
    %c0_142 = arith.constant 0 : index
    %180 = vector.load %arg10[%c9_141, %c0_142] : memref<144x128xf32, #tpu.memory_space<vmem>>, vector<128x128xf32>
    %cst_143 = arith.constant 0.000000e+00 : f32
    %181 = vector.broadcast %cst_143 : f32 to vector<128x128xf32>
    %182 = arith.select %8, %180, %181 : vector<128x128xi1>, vector<128x128xf32>
    %183 = tpu.concatenate %179, %175, %182 in 1 : vector<128x128xf32>, vector<128x128xf32>, vector<128x128xf32> -> vector<128x384xf32>
    %c8_144 = arith.constant 8 : index
    %c0_145 = arith.constant 0 : index
    %c0_146 = arith.constant 0 : index
    %184 = vector.load %arg7[%c8_144, %c0_145, %c0_146] : memref<10x384x128xbf16, #tpu.memory_space<vmem>>, vector<1x384x128xbf16>
    %185 = vector.shape_cast %184 : vector<1x384x128xbf16> to vector<384x128xbf16>
    %186 = arith.truncf %183 : vector<128x384xf32> to vector<128x384xbf16>
    %cst_147 = arith.constant dense<0.000000e+00> : vector<128x128xf32>
    %187 = tpu.matmul %186, %185, %cst_147 {dimension_numbers = #tpu.dot_dimension_numbers<[1], [0], [0], [1], [0, 0, 1, 1], [], []>} : vector<128x384xbf16>, vector<384x128xbf16>, vector<128x128xf32> -> vector<128x128xf32>
    %c8_148 = arith.constant 8 : index
    %c0_149 = arith.constant 0 : index
    %c0_150 = arith.constant 0 : index
    %188 = vector.load %arg8[%c8_148, %c0_149, %c0_150] : memref<10x1x128xf32, #tpu.memory_space<vmem>>, vector<1x1x128xf32>
    %189 = vector.shape_cast %188 : vector<1x1x128xf32> to vector<1x128xf32>
    %190 = vector.broadcast %189 : vector<1x128xf32> to vector<128x128xf32>
    %191 = arith.addf %187, %190 : vector<128x128xf32>
    %cst_151 = arith.constant 0.000000e+00 : f32
    %192 = vector.broadcast %cst_151 : f32 to vector<128x128xf32>
    %193 = arith.maximumf %191, %192 : vector<128x128xf32>
    %c8_152 = arith.constant 8 : index
    %c0_153 = arith.constant 0 : index
    %194 = vector.load %arg10[%c8_152, %c0_153] : memref<144x128xf32, #tpu.memory_space<vmem>>, vector<128x128xf32>
    tpu.vector_store %arg10[%c8_152, %c0_153], %193 {strides = array<i32>} : memref<144x128xf32, #tpu.memory_space<vmem>>, vector<128x128xf32>,
    %c7_154 = arith.constant 7 : index
    %c0_155 = arith.constant 0 : index
    %195 = vector.load %arg10[%c7_154, %c0_155] : memref<144x128xf32, #tpu.memory_space<vmem>>, vector<128x128xf32>
    %cst_156 = arith.constant 0.000000e+00 : f32
    %196 = vector.broadcast %cst_156 : f32 to vector<128x128xf32>
    %197 = arith.select %6, %195, %196 : vector<128x128xi1>, vector<128x128xf32>
    %c9_157 = arith.constant 9 : index
    %c0_158 = arith.constant 0 : index
    %198 = vector.load %arg10[%c9_157, %c0_158] : memref<144x128xf32, #tpu.memory_space<vmem>>, vector<128x128xf32>
    %cst_159 = arith.constant 0.000000e+00 : f32
    %199 = vector.broadcast %cst_159 : f32 to vector<128x128xf32>
    %200 = arith.select %8, %198, %199 : vector<128x128xi1>, vector<128x128xf32>
    %201 = tpu.concatenate %197, %193, %200 in 1 : vector<128x128xf32>, vector<128x128xf32>, vector<128x128xf32> -> vector<128x384xf32>
    %c9_160 = arith.constant 9 : index
    %c0_161 = arith.constant 0 : index
    %c0_162 = arith.constant 0 : index
    %202 = vector.load %arg7[%c9_160, %c0_161, %c0_162] : memref<10x384x128xbf16, #tpu.memory_space<vmem>>, vector<1x384x128xbf16>
    %203 = vector.shape_cast %202 : vector<1x384x128xbf16> to vector<384x128xbf16>
    %204 = arith.truncf %201 : vector<128x384xf32> to vector<128x384xbf16>
    %cst_163 = arith.constant dense<0.000000e+00> : vector<128x128xf32>
    %205 = tpu.matmul %204, %203, %cst_163 {dimension_numbers = #tpu.dot_dimension_numbers<[1], [0], [0], [1], [0, 0, 1, 1], [], []>} : vector<128x384xbf16>, vector<384x128xbf16>, vector<128x128xf32> -> vector<128x128xf32>
    %c9_164 = arith.constant 9 : index
    %c0_165 = arith.constant 0 : index
    %c0_166 = arith.constant 0 : index
    %206 = vector.load %arg8[%c9_164, %c0_165, %c0_166] : memref<10x1x128xf32, #tpu.memory_space<vmem>>, vector<1x1x128xf32>
    %207 = vector.shape_cast %206 : vector<1x1x128xf32> to vector<1x128xf32>
    %208 = vector.broadcast %207 : vector<1x128xf32> to vector<128x128xf32>
    %209 = arith.addf %205, %208 : vector<128x128xf32>
    %210 = arith.addf %209, %99 : vector<128x128xf32>
    %211 = tpu.concatenate %99, %136, %173, %210 in 1 : vector<128x128xf32>, vector<128x128xf32>, vector<128x128xf32>, vector<128x128xf32> -> vector<128x512xf32>
    %c0_167 = arith.constant 0 : index
    %c0_168 = arith.constant 0 : index
    %212 = vector.load %arg9[%c0_167, %c0_168] : memref<128x512xf32, #tpu.memory_space<vmem>>, vector<128x512xf32>
    tpu.vector_store %arg9[%c0_167, %c0_168], %211 {strides = array<i32>} : memref<128x512xf32, #tpu.memory_space<vmem>>, vector<128x512xf32>,
    return
  }
  func.func @transform_0(%arg0: i32) -> (i32, i32) {
    %c0_i32 = arith.constant 0 : i32
    %c0_i32_0 = arith.constant 0 : i32
    return %arg0, %c0_i32 : i32, i32
  }
  func.func @transform_1(%arg0: i32) -> (i32, i32) {
    %c0_i32 = arith.constant 0 : i32
    %c0_i32_0 = arith.constant 0 : i32
    return %arg0, %c0_i32 : i32, i32
  }
  func.func @transform_2(%arg0: i32) -> (i32, i32) {
    %c0_i32 = arith.constant 0 : i32
    %c0_i32_0 = arith.constant 0 : i32
    %c0_i32_1 = arith.constant 0 : i32
    return %c0_i32, %c0_i32_0 : i32, i32
  }
  func.func @transform_3(%arg0: i32) -> (i32, i32) {
    %c0_i32 = arith.constant 0 : i32
    %c0_i32_0 = arith.constant 0 : i32
    %c0_i32_1 = arith.constant 0 : i32
    return %c0_i32, %c0_i32_0 : i32, i32
  }
  func.func @transform_4(%arg0: i32) -> (i32, i32) {
    %c0_i32 = arith.constant 0 : i32
    %c0_i32_0 = arith.constant 0 : i32
    %c0_i32_1 = arith.constant 0 : i32
    return %c0_i32, %c0_i32_0 : i32, i32
  }
  func.func @transform_5(%arg0: i32) -> (i32, i32) {
    %c0_i32 = arith.constant 0 : i32
    %c0_i32_0 = arith.constant 0 : i32
    %c0_i32_1 = arith.constant 0 : i32
    return %c0_i32, %c0_i32_0 : i32, i32
  }
  func.func @transform_6(%arg0: i32) -> (i32, i32, i32) {
    %c0_i32 = arith.constant 0 : i32
    %c0_i32_0 = arith.constant 0 : i32
    %c0_i32_1 = arith.constant 0 : i32
    %c0_i32_2 = arith.constant 0 : i32
    return %c0_i32, %c0_i32_0, %c0_i32_1 : i32, i32, i32
  }
  func.func @transform_7(%arg0: i32) -> (i32, i32, i32) {
    %c0_i32 = arith.constant 0 : i32
    %c0_i32_0 = arith.constant 0 : i32
    %c0_i32_1 = arith.constant 0 : i32
    %c0_i32_2 = arith.constant 0 : i32
    return %c0_i32, %c0_i32_0, %c0_i32_1 : i32, i32, i32
  }
  func.func @transform_8(%arg0: i32) -> (i32, i32) {
    %c0_i32 = arith.constant 0 : i32
    %c0_i32_0 = arith.constant 0 : i32
    return %arg0, %c0_i32 : i32, i32
  }
}

</mosaic_0001>

<bundles_post_ra>
// kernel: cell_forward.1
= control target key start
LH: loop header
LB: loop body
LE: loop exit
PB: predicated region body
PF: predicated region fallthrough
CT: control target
= control target key end

     0   :  { %13 = vsyncpa [#allocation4], 0  ;;  %s11323_s0 = inlined_call_operand.vmem [shape: f32[256,64], index: 0, kind: input, shape index: {}]   ;;  %s11324_s1 = inlined_call_operand.vmem [shape: f32[256,64], index: 1, kind: input, shape index: {}]   ;;  %s11325_s2 = inlined_call_operand.hbm [shape: bf16[64,128], index: 2, kind: input, shape index: {}]   ;;  %s11326_s3 = inlined_call_operand.hbm [shape: f32[1,128], index: 3, kind: input, shape index: {}]   ;;  %s11327_s4 = inlined_call_operand.hbm [shape: bf16[64,128], index: 4, kind: input, shape index: {}]   ;;  %s11328_s5 = inlined_call_operand.hbm [shape: f32[1,128], index: 5, kind: input, shape index: {}]   ;;  %s11329_s6 = inlined_call_operand.vmem [shape: bf16[10,384,128], index: 6, kind: input, shape index: {}]   ;;  %s11330_s7 = inlined_call_operand.hbm [shape: f32[10,1,128], index: 7, kind: input, shape index: {}]   ;;  %s11331_s8 = inlined_call_operand.vmem [shape: f32[256,512], index: 8, kind: output, shape index: {}]  }
   0x1   :  { %14 = vsyncpa [#allocation6], 0 }
   0x2   :  { %15 = vsyncpa [#allocation9], 0  ;;  %s9156_s27 = smov 0  }
   0x3 LB: > { %s9100_s28 = smov [#allocation5]   ;;  %s9162_s30 = sadd.s32 4294967295, %s9098_s27   ;;  %s9098_s27 = sphi %s9156_s27, %s21_s27  }
   0x4   : > { %s256_s29 = sshll.u32 %s9100_s28, 4  ;;  %p6159_p0 = scmp.ge.s32.totalorder %s9098_s27, 1  ;;  %s9168_s29 = int_to_ptr.vmem [resolvable:$true] %s256_s29 }
   0x5   : > { %p230_p1 = scmp.lt.s32.totalorder %s9098_s27, 3  ;;  %p11332_p3 = scmp.eq.s32.totalorder %s9162_s30, 0 }
   0x6   : > { %s9101_s10 = smov [#allocation8]   ;;  %s9102_s12 = smov [#allocation3]  }
   0x7   : > { %p9170_p4 = pnand %p6159_p0, %p230_p1  ;;  %s280_s11 = sshll.u32 %s9101_s10, 4  ;;  %s9176_s11 = int_to_ptr.vmem [resolvable:$true] %s280_s11 }
   0x8   : > { %s242_s13 = sshll.u32 %s9102_s12, 4  ;;  %s9103_s15 = smov [#allocation7]   ;;  %s9184_s13 = int_to_ptr.vmem [resolvable:$true] %s242_s13 }
   0x9   : > { %s11404_s9 = scalar_select %p9170_p4, 1, 0 }
   0xa   : > { %p8631_p5 = pneg %p9170_p4  ;;  %s9186_s16 = sshll.u32 %s9103_s15, 4  ;;  %s267_s16 = int_to_ptr.vmem [resolvable:$true] %s9186_s16 }
   0xb   : > { %s8940_s19 = scalar_lea.hbm %s11326_s3, 16 }
   0xc   : > { %p9180_p6 = pnand %p11332_p3, %p8631_p5  ;;  %p8941_p7 = scmp.ne.s32.totalorder %s11326_s3, %s8940_s19 }
   0xd   : > { %p8947_p11 = scmp.lt.u32.totalorder %s8940_s19, %s11326_s3 }
   0xe   : > { %p9196_p8 = pneg %p9180_p6 }
  0x10   : > { %p8943_p9 = pnand %p9196_p8, %p8941_p7 }
  0x12   : > { %p8944_p10 = pneg %p8943_p9 }
  0x14   : > { %p8949_p12 = pnand %p8947_p11, %p8944_p10 }
  0x16   : > { %8952 = shalt.err (!%p8949_p12)
}
  0x17   : > { %s8953_s25 = scalar_lea.vmem %s9168_s29, 16  ;;  %s8960_s26 = scalar_lea.vmem %s9168_s29, 32 }
  0x18   : > { %p8954_p13 = scmp.ne.s32.totalorder %s9168_s29, %s8953_s25  ;;  %p8961_p5 = scmp.lt.s32.totalorder %s9168_s29, %s9168_s29 }
  0x19   : > { %p8962_p7 = scmp.lt.s32.totalorder %s8960_s26, %s8953_s25 }
  0x1a   : > { %p8956_p0 = pnand %p8954_p13, %p9196_p8 }
  0x1b   : > { %p8963_p9 = por %p8962_p7, %p8961_p5 }
  0x1c   : > { %p8957_p1 = pneg %p8956_p0 }
  0x1e   : > { %p8964_p2 = pnand %p8963_p9, %p8957_p1 }
  0x20   : > { %8967 = shalt.err (!%p8964_p2)
}
  0x21   : > { %8637 = dma.hbm_to_vmem [thread:$0]  (!%p9180_p6), %s11326_s3, 16, %s9168_s29, [#allocation6]  }
  0x22   : > { %s8968_s17 = scalar_lea.hbm %s11328_s5, 16 }
  0x23   : > { %p8969_p10 = scmp.ne.s32.totalorder %s11328_s5, %s8968_s17  ;;  %p8975_p2 = scmp.lt.u32.totalorder %s8968_s17, %s11328_s5 }
  0x25   : > { %p8971_p11 = pnand %p8969_p10, %p9196_p8 }
  0x27   : > { %p8972_p12 = pneg %p8971_p11 }
  0x29   : > { %p8977_p13 = pnand %p8975_p2, %p8972_p12 }
  0x2b   : > { %8980 = shalt.err (!%p8977_p13)
}
  0x2c   : > { %s8981_s29 = scalar_lea.vmem %s9176_s11, 16  ;;  %s8988_s23 = scalar_lea.vmem %s9176_s11, 32 }
  0x2d   : > { %p8982_p0 = scmp.ne.s32.totalorder %s9176_s11, %s8981_s29  ;;  %p8989_p7 = scmp.lt.s32.totalorder %s9176_s11, %s9176_s11 }
  0x2e   : > { %p8990_p9 = scmp.lt.s32.totalorder %s8988_s23, %s8981_s29 }
  0x2f   : > { %p8984_p1 = pnand %p8982_p0, %p9196_p8 }
  0x30   : > { %p8991_p10 = por %p8990_p9, %p8989_p7 }
  0x31   : > { %p8985_p5 = pneg %p8984_p1 }
  0x33   : > { %p8992_p11 = pnand %p8991_p10, %p8985_p5 }
  0x35   : > { %8995 = shalt.err (!%p8992_p11)
}
  0x36   : > { %8643 = dma.hbm_to_vmem [thread:$0]  (!%p9180_p6), %s11328_s5, 16, %s9176_s11, [#allocation9]  }
  0x37   : > { %s8996_s10 = scalar_lea.hbm %s11325_s2, 512 }
  0x38   : > { %p8997_p12 = scmp.ne.s32.totalorder %s11325_s2, %s8996_s10  ;;  %p9003_p0 = scmp.lt.u32.totalorder %s8996_s10, %s11325_s2 }
  0x3a   : > { %p8999_p2 = pnand %p8997_p12, %p9196_p8 }
  0x3c   : > { %p9000_p13 = pneg %p8999_p2 }
  0x3e   : > { %p9005_p1 = pnand %p9003_p0, %p9000_p13 }
  0x40   : > { %9008 = shalt.err (!%p9005_p1)
}
  0x41   : > { %s9009_s11 = scalar_lea.vmem %s9184_s13, 512  ;;  %p9017_p10 = scmp.lt.s32.totalorder %s9184_s13, %s9184_s13 }
  0x42   : > { %p9010_p5 = scmp.ne.s32.totalorder %s9184_s13, %s9009_s11  ;;  %p9018_p11 = scmp.lt.s32.totalorder %s9009_s11, %s9009_s11 }
  0x44   : > { %p9012_p7 = pnand %p9010_p5, %p9196_p8  ;;  %p9019_p12 = por %p9018_p11, %p9017_p10 }
  0x46   : > { %p9013_p9 = pneg %p9012_p7 }
  0x48   : > { %p9020_p2 = pnand %p9019_p12, %p9013_p9 }
  0x4a   : > { %9023 = shalt.err (!%p9020_p2)
}
  0x4b   : > { %s9104_s19 = smov 64   ;;  %s9105_s20 = smov 4  }
  0x4c   : > { %8634 = dma.hbm_to_vmem [thread:$0]  (!%p9180_p6), %s11325_s2, 512, %s9184_s13, [#allocation4], %s9104_s19, %s9104_s19, %s9105_s20  }
  0x4d   : > { %s9024_s25 = scalar_lea.hbm %s11327_s4, 512 }
  0x4e   : > { %p9025_p13 = scmp.ne.s32.totalorder %s11327_s4, %s9024_s25  ;;  %p9031_p5 = scmp.lt.u32.totalorder %s9024_s25, %s11327_s4 }
  0x50   : > { %p9027_p0 = pnand %p9025_p13, %p9196_p8 }
  0x52   : > { %p9028_p1 = pneg %p9027_p0 }
  0x54   : > { %p9033_p7 = pnand %p9031_p5, %p9028_p1 }
  0x56   : > { %9036 = shalt.err (!%p9033_p7)
}
  0x57   : > { %s9037_s15 = scalar_lea.vmem %s267_s16, 512  ;;  %p9045_p12 = scmp.lt.s32.totalorder %s267_s16, %s267_s16 }
  0x58   : > { %p9038_p9 = scmp.ne.s32.totalorder %s267_s16, %s9037_s15  ;;  %p9046_p2 = scmp.lt.s32.totalorder %s9037_s15, %s9037_s15 }
  0x5a   : > { %p9040_p10 = pnand %p9038_p9, %p9196_p8  ;;  %p9047_p3 = por %p9046_p2, %p9045_p12 }
  0x5c   : > { %p9041_p11 = pneg %p9040_p10 }
  0x5e   : > { %p9048_p4 = pnand %p9047_p3, %p9041_p11 }
  0x60   : > { %9051 = shalt.err (!%p9048_p4)
}
  0x61   : > { %8640 = dma.hbm_to_vmem [thread:$0]  (!%p9180_p6), %s11327_s4, 512, %s267_s16, [#allocation6], %s9104_s19, %s9104_s19, %s9105_s20  }
  0x62   : > { %s9106_s18 = smov [#allocation10]   ;;  %s9052_s23 = scalar_lea.hbm %s11330_s7, 160 }
  0x63   : > { %s293_s11 = sshll.u32 %s9106_s18, 4  ;;  %p9053_p13 = scmp.ne.s32.totalorder %s11330_s7, %s9052_s23  ;;  %s294_s11 = int_to_ptr.vmem [resolvable:$true] %s293_s11 }
  0x64   : > { %p9059_p0 = scmp.lt.u32.totalorder %s9052_s23, %s11330_s7 }
  0x65   : > { %p9055_p3 = pnand %p9053_p13, %p9196_p8 }
  0x67   : > { %p9056_p4 = pneg %p9055_p3 }
  0x69   : > { %p9061_p1 = pnand %p9059_p0, %p9056_p4 }
  0x6b   : > { %9064 = shalt.err (!%p9061_p1)
}
  0x6c   : > { %s9065_s16 = scalar_lea.vmem %s294_s11, 160  ;;  %p9073_p10 = scmp.lt.s32.totalorder %s294_s11, %s294_s11 }
  0x6d   : > { %p9066_p5 = scmp.ne.s32.totalorder %s294_s11, %s9065_s16  ;;  %p9074_p11 = scmp.lt.s32.totalorder %s9065_s16, %s9065_s16 }
  0x6f   : > { %p9068_p7 = pnand %p9066_p5, %p9196_p8  ;;  %p9075_p12 = por %p9074_p11, %p9073_p10 }
  0x71   : > { %p9069_p9 = pneg %p9068_p7 }
  0x73   : > { %p9076_p2 = pnand %p9075_p12, %p9069_p9 }
  0x75   : > { %9079 = shalt.err (!%p9076_p2)
}
  0x76   : > { %s9107_s19 = smov 16   ;;  %s9108_s20 = smov 1  }
  0x77   : > { %8646 = dma.hbm_to_vmem [thread:$0]  (!%p9180_p6), %s11330_s7, 160, %s294_s11, [#allocation9], %s9107_s19, %s9107_s19, %s9108_s20  }
  0x78   : > { %p11407_p13 = scmp.ne.s32.totalorder %s11404_s9, 0 }
  0x7a   : > { %327 = sbr.rel (%p11407_p13) target bundleno = 2101 (0x835), region = 52 }
  0x81   : > { %p11408_p3 = scmp.eq.s32.totalorder %s9162_s30, 0 }
  0x83   : > { %9085 = dma.done.wait (%p11408_p3), [#allocation4], 512   ;;  %p11409_p8 = pmov %p11408_p3 }
  0x84   : > { %p11410_p4 = pmov %p11408_p3 }
  0x85   : > { %9087 = vsyncadd (%p11409_p8), [#allocation4], 4294966784 }
  0x86   : > { %9089 = dma.done.wait (%p11410_p4), [#allocation6], 528   ;;  %p11411_p0 = pmov %p11408_p3 }
  0x88   : > { %9091 = vsyncadd (%p11411_p0), [#allocation6], 4294966768  ;;  %p11412_p1 = pmov %p11411_p0 }
  0x89   : > { %p11413_p6 = pmov %p11411_p0 }
  0x8a   : > { %9093 = dma.done.wait (%p11412_p1), [#allocation9], 176  }
  0x8b   : > { %9095 = vsyncadd (%p11413_p6), [#allocation9], 4294967120  ;;  %s6172_s9 = sshll.u32 %s9162_s30, 4  ;;  %p11414_p7 = scmp.ne.s32.totalorder %s9162_s30, 0 }
  0x8c   : > { %p384_p5 = scmp.lt.s32.totalorder %s6172_s9, 31  ;;  %v9109_v0 = vmov (!%p11414_p7), 0.0  }
  0x8d   : > { %406 = sbr.rel (%p11414_p7) target bundleno = 150 (0x96), region = 76  ;;  %407 = vst [vmem:[#allocation2] sm:$0xff] (!%p11414_p7), %v9109_v0  ;;  %408 = vst [vmem:[#allocation2 + $0x8] sm:$0xff] (!%p11414_p7), %v9109_v0 }
  0x8e   : > { %s11514_s9 = smov (!%p384_p5, %s6172_s9), 31  ;;  %409 = vst [vmem:[#allocation2 + $0x10] sm:$0xff] (!%p11414_p7), %v9109_v0  ;;  %410 = vst [vmem:[#allocation2 + $0x18] sm:$0xff] (!%p11414_p7), %v9109_v0 }
  0x8f   : > { %s6173_s14 = sshll.u32 %s11514_s9, 3  ;;  %s7370_s22 = sshll.u32 %s11514_s9, 5  ;;  %411 = vst [vmem:[#allocation2 + $0x20] sm:$0xff] (!%p11414_p7), %v9109_v0  ;;  %412 = vst [vmem:[#allocation2 + $0x28] sm:$0xff] (!%p11414_p7), %v9109_v0 }
  0x90   : > { %s9320_s17 = scalar_lea.vmem %s11323_s0, %s6173_s14  ;;  %s9325_s21 = scalar_lea.vmem %s11324_s1, %s6173_s14  ;;  %413 = vst [vmem:[#allocation2 + $0x30] sm:$0xff] (!%p11414_p7), %v9109_v0  ;;  %414 = vst [vmem:[#allocation2 + $0x38] sm:$0xff] (!%p11414_p7), %v9109_v0 }
  0x91   : > { %s9330_s24 = scalar_lea.vmem %s11331_s8, %s7370_s22  ;;  %415 = vst [vmem:[#allocation2 + $0x40] sm:$0xff] (!%p11414_p7), %v9109_v0  ;;  %416 = vst [vmem:[#allocation2 + $0x48] sm:$0xff] (!%p11414_p7), %v9109_v0 }
  0x92   : > { %417 = vst [vmem:[#allocation2 + $0x50] sm:$0xff] (!%p11414_p7), %v9109_v0  ;;  %418 = vst [vmem:[#allocation2 + $0x58] sm:$0xff] (!%p11414_p7), %v9109_v0 }
  0x93   : > { %419 = vst [vmem:[#allocation2 + $0x60] sm:$0xff] (!%p11414_p7), %v9109_v0  ;;  %420 = vst [vmem:[#allocation2 + $0x68] sm:$0xff] (!%p11414_p7), %v9109_v0 }
  0x94   : > { %421 = vst [vmem:[#allocation2 + $0x70] sm:$0xff] %v9109_v0  ;;  %422 = vst [vmem:[#allocation2 + $0x78] sm:$0xff] %v9109_v0 }
  0x95   : > { %423 = vst [vmem:[#allocation2 + $0x80] sm:$0xff] %v9109_v0  ;;  %424 = vst [vmem:[#allocation2 + $0x88] sm:$0xff] %v9109_v0 }
  0x96 PF: > { %v8676_v1 = vld [vmem:[#allocation7] sm:$0xff]   ;;  %v8677_v2 = vld [vmem:[#allocation7 + $0x8] sm:$0xff]   ;;  %v8678_v3 = vld [vmem:[#allocation7 + $0x10] sm:$0xff]   ;;  %vm511_vm0 = vcmask 523264   ;;  %vm9110_vm3 = vmmov 1  }
  0x97   : > { %8219 = vmatprep.subr.bf16.mxu1 %v8676_v1  ;;  %v633_v4 = vld [vmem:[%s9325_s21] sm:$0xff]  ;;  %v634_v5 = vld [vmem:[%s9325_s21 + $0x8] sm:$0xff]  ;;  %v635_v8 = vld [vmem:[%s9325_s21 + $0x10] sm:$0xff] }
  0x98   : > { %8220 = vmatpush3.bf16.msra.mxu1 %v8676_v1  ;;  %v649_v6 = vmax.f32 %v633_v4, 0.0  ;;  %v650_v7 = vmax.f32 %v634_v5, 0.0  ;;  %v636_v9 = vld [vmem:[%s9325_s21 + $0x18] sm:$0xff]  ;;  %v637_v11 = vld [vmem:[%s9325_s21 + $0x20] sm:$0xff]  ;;  %v638_v12 = vld [vmem:[%s9325_s21 + $0x28] sm:$0xff]  ;;  %v651_v14 = vmax.f32 %v635_v8, 0.0 }
  0x99   : > { %8221 = vmatprep.subr.bf16.mxu1 %v8677_v2  ;;  %v8679_v13 = vld [vmem:[#allocation7 + $0x18] sm:$0xff]   ;;  %v652_v15 = vmax.f32 %v636_v9, 0.0  ;;  %v653_v16 = vmax.f32 %v637_v11, 0.0  ;;  %v654_v17 = vmax.f32 %v638_v12, 0.0  ;;  %v8681_v19 = vld [vmem:[#allocation3 + $0x8] sm:$0xff]   ;;  %v432_v22 = vld [vmem:[%s9320_s17] sm:$0xff] }
  0x9a   : > { %v673_v10 = vpack.c.bf16 %v650_v7, %v649_v6  ;;  %v8680_v18 = vld [vmem:[#allocation3] sm:$0xff]   ;;  %v640_v21 = vld [vmem:[%s9325_s21 + $0x38] sm:$0xff]  ;;  %v641_v24 = vld [vmem:[%s9325_s21 + $0x40] sm:$0xff]  ;;  %v448_v27 = vmax.f32 %v432_v22, 0.0 }
  0x9b   : > { %8195 = vmatprep.subr.bf16.mxu0 %v8680_v18  ;;  %v639_v20 = vld [vmem:[%s9325_s21 + $0x30] sm:$0xff]  ;;  %v674_v23 = vpack.c.bf16 %v652_v15, %v651_v14  ;;  %v8682_v25 = vld [vmem:[#allocation3 + $0x10] sm:$0xff]   ;;  %v433_v26 = vld [vmem:[%s9320_s17 + $0x8] sm:$0xff]  ;;  %v675_v28 = vpack.c.bf16 %v654_v17, %v653_v16  ;;  %v656_v35 = vmax.f32 %v640_v21, 0.0  ;;  %v657_v36 = vmax.f32 %v641_v24, 0.0 }
  0x9c   : > { %8222 = vmatpush3.bf16.msra.mxu1 %v8677_v2  ;;  %8227 = vmatprep.mubr.msk.bf16.mxu1 %vm511_vm0, %v673_v10  ;;  %v642_v29 = vld [vmem:[%s9325_s21 + $0x48] sm:$0xff]  ;;  %v449_v30 = vmax.f32 %v433_v26, 0.0  ;;  %v434_v31 = vld [vmem:[%s9320_s17 + $0x10] sm:$0xff]  ;;  %v435_v33 = vld [vmem:[%s9320_s17 + $0x18] sm:$0xff]  ;;  %v655_v34 = vmax.f32 %v639_v20, 0.0 }
  0x9d   : > { %8223 = vmatprep.subr.bf16.mxu1 %v8678_v3  ;;  %8196 = vmatpush3.bf16.msra.mxu0 %v8680_v18  ;;  %v8683_v37 = vld [vmem:[#allocation3 + $0x18] sm:$0xff]   ;;  %v436_v38 = vld [vmem:[%s9320_s17 + $0x20] sm:$0xff]  ;;  %v658_v40 = vmax.f32 %v642_v29, 0.0  ;;  %v643_v41 = vld [vmem:[%s9325_s21 + $0x50] sm:$0xff]  ;;  %v450_v44 = vmax.f32 %v434_v31, 0.0  ;;  %v451_v45 = vmax.f32 %v435_v33, 0.0 }
  0x9e   : > { %8197 = vmatprep.subr.bf16.mxu0 %v8681_v19  ;;  %v472_v32 = vpack.c.bf16 %v449_v30, %v448_v27  ;;  %v437_v39 = vld [vmem:[%s9320_s17 + $0x28] sm:$0xff]  ;;  %v644_v42 = vld [vmem:[%s9325_s21 + $0x58] sm:$0xff]  ;;  %v645_v43 = vld [vmem:[%s9325_s21 + $0x60] sm:$0xff]  ;;  %v452_v50 = vmax.f32 %v436_v38, 0.0  ;;  %v676_v52 = vpack.c.bf16 %v656_v35, %v655_v34  ;;  %v659_v55 = vmax.f32 %v643_v41, 0.0 }
  0x9f   : > { %v8684_v46 = vld [vmem:[%s11329_s6 + $0x40] sm:$0xff]   ;;  %v646_v47 = vld [vmem:[%s9325_s21 + $0x68] sm:$0xff]  ;;  %v647_v48 = vld [vmem:[%s9325_s21 + $0x70] sm:$0xff]  ;;  %v453_v51 = vmax.f32 %v437_v39, 0.0  ;;  %v677_v54 = vpack.c.bf16 %v658_v40, %v657_v36  ;;  %v660_v58 = vmax.f32 %v644_v42, 0.0  ;;  %v473_v59 = vpack.c.bf16 %v451_v45, %v450_v44 }
  0xa0   : > { %8224 = vmatpush3.bf16.msra.mxu1 %v8678_v3  ;;  %8203 = vmatprep.mubr.msk.bf16.mxu0 %vm511_vm0, %v472_v32  ;;  %v648_v49 = vld [vmem:[%s9325_s21 + $0x78] sm:$0xff]  ;;  %v8688_v53 = vld [vmem:[%s11329_s6 + $0x80] sm:$0xff]   ;;  %v438_v57 = vld [vmem:[%s9320_s17 + $0x30] sm:$0xff]  ;;  %v661_v61 = vmax.f32 %v645_v43, 0.0  ;;  %v662_v0 = vmax.f32 %v646_v47, 0.0  ;;  %v663_v1 = vmax.f32 %v647_v48, 0.0 }
  0xa1   : > { %8225 = vmatprep.subr.bf16.mxu1 %v8679_v13  ;;  %8198 = vmatpush3.bf16.msra.mxu0 %v8681_v19  ;;  %v8685_v56 = vld [vmem:[%s11329_s6] sm:$0xff]   ;;  %v439_v60 = vld [vmem:[%s9320_s17 + $0x38] sm:$0xff]  ;;  %v474_v62 = vpack.c.bf16 %v453_v51, %v452_v50  ;;  %v8691_v63 = vld [vmem:[%s11329_s6 + $0x88] sm:$0xff]   ;;  %v664_v2 = vmax.f32 %v648_v49, 0.0  ;;  %v454_v7 = vmax.f32 %v438_v57, 0.0  ;;  %v678_v16 = vpack.c.bf16 %v660_v58, %v659_v55 }
  0xa2   : > { %8199 = vmatprep.subr.bf16.mxu0 %v8682_v25  ;;  %v8686_v3 = vld [vmem:[%s11329_s6 + $0x48] sm:$0xff]   ;;  %v440_v4 = vld [vmem:[%s9320_s17 + $0x40] sm:$0xff]  ;;  %v455_v8 = vmax.f32 %v439_v60, 0.0  ;;  %v8689_v9 = vld [vmem:[%s11329_s6 + $0x50] sm:$0xff]   ;;  %v679_v17 = vpack.c.bf16 %v662_v0, %v661_v61  ;;  %v425_v55 = vlaneseq }
  0xa3   : > { %v441_v5 = vld [vmem:[%s9320_s17 + $0x48] sm:$0xff]  ;;  %v456_v10 = vmax.f32 %v440_v4, 0.0  ;;  %v442_v12 = vld [vmem:[%s9320_s17 + $0x50] sm:$0xff]  ;;  %v8692_v20 = vld [vmem:[%s11329_s6 + $0x58] sm:$0xff]  }
  0xa4   : > { %8226 = vmatpush3.bf16.msra.mxu1 %v8679_v13  ;;  %v8687_v6 = vld [vmem:[%s11329_s6 + $0x8] sm:$0xff]   ;;  %v457_v11 = vmax.f32 %v441_v5, 0.0  ;;  %v443_v13 = vld [vmem:[%s9320_s17 + $0x58] sm:$0xff]  ;;  %v458_v14 = vmax.f32 %v442_v12, 0.0  ;;  %v8690_v18 = vld [vmem:[%s11329_s6 + $0x10] sm:$0xff]   ;;  %v475_v19 = vpack.c.bf16 %v455_v8, %v454_v7  ;;  %v426_v0 = vshrl.u32 %v425_v55, 7 }
  0xa5   : > { %8200 = vmatpush3.bf16.msra.mxu0 %v8682_v25  ;;  %8243 = vmatprep.subr.bf16.mxu1 %v8688_v53  ;;  %v459_v15 = vmax.f32 %v443_v13, 0.0  ;;  %v8693_v22 = vld [vmem:[%s11329_s6 + $0x18] sm:$0xff]   ;;  %v8694_v25 = vld [vmem:[%s11329_s6 + $0x90] sm:$0xff]   ;;  %v8695_v26 = vld [vmem:[%s11329_s6 + $0x60] sm:$0xff]  }
  0xa6   : > { %8201 = vmatprep.subr.bf16.mxu0 %v8683_v37  ;;  %v476_v21 = vpack.c.bf16 %v457_v11, %v456_v10  ;;  %v8696_v27 = vld [vmem:[%s11329_s6 + $0x20] sm:$0xff]   ;;  %v445_v29 = vld [vmem:[%s9320_s17 + $0x68] sm:$0xff]  ;;  %v8697_v30 = vld [vmem:[%s11329_s6 + $0x98] sm:$0xff]   ;;  %vm428_vm1 = vcmp.ne.s32.totalorder %v426_v0, 0 }
  0xa7   : > { %8228 = vmatmul.mubr.msk.bf16.vlgmr.msra.gmra.mrb[0].mxu1 %vm511_vm0, %v674_v23  ;;  %v680_v23 = vpack.c.bf16 %v664_v2, %v663_v1  ;;  %v477_v24 = vpack.c.bf16 %v459_v15, %v458_v14  ;;  %v461_v32 = vmax.f32 %v445_v29, 0.0  ;;  %v446_v33 = vld [vmem:[%s9320_s17 + $0x70] sm:$0xff]  ;;  %v447_v34 = vld [vmem:[%s9320_s17 + $0x78] sm:$0xff]  ;;  %v8699_v39 = vld [vmem:[%s11329_s6 + $0x28] sm:$0xff]  }
  0xa8   : > { %8231 = vmatprep.mubr.msk.bf16.mxu1 %vm511_vm0, %v675_v28  ;;  %8244 = vmatpush3.bf16.msra.mxu1 %v8688_v53  ;;  %v444_v28 = vld [vmem:[%s9320_s17 + $0x60] sm:$0xff]  ;;  %v462_v35 = vmax.f32 %v446_v33, 0.0  ;;  %v463_v36 = vmax.f32 %v447_v34, 0.0  ;;  %v8701_v42 = vld [vmem:[%s11329_s6 + $0x70] sm:$0xff]   ;;  %v8703_v44 = vld [vmem:[%s11329_s6 + $0xa8] sm:$0xff]  }
  0xa9   : > { %8202 = vmatpush3.bf16.msra.mxu0 %v8683_v37  ;;  %8245 = vmatprep.subr.bf16.mxu1 %v8691_v63  ;;  %v460_v31 = vmax.f32 %v444_v28, 0.0  ;;  %v8698_v37 = vld [vmem:[%s11329_s6 + $0x68] sm:$0xff]   ;;  %v8700_v41 = vld [vmem:[%s11329_s6 + $0xa0] sm:$0xff]   ;;  %v8702_v43 = vld [vmem:[%s11329_s6 + $0x30] sm:$0xff]  }
  0xaa   : > { %7395 = vmatprep.subr.bf16.mxu0 %v8684_v46  ;;  %v479_v40 = vpack.c.bf16 %v463_v36, %v462_v35  ;;  %v8704_v45 = vld [vmem:[%s11329_s6 + $0x78] sm:$0xff]   ;;  %v8706_v47 = vld [vmem:[%s11329_s6 + $0xb0] sm:$0xff]   ;;  %v9457_v49 = vld [vmem:[%s11329_s6 + $0x140] sm:$0xff]  }
  0xab   : > { %v478_v38 = vpack.c.bf16 %v461_v32, %v460_v31  ;;  %v8705_v46 = vld [vmem:[%s11329_s6 + $0x38] sm:$0xff]   ;;  %v8709_v50 = vld [vmem:[%s11329_s6 + $0x100] sm:$0xff]   ;;  %v9463_v51 = vld [vmem:[#allocation8] ss:$0 sm:$0xff] }
  0xac   : > { %8204 = vmatmul.mubr.msk.bf16.vlgmr.msra.gmra.mrb[0].mxu0 %vm511_vm0, %v473_v59  ;;  %8246 = vmatpush3.bf16.msra.mxu1 %v8691_v63  ;;  %v8707_v48 = vld [vmem:[%s11329_s6 + $0xb8] sm:$0xff]   ;;  %vm9508_vm4 = vmpackc.low %vm9110_vm3, %vm428_vm1  ;;  %v8713_v32 = vld [vmem:[%s11329_s6 + $0x148] sm:$0xff]  }
  0xad   : > { %7396 = vmatpush3.bf16.msra.mxu0 %v8685_v56  ;;  %8207 = vmatprep.mubr.msk.bf16.mxu0 %vm511_vm0, %v474_v62 }
  0xae   : > { %7397 = vmatprep.subr.bf16.mxu0 %v8686_v3  ;;  %8247 = vmatprep.subr.bf16.mxu1 %v8694_v25 }
  0xaf   : > { %8232 = vmatmul.mubr.msk.bf16.gmra.mrb[4].mxu1 %vm511_vm0, %v676_v52 }
  0xb0   : > { %8235 = vmatprep.mubr.msk.bf16.mxu1 %vm511_vm0, %v677_v54  ;;  %8248 = vmatpush3.bf16.msra.mxu1 %v8694_v25 }
  0xb1   : > { %7398 = vmatpush3.bf16.msra.mxu0 %v8687_v6  ;;  %8249 = vmatprep.subr.bf16.mxu1 %v8697_v30  ;;  %v427_v6 = vadd.s32 8, %v426_v0 }
  0xb2   : > { %7399 = vmatprep.subr.bf16.mxu0 %v8689_v9 }
  0xb3   : > { %vm431_vm2 = vcmp.ne.s32.totalorder %v427_v6, 15 }
  0xb4   : > { %8208 = vmatmul.mubr.msk.bf16.gmra.mrb[4].mxu0 %vm511_vm0, %v475_v19  ;;  %8250 = vmatpush3.bf16.msra.mxu1 %v8697_v30  ;;  %vm9514_vm5 = vmpackc.low %vm431_vm2, %vm9110_vm3 }
  0xb5   : > { %7400 = vmatpush3.bf16.msra.mxu0 %v8690_v18  ;;  %8211 = vmatprep.mubr.msk.bf16.mxu0 %vm511_vm0, %v476_v21 }
  0xb6   : > { %7401 = vmatprep.subr.bf16.mxu0 %v8692_v20  ;;  %8251 = vmatprep.subr.bf16.mxu1 %v8700_v41 }
  0xb7   : > { %8236 = vmatmul.mubr.msk.bf16.gmra.mrb[8].mxu1 %vm511_vm0, %v678_v16 }
  0xb8   : > { %8239 = vmatprep.mubr.msk.bf16.mxu1 %vm511_vm0, %v679_v17  ;;  %8252 = vmatpush3.bf16.msra.mxu1 %v8700_v41 }
  0xb9   : > { %7402 = vmatpush3.bf16.msra.mxu0 %v8693_v22  ;;  %8253 = vmatprep.subr.bf16.mxu1 %v8703_v44 }
  0xba   : > { %7403 = vmatprep.subr.bf16.mxu0 %v8695_v26 }
  0xbc   : > { %8212 = vmatmul.mubr.msk.bf16.gmra.mrb[8].mxu0 %vm511_vm0, %v477_v24  ;;  %8254 = vmatpush3.bf16.msra.mxu1 %v8703_v44  ;;  %v8710_v44 = vld [vmem:[%s11329_s6 + $0xc0] sm:$0xff]  }
  0xbd   : > { %7404 = vmatpush3.bf16.msra.mxu0 %v8696_v27  ;;  %8215 = vmatprep.mubr.msk.bf16.mxu0 %vm511_vm0, %v478_v38 }
  0xbe   : > { %7405 = vmatprep.subr.bf16.mxu0 %v8698_v37  ;;  %8255 = vmatprep.subr.bf16.mxu1 %v8706_v47 }
  0xbf   : > { %8240 = vmatmul.mubr.msk.bf16.gmra.mrb[12].mxu1 %vm511_vm0, %v680_v23 }
  0xc0   : > { %8256 = vmatpush3.bf16.msra.mxu1 %v8706_v47 }
  0xc1   : > { %7406 = vmatpush3.bf16.msra.mxu0 %v8699_v39  ;;  %8257 = vmatprep.subr.bf16.mxu1 %v8707_v48 }
  0xc2   : > { %7407 = vmatprep.subr.bf16.mxu0 %v8701_v42 }
  0xc4   : > { %8216 = vmatmul.mubr.msk.bf16.gmra.mrb[12].mxu0 %vm511_vm0, %v479_v40  ;;  %8258 = vmatpush3.bf16.msra.mxu1 %v8707_v48 }
  0xc5   : > { %7408 = vmatpush3.bf16.msra.mxu0 %v8702_v43  ;;  %7475 = vmatprep.subr.bf16.mxu1 %v8709_v50 }
  0xc6   : > { %7409 = vmatprep.subr.bf16.mxu0 %v8704_v45 }
  0xc9   : > { %7410 = vmatpush3.bf16.msra.mxu0 %v8705_v46 }
  0xca   : > { %8275 = vmatprep.subr.bf16.mxu0 %v9457_v49 }
 0x17a   : > { %v8229_v52 = vpop.f32.mrb[0].mxu1 }
 0x17b   : > { %v779_v53 = vadd.f32 %v8229_v52, %v9463_v51  ;;  %v770_v54 = vpop.f32.mrb[1].mxu1 }
 0x17c   : > { %v771_v56 = vadd.f32 %v9463_v51, %v770_v54  ;;  %v8230_v57 = vpop.f32.mrb[2].mxu1 }
 0x17d   : > { %v9467_v58 = vmax.f32 %v779_v53, 0.0  ;;  %v782_v59 = vadd.f32 %v8230_v57, %v9463_v51  ;;  %v773_v60 = vpop.f32.mrb[3].mxu1 }
 0x17e   : > { %v9470_v61 = vmax.f32 %v771_v56, 0.0  ;;  %v774_v62 = vadd.f32 %v9463_v51, %v773_v60 }
 0x17f   : > { %851 = vst [vmem:[#allocation2 + $0x18] sm:$0xff] %v9467_v58  ;;  %v9474_v63 = vmax.f32 %v782_v59, 0.0  ;;  %v9488_v9 = vpop.f32.mrb[0].mxu0 }
 0x180   : > { %849 = vst [vmem:[#allocation2 + $0x8] sm:$0xff] %v9470_v61  ;;  %v9477_v1 = vmax.f32 %v774_v62, 0.0  ;;  %v9493_v13 = vpop.f32.mrb[1].mxu0 }
 0x181   : > { %852 = vst [vmem:[#allocation2 + $0x20] sm:$0xff] %v9474_v63  ;;  %v9498_v16 = vpop.f32.mrb[2].mxu0  ;;  %v9521_v31 = vpack.c.bf16 %v9474_v63, %v9467_v58 }
 0x182   : > { %850 = vst [vmem:[#allocation2 + $0x10] sm:$0xff] %v9477_v1  ;;  %v8233_v2 = vpop.f32.mrb[4].mxu1  ;;  %v9483_v3 = vpack.c.bf16 %v9477_v1, %v9470_v61  ;;  %v9503_v18 = vpop.f32.mrb[3].mxu0 }
 0x183   : > { %v795_v4 = vadd.f32 %v8233_v2, %v9463_v51  ;;  %v786_v5 = vpop.f32.mrb[5].mxu1  ;;  %11420 = vst [vmem:[#allocation15_spill] sm:$0xff] %v9521_v31  ;;  %v8712_v2 = vld [vmem:[%s11329_s6 + $0xc8] sm:$0xff]  }
 0x184   : > { %11415 = vst [vmem:[#allocation14_spill] sm:$0xff] %v9483_v3  ;;  %v787_v7 = vadd.f32 %v9463_v51, %v786_v5  ;;  %v8234_v8 = vpop.f32.mrb[6].mxu1  ;;  %1184 = vmatprep.mubr.bf16.mxu0 %v9483_v3 }
 0x185   : > { %v9490_v10 = vmax.f32 %v795_v4, 0.0  ;;  %v798_v11 = vadd.f32 %v8234_v8, %v9463_v51  ;;  %v789_v12 = vpop.f32.mrb[7].mxu1 }
 0x186   : > { %v9495_v14 = vmax.f32 %v787_v7, 0.0  ;;  %v790_v15 = vadd.f32 %v9463_v51, %v789_v12 }
 0x187   : > { %855 = vst [vmem:[#allocation2 + $0x38] sm:$0xff] %v9490_v10  ;;  %v9501_v17 = vmax.f32 %v798_v11, 0.0  ;;  %v865_v21 = vld [vmem:[#allocation2 + $0x7] sm:$0xff]  ;;  %v9529_v35 = vpop.f32.mrb[4].mxu0 }
 0x188   : > { %853 = vst [vmem:[#allocation2 + $0x28] sm:$0xff] %v9495_v14  ;;  %v9506_v19 = vmax.f32 %v790_v15, 0.0  ;;  %v9537_v39 = vpop.f32.mrb[5].mxu0  ;;  %v868_v40 = vld [vmem:[#allocation2 + $0x1f] sm:$0xff] }
 0x189   : > { %v866_v22 = vld [vmem:[#allocation2 + $0xf] sm:$0xff]  ;;  %856 = vst [vmem:[#allocation2 + $0x40] sm:$0xff] %v9501_v17  ;;  %v9542_v43 = vpop.f32.mrb[6].mxu0  ;;  %v899_v45 = vld [vmem:[#allocation2 + $0x19] sm:$0xff] }
 0x18a   : > { %v897_v23 = vld [vmem:[#allocation2 + $0x9] sm:$0xff]  ;;  %v898_v24 = vld [vmem:[#allocation2 + $0x11] sm:$0xff]  ;;  %854 = vst [vmem:[#allocation2 + $0x30] sm:$0xff] %v9506_v19  ;;  %v8237_v25 = vpop.f32.mrb[8].mxu1  ;;  %v6232_v26 = vpack.c.bf16 %v866_v22, %v865_v21  ;;  %v9551_v50 = vpop.f32.mrb[7].mxu0  ;;  %v9565_v59 = vpack.c.bf16 %v9506_v19, %v9495_v14 }
 0x18b   : > { %v811_v28 = vadd.f32 %v8237_v25, %v9463_v51  ;;  %v802_v29 = vpop.f32.mrb[9].mxu1  ;;  %v6256_v30 = vpack.c.bf16 %v898_v24, %v897_v23  ;;  %v867_v46 = vld [vmem:[#allocation2 + $0x17] sm:$0xff] }
 0x18c   : > { %v803_v33 = vadd.f32 %v9463_v51, %v802_v29  ;;  %v8238_v34 = vpop.f32.mrb[10].mxu1  ;;  %6233 = vmatmul.mubr.msk.bf16.vlgmr.msra.gmra.mrb[16].mxu0 %vm9508_vm4, %v6232_v26  ;;  %v6235_v56 = vpack.c.bf16 %v868_v40, %v867_v46  ;;  %11421 = vst [vmem:[#allocation16_spill] sm:$0xff] %v9565_v59 }
 0x18d   : > { %v9531_v36 = vmax.f32 %v811_v28, 0.0  ;;  %v814_v37 = vadd.f32 %v8238_v34, %v9463_v51  ;;  %8259 = vmatprep.mubr.msk.bf16.mxu1 %vm9514_vm5, %v6256_v30  ;;  %v805_v38 = vpop.f32.mrb[11].mxu1  ;;  %1192 = vmatprep.mubr.bf16.mxu0 %v9521_v31 }
 0x18e   : > { %v9539_v41 = vmax.f32 %v803_v33, 0.0  ;;  %v806_v42 = vadd.f32 %v9463_v51, %v805_v38  ;;  %8276 = vmatpush3.bf16.msra.mxu0 %v9457_v49  ;;  %v8711_v49 = vld [vmem:[%s11329_s6 + $0x108] sm:$0xff]  }
 0x18f   : > { %v900_v47 = vld [vmem:[#allocation2 + $0x21] sm:$0xff]  ;;  %859 = vst [vmem:[#allocation2 + $0x58] sm:$0xff] %v9531_v36  ;;  %v9549_v48 = vmax.f32 %v814_v37, 0.0  ;;  %8277 = vmatprep.subr.bf16.mxu0 %v8713_v32  ;;  %v9574_v6 = vpop.f32.mrb[8].mxu0  ;;  %v9603_v37 = vpack.c.bf16 %v9501_v17, %v9490_v10 }
 0x190   : > { %857 = vst [vmem:[#allocation2 + $0x48] sm:$0xff] %v9539_v41  ;;  %v9554_v52 = vmax.f32 %v806_v42, 0.0  ;;  %v6259_v53 = vpack.c.bf16 %v900_v47, %v899_v45  ;;  %v903_v7 = vld [vmem:[#allocation2 + $0x39] sm:$0xff]  ;;  %v9582_v15 = vpop.f32.mrb[9].mxu0 }
 0x191   : > { %v901_v54 = vld [vmem:[#allocation2 + $0x29] sm:$0xff]  ;;  %860 = vst [vmem:[#allocation2 + $0x60] sm:$0xff] %v9549_v48  ;;  %v902_v55 = vld [vmem:[#allocation2 + $0x31] sm:$0xff]  ;;  %v9587_v23 = vpop.f32.mrb[10].mxu0  ;;  %11422 = vst [vmem:[#allocation17_spill] sm:$0xff] %v9603_v37 }
 0x192   : > { %858 = vst [vmem:[#allocation2 + $0x50] sm:$0xff] %v9554_v52  ;;  %8260 = vmatmul.mubr.msk.bf16.vlgmr.msra.gmra.mrb[16].mxu1 %vm9514_vm5, %v6259_v53  ;;  %v8241_v57 = vpop.f32.mrb[12].mxu1  ;;  %8278 = vmatpush3.bf16.msra.mxu0 %v8713_v32  ;;  %v6262_v0 = vpack.c.bf16 %v902_v55, %v901_v54  ;;  %v870_v24 = vld [vmem:[#allocation2 + $0x2f] sm:$0xff]  ;;  %v9592_v28 = vpop.f32.mrb[11].mxu0  ;;  %v869_v32 = vld [vmem:[#allocation2 + $0x27] sm:$0xff]  ;;  %v872_v42 = vld [vmem:[#allocation2 + $0x3f] sm:$0xff]  ;;  %v9614_v55 = vpack.c.bf16 %v9554_v52, %v9539_v41 }
 0x193   : > { %v827_v60 = vadd.f32 %v8241_v57, %v9463_v51  ;;  %v818_v62 = vpop.f32.mrb[13].mxu1  ;;  %7476 = vmatpush3.bf16.msra.mxu1 %v8710_v44  ;;  %v6238_v34 = vpack.c.bf16 %v870_v24, %v869_v32  ;;  %v871_v44 = vld [vmem:[#allocation2 + $0x37] sm:$0xff] }
 0x194   : > { %6236 = vmatmul.mubr.msk.bf16.gmra.mrb[20].mxu0 %vm9508_vm4, %v6235_v56  ;;  %v819_v4 = vadd.f32 %v9463_v51, %v818_v62  ;;  %v8242_v5 = vpop.f32.mrb[14].mxu1  ;;  %7477 = vmatprep.subr.bf16.mxu1 %v8711_v49  ;;  %v6241_v49 = vpack.c.bf16 %v872_v42, %v871_v44  ;;  %11423 = vst [vmem:[#allocation18_spill] sm:$0xff] %v9614_v55  ;;  %v8714_v44 = vld [vmem:[%s11329_s6 + $0x110] sm:$0xff]  }
 0x195   : > { %1200 = vmatprep.mubr.bf16.mxu0 %v9565_v59  ;;  %v9577_v8 = vmax.f32 %v827_v60, 0.0  ;;  %v830_v11 = vadd.f32 %v8242_v5, %v9463_v51  ;;  %8263 = vmatprep.mubr.msk.bf16.mxu1 %vm9514_vm5, %v6262_v0  ;;  %v821_v12 = vpop.f32.mrb[15].mxu1 }
 0x196   : > { %v9584_v21 = vmax.f32 %v819_v4, 0.0  ;;  %v822_v22 = vadd.f32 %v9463_v51, %v821_v12  ;;  %v9625_v4 = vpack.c.bf16 %v9549_v48, %v9531_v36 }
 0x197   : > { %v904_v25 = vld [vmem:[#allocation2 + $0x41] sm:$0xff]  ;;  %863 = vst [vmem:[#allocation2 + $0x78] sm:$0xff] %v9577_v8  ;;  %v9590_v26 = vmax.f32 %v830_v11, 0.0  ;;  %7478 = vmatpush3.bf16.msra.mxu1 %v8712_v2 }
 0x198   : > { %861 = vst [vmem:[#allocation2 + $0x68] sm:$0xff] %v9584_v21  ;;  %v9595_v29 = vmax.f32 %v822_v22, 0.0  ;;  %v6265_v30 = vpack.c.bf16 %v904_v25, %v903_v7  ;;  %v907_v40 = vld [vmem:[#allocation2 + $0x59] sm:$0xff]  ;;  %v873_v0 = vld [vmem:[#allocation2 + $0x47] sm:$0xff]  ;;  %11424 = vst [vmem:[#allocation19_spill] sm:$0xff] %v9625_v4  ;;  %7479 = vmatprep.subr.bf16.mxu1 %v8714_v44 }
 0x199   : > { %v905_v33 = vld [vmem:[#allocation2 + $0x49] sm:$0xff]  ;;  %864 = vst [vmem:[#allocation2 + $0x80] sm:$0xff] %v9590_v26  ;;  %v906_v51 = vld [vmem:[#allocation2 + $0x51] sm:$0xff]  ;;  %v876_v5 = vld [vmem:[#allocation2 + $0x5f] sm:$0xff] }
 0x19a   : > { %862 = vst [vmem:[#allocation2 + $0x70] sm:$0xff] %v9595_v29  ;;  %8264 = vmatmul.mubr.msk.bf16.gmra.mrb[20].mxu1 %vm9514_vm5, %v6265_v30  ;;  %v6268_v38 = vpack.c.bf16 %v906_v51, %v905_v33  ;;  %v874_v62 = vld [vmem:[#allocation2 + $0x4f] sm:$0xff]  ;;  %v875_v7 = vld [vmem:[#allocation2 + $0x57] sm:$0xff]  ;;  %v9632_v12 = vpack.c.bf16 %v9595_v29, %v9584_v21  ;;  %v9639_v30 = vpack.c.bf16 %v9590_v26, %v9577_v8 }
 0x19b   : > { %v6244_v2 = vpack.c.bf16 %v874_v62, %v873_v0  ;;  %v6247_v11 = vpack.c.bf16 %v876_v5, %v875_v7  ;;  %v8724_v62 = vld [vmem:[%s11329_s6 + $0x130] sm:$0xff]   ;;  %v8727_v5 = vld [vmem:[%s11329_s6 + $0x160] sm:$0xff]   ;;  %v8728_v7 = vld [vmem:[%s11329_s6 + $0xf8] sm:$0xff]  }
 0x19c   : > { %6239 = vmatmul.mubr.msk.bf16.gmra.mrb[24].mxu0 %vm9508_vm4, %v6238_v34  ;;  %8267 = vmatprep.mubr.msk.bf16.mxu1 %vm9514_vm5, %v6268_v38  ;;  %11425 = vst [vmem:[#allocation20_spill] sm:$0xff] %v9632_v12  ;;  %11426 = vst [vmem:[#allocation21_spill] sm:$0xff] %v9639_v30  ;;  %v9646_v34 = vpop.f32.mrb[12].mxu0  ;;  %v8725_v0 = vld [vmem:[%s11329_s6 + $0xf0] sm:$0xff]  }
 0x19d   : > { %1208 = vmatprep.mubr.bf16.mxu0 %v9603_v37  ;;  %v9648_v38 = vpop.f32.mrb[13].mxu0 }
 0x19f   : > { %v908_v45 = vld [vmem:[#allocation2 + $0x61] sm:$0xff] }
 0x1a0   : > { %v6271_v46 = vpack.c.bf16 %v908_v45, %v907_v40  ;;  %v911_v54 = vld [vmem:[#allocation2 + $0x79] sm:$0xff]  ;;  %v912_v57 = vld [vmem:[#allocation2 + $0x81] sm:$0xff]  ;;  %v9650_v40 = vpop.f32.mrb[14].mxu0  ;;  %v8715_v45 = vld [vmem:[%s11329_s6 + $0xd0] sm:$0xff]  }
 0x1a1   : > { %v909_v47 = vld [vmem:[#allocation2 + $0x69] sm:$0xff]  ;;  %v910_v53 = vld [vmem:[#allocation2 + $0x71] sm:$0xff]  ;;  %v6277_v60 = vpack.c.bf16 %v912_v57, %v911_v54  ;;  %v880_v32 = vld [vmem:[#allocation2 + $0x7f] sm:$0xff]  ;;  %v9652_v42 = vpop.f32.mrb[15].mxu0  ;;  %7480 = vmatpush3.bf16.msra.mxu1 %v8715_v45 }
 0x1a2   : > { %8268 = vmatmul.mubr.msk.bf16.gmra.mrb[24].mxu1 %vm9514_vm5, %v6271_v46  ;;  %v6274_v56 = vpack.c.bf16 %v910_v53, %v909_v47  ;;  %v877_v22 = vld [vmem:[#allocation2 + $0x67] sm:$0xff]  ;;  %v878_v24 = vld [vmem:[#allocation2 + $0x6f] sm:$0xff]  ;;  %v879_v33 = vld [vmem:[#allocation2 + $0x77] sm:$0xff] }
 0x1a3   : > { %v6250_v25 = vpack.c.bf16 %v878_v24, %v877_v22  ;;  %v6253_v51 = vpack.c.bf16 %v880_v32, %v879_v33  ;;  %v8716_v46 = vld [vmem:[%s11329_s6 + $0x118] sm:$0xff]   ;;  %v8718_v53 = vld [vmem:[%s11329_s6 + $0x150] sm:$0xff]   ;;  %v8720_v54 = vld [vmem:[%s11329_s6 + $0xe0] sm:$0xff]  }
 0x1a4   : > { %6242 = vmatmul.mubr.msk.bf16.gmra.mrb[28].mxu0 %vm9508_vm4, %v6241_v49  ;;  %8271 = vmatprep.mubr.msk.bf16.mxu1 %vm9514_vm5, %v6274_v56  ;;  %v8717_v47 = vld [vmem:[%s11329_s6 + $0xd8] sm:$0xff]   ;;  %v8719_v49 = vld [vmem:[%s11329_s6 + $0x120] sm:$0xff]   ;;  %v8721_v56 = vld [vmem:[%s11329_s6 + $0x128] sm:$0xff]  }
 0x1a5   : > { %1216 = vmatprep.mubr.bf16.mxu0 %v9614_v55  ;;  %7481 = vmatprep.subr.bf16.mxu1 %v8716_v46  ;;  %v8722_v57 = vld [vmem:[%s11329_s6 + $0xe8] sm:$0xff]   ;;  %v8730_v22 = vld [vmem:[%s11329_s6 + $0x170] sm:$0xff]   ;;  %v8731_v24 = vld [vmem:[%s11329_s6 + $0x178] sm:$0xff]  }
 0x1a6   : > { %7482 = vmatpush3.bf16.msra.mxu1 %v8717_v47  ;;  %8279 = vmatprep.subr.bf16.mxu0 %v8718_v53  ;;  %v8734_v32 = vld [vmem:[%s11329_s6 + $0x1c0] sm:$0xff]   ;;  %v9717_v47 = vld [vmem:[#allocation10] ss:$0 sm:$0xff] }
 0x1a7   : > { %8280 = vmatpush3.bf16.msra.mxu0 %v8718_v53  ;;  %7483 = vmatprep.subr.bf16.mxu1 %v8719_v49 }
 0x1aa   : > { %8272 = vmatmul.mubr.msk.bf16.gmra.mrb[28].mxu1 %vm9514_vm5, %v6277_v60  ;;  %v8723_v60 = vld [vmem:[%s11329_s6 + $0x158] sm:$0xff]  }
 0x1ab   : > { %7484 = vmatpush3.bf16.msra.mxu1 %v8720_v54  ;;  %8281 = vmatprep.subr.bf16.mxu0 %v8723_v60 }
 0x1ac   : > { %6245 = vmatmul.mubr.msk.bf16.gmra.mrb[32].mxu0 %vm9508_vm4, %v6244_v2  ;;  %7485 = vmatprep.subr.bf16.mxu1 %v8721_v56  ;;  %v8726_v2 = vld [vmem:[%s11329_s6 + $0x138] sm:$0xff]  }
 0x1ad   : > { %1224 = vmatprep.mubr.bf16.mxu0 %v9625_v4  ;;  %8282 = vmatpush3.bf16.msra.mxu0 %v8723_v60 }
 0x1ae   : > { %8283 = vmatprep.subr.bf16.mxu0 %v8727_v5 }
 0x1af   : > { %7486 = vmatpush3.bf16.msra.mxu1 %v8722_v57 }
 0x1b0   : > { %7487 = vmatprep.subr.bf16.mxu1 %v8724_v62 }
 0x1b1   : > { %8284 = vmatpush3.bf16.msra.mxu0 %v8727_v5 }
 0x1b3   : > { %7488 = vmatpush3.bf16.msra.mxu1 %v8725_v0 }
 0x1b4   : > { %6248 = vmatmul.mubr.msk.bf16.gmra.mrb[36].mxu0 %vm9508_vm4, %v6247_v11  ;;  %7489 = vmatprep.subr.bf16.mxu1 %v8726_v2  ;;  %v8729_v11 = vld [vmem:[%s11329_s6 + $0x168] sm:$0xff]  }
 0x1b5   : > { %1232 = vmatprep.mubr.bf16.mxu0 %v9632_v12  ;;  %8285 = vmatprep.subr.bf16.mxu0 %v8729_v11 }
 0x1b6   : > { %8286 = vmatpush3.bf16.msra.mxu0 %v8729_v11 }
 0x1b7   : > { %7490 = vmatpush3.bf16.msra.mxu1 %v8728_v7  ;;  %8287 = vmatprep.subr.bf16.mxu0 %v8730_v22 }
 0x1ba   : > { %8288 = vmatpush3.bf16.msra.mxu0 %v8730_v22 }
 0x1bb   : > { %8289 = vmatprep.subr.bf16.mxu0 %v8731_v24 }
 0x1bc   : > { %6251 = vmatmul.mubr.msk.bf16.gmra.mrb[40].mxu0 %vm9508_vm4, %v6250_v25  ;;  %v9711_v25 = vld [vmem:[%s11329_s6 + $0x200] sm:$0xff]  }
 0x1bd   : > { %1240 = vmatprep.mubr.bf16.mxu0 %v9639_v30  ;;  %8307 = vmatprep.subr.bf16.mxu1 %v9711_v25 }
 0x1be   : > { %8290 = vmatpush3.bf16.msra.mxu0 %v8731_v24 }
 0x1bf   : > { %7555 = vmatprep.subr.bf16.mxu0 %v8734_v32 }
 0x1c4   : > { %6254 = vmatmul.mubr.msk.bf16.gmra.mrb[44].mxu0 %vm9508_vm4, %v6253_v51 }
 0x25f   : > { %v7411_v33 = vpop.f32.mrb[16].mxu0 }
 0x260   : > { %v7412_v51 = vpop.f32.mrb[17].mxu0 }
 0x261   : > { %v7413_v44 = vadd.f32 %v7412_v51, %v7411_v33  ;;  %v7414_v45 = vpop.f32.mrb[18].mxu0  ;;  %v9721_v33 = vld [vmem:[#allocation5] ss:$0 sm:$0xff] }
 0x262   : > { %v7415_v46 = vpop.f32.mrb[19].mxu0  ;;  %v9817_v31 = vadd.f32 %v9721_v33, %v9551_v50  ;;  %v8738_v50 = vld [vmem:[%s11329_s6 + $0x188] sm:$0xff]  }
 0x263   : > { %v7416_v53 = vadd.f32 %v7415_v46, %v7414_v45  ;;  %v1187_v54 = vadd.f32 %v7413_v44, %v9717_v47 }
 0x264   : > { %11437 = vst [vmem:[#allocation32_spill] sm:$0xff] %v9817_v31 }
 0x265   : > { %v8261_v49 = vpop.f32.mrb[16].mxu1  ;;  %v1190_v0 = vadd.f32 %v7416_v53, %v9717_v47 }
 0x266   : > { %v1283_v56 = vpop.f32.mrb[17].mxu1 }
 0x267   : > { %v1284_v57 = vadd.f32 %v1283_v56, %v1187_v54  ;;  %v7417_v60 = vpop.f32.mrb[20].mxu0  ;;  %v8262_v62 = vpop.f32.mrb[18].mxu1 }
 0x268   : > { %v7418_v2 = vpop.f32.mrb[21].mxu0  ;;  %v1286_v5 = vpop.f32.mrb[19].mxu1 }
 0x269   : > { %v1346_v7 = vmax.f32 %v1284_v57, 0.0  ;;  %v7419_v11 = vadd.f32 %v7418_v2, %v7417_v60  ;;  %v1287_v22 = vadd.f32 %v1286_v5, %v1190_v0  ;;  %v7420_v24 = vpop.f32.mrb[22].mxu0  ;;  %v9729_v57 = vadd.f32 %v9721_v33, %v9493_v13 }
 0x26a   : > { %v7421_v32 = vpop.f32.mrb[23].mxu0  ;;  %v9738_v13 = vadd.f32 %v9721_v33, %v9503_v18 }
 0x26b   : > { %1362 = vst [vmem:[#allocation2 + $0x8] sm:$0xff] %v1346_v7  ;;  %v1195_v51 = vadd.f32 %v7419_v11, %v9717_v47  ;;  %v1347_v45 = vmax.f32 %v1287_v22, 0.0  ;;  %v7422_v44 = vadd.f32 %v7421_v32, %v7420_v24  ;;  %11427 = vst [vmem:[#allocation22_spill] sm:$0xff] %v9729_v57  ;;  %v9734_v32 = vmax.f32 %v9729_v57, 0.0 }
 0x26c   : > { %11429 = vst [vmem:[#allocation24_spill] sm:$0xff] %v9738_v13 }
 0x26d   : > { %v1292_v46 = vadd.f32 %v8261_v49, %v1195_v51  ;;  %1363 = vst [vmem:[#allocation2 + $0x10] sm:$0xff] %v1347_v45  ;;  %v1492_v54 = vpack.c.bf16 %v1347_v45, %v1346_v7  ;;  %v1198_v56 = vadd.f32 %v7422_v44, %v9717_v47  ;;  %v9725_v53 = vpop.f32.mrb[20].mxu1  ;;  %11428 = vst [vmem:[#allocation23_spill] sm:$0xff] %v9734_v32 }
 0x26e   : > { %v1299_v60 = vpop.f32.mrb[21].mxu1 }
 0x26f   : > { %v1348_v0 = vmax.f32 %v1292_v46, 0.0  ;;  %v1295_v2 = vadd.f32 %v8262_v62, %v1198_v56  ;;  %v7423_v5 = vpop.f32.mrb[24].mxu0  ;;  %v9731_v30 = vpop.f32.mrb[22].mxu1  ;;  %1699 = vmatprep.mubr.bf16.mxu1 %v1492_v54 }
 0x270   : > { %v7424_v11 = vpop.f32.mrb[25].mxu0  ;;  %v1302_v22 = vpop.f32.mrb[23].mxu1 }
 0x271   : > { %1364 = vst [vmem:[#allocation2 + $0x18] sm:$0xff] %v1348_v0  ;;  %v1349_v49 = vmax.f32 %v1295_v2, 0.0  ;;  %v7425_v7 = vadd.f32 %v7424_v11, %v7423_v5  ;;  %v7426_v24 = vpop.f32.mrb[26].mxu0  ;;  %v9743_v2 = vadd.f32 %v9488_v9, %v9721_v33 }
 0x272   : > { %v7427_v51 = vpop.f32.mrb[27].mxu0  ;;  %v1378_v56 = vld [vmem:[#allocation2 + $0x7] sm:$0xff] }
 0x273   : > { %1365 = vst [vmem:[#allocation2 + $0x20] sm:$0xff] %v1349_v49  ;;  %v1203_v62 = vadd.f32 %v7425_v7, %v9717_v47  ;;  %v7428_v45 = vadd.f32 %v7427_v51, %v7426_v24  ;;  %v1495_v44 = vpack.c.bf16 %v1349_v49, %v1348_v0  ;;  %11430 = vst [vmem:[#allocation25_spill] sm:$0xff] %v9743_v2  ;;  %v8733_v7 = vld [vmem:[%s11329_s6 + $0x208] sm:$0xff]   ;;  %v9755_v49 = vmax.f32 %v9738_v13, 0.0  ;;  %v8735_v13 = vld [vmem:[%s11329_s6 + $0x210] sm:$0xff]  }
 0x274   : > { %v1379_v46 = vld [vmem:[#allocation2 + $0xf] sm:$0xff]  ;;  %v9765_v12 = vmax.f32 %v9743_v2, 0.0 }
 0x275   : > { %v1410_v54 = vld [vmem:[#allocation2 + $0x9] sm:$0xff]  ;;  %v1300_v5 = vadd.f32 %v1299_v60, %v1203_v62  ;;  %v1206_v11 = vadd.f32 %v7428_v45, %v9717_v47  ;;  %v6353_v57 = vpack.c.bf16 %v1379_v46, %v1378_v56  ;;  %v9747_v18 = vpop.f32.mrb[24].mxu1  ;;  %11431 = vst [vmem:[#allocation26_spill] sm:$0xff] %v9755_v49 }
 0x276   : > { %1877 = vst [vmem:[#allocation2 + $0x8] sm:$0xff] %v9734_v32  ;;  %v9752_v0 = vpop.f32.mrb[25].mxu1  ;;  %11432 = vst [vmem:[#allocation27_spill] sm:$0xff] %v9765_v12 }
 0x277   : > { %v1350_v24 = vmax.f32 %v1300_v5, 0.0  ;;  %v1303_v9 = vadd.f32 %v1302_v22, %v1206_v11  ;;  %v7429_v51 = vpop.f32.mrb[28].mxu0  ;;  %6354 = vmatmul.mubr.msk.bf16.vlgmr.msra.gmra.mrb[32].mxu1 %vm9508_vm4, %v6353_v57  ;;  %v9759_v60 = vpop.f32.mrb[26].mxu1 }
 0x278   : > { %v1380_v62 = vld [vmem:[#allocation2 + $0x17] sm:$0xff]  ;;  %v7430_v46 = vpop.f32.mrb[29].mxu0  ;;  %1707 = vmatprep.mubr.bf16.mxu1 %v1495_v44  ;;  %v9761_v56 = vpop.f32.mrb[27].mxu1  ;;  %8308 = vmatpush3.bf16.msra.mxu1 %v9711_v25  ;;  %v9773_v25 = vadd.f32 %v9498_v16, %v9721_v33 }
 0x279   : > { %v1411_v45 = vld [vmem:[#allocation2 + $0x11] sm:$0xff]  ;;  %1366 = vst [vmem:[#allocation2 + $0x28] sm:$0xff] %v1350_v24  ;;  %v1351_v22 = vmax.f32 %v1303_v9, 0.0  ;;  %v7431_v5 = vadd.f32 %v7430_v46, %v7429_v51  ;;  %v7432_v11 = vpop.f32.mrb[30].mxu0  ;;  %8309 = vmatprep.subr.bf16.mxu1 %v8733_v7 }
 0x27a   : > { %1878 = vst [vmem:[#allocation2 + $0x10] sm:$0xff] %v9755_v49  ;;  %v6377_v57 = vpack.c.bf16 %v1411_v45, %v1410_v54  ;;  %v1381_v44 = vld [vmem:[#allocation2 + $0x1f] sm:$0xff]  ;;  %v7433_v55 = vpop.f32.mrb[31].mxu0  ;;  %11433 = vst [vmem:[#allocation28_spill] sm:$0xff] %v9773_v25  ;;  %v9781_v45 = vadd.f32 %v9721_v33, %v9537_v39 }
 0x27b   : > { %v1412_v4 = vld [vmem:[#allocation2 + $0x19] sm:$0xff]  ;;  %1367 = vst [vmem:[#allocation2 + $0x30] sm:$0xff] %v1351_v22  ;;  %v1211_v9 = vadd.f32 %v7431_v5, %v9717_v47  ;;  %v7434_v51 = vadd.f32 %v7433_v55, %v7432_v11  ;;  %v1498_v54 = vpack.c.bf16 %v1351_v22, %v1350_v24  ;;  %v6356_v2 = vpack.c.bf16 %v1381_v44, %v1380_v62 }
 0x27c   : > { %1879 = vst [vmem:[#allocation2 + $0x18] sm:$0xff] %v9765_v12  ;;  %8291 = vmatprep.mubr.msk.bf16.mxu0 %vm9514_vm5, %v6377_v57  ;;  %8310 = vmatpush3.bf16.msra.mxu1 %v8733_v7  ;;  %11434 = vst [vmem:[#allocation29_spill] sm:$0xff] %v9781_v45  ;;  %v8740_v55 = vld [vmem:[%s11329_s6 + $0x218] sm:$0xff]   ;;  %v9793_v7 = vmax.f32 %v9773_v25, 0.0  ;;  %v8745_v25 = vld [vmem:[%s11329_s6 + $0x220] sm:$0xff]  }
 0x27d   : > { %v1308_v46 = vadd.f32 %v9725_v53, %v1211_v9  ;;  %v1214_v16 = vadd.f32 %v7434_v51, %v9717_v47  ;;  %v9785_v37 = vpop.f32.mrb[28].mxu1  ;;  %8311 = vmatprep.subr.bf16.mxu1 %v8735_v13  ;;  %v8736_v9 = vld [vmem:[%s11329_s6 + $0x180] sm:$0xff]   ;;  %v9806_v51 = vmax.f32 %v9781_v45, 0.0 }
 0x27e   : > { %v9790_v5 = vpop.f32.mrb[29].mxu1  ;;  %11435 = vst [vmem:[#allocation30_spill] sm:$0xff] %v9793_v7 }
 0x27f   : > { %v1352_v24 = vmax.f32 %v1308_v46, 0.0  ;;  %v1311_v39 = vadd.f32 %v9731_v30, %v1214_v16  ;;  %v7435_v22 = vpop.f32.mrb[32].mxu0  ;;  %6357 = vmatmul.mubr.msk.bf16.gmra.mrb[36].mxu1 %vm9508_vm4, %v6356_v2  ;;  %v9798_v53 = vpop.f32.mrb[30].mxu1  ;;  %11436 = vst [vmem:[#allocation31_spill] sm:$0xff] %v9806_v51 }
 0x280   : > { %v1382_v62 = vld [vmem:[#allocation2 + $0x27] sm:$0xff]  ;;  %v7436_v57 = vpop.f32.mrb[33].mxu0  ;;  %1715 = vmatprep.mubr.bf16.mxu1 %v1498_v54  ;;  %v9800_v44 = vpop.f32.mrb[31].mxu1  ;;  %8312 = vmatpush3.bf16.msra.mxu1 %v8735_v13 }
 0x281   : > { %v1413_v11 = vld [vmem:[#allocation2 + $0x21] sm:$0xff]  ;;  %1368 = vst [vmem:[#allocation2 + $0x38] sm:$0xff] %v1352_v24  ;;  %v1353_v30 = vmax.f32 %v1311_v39, 0.0  ;;  %v7437_v2 = vadd.f32 %v7436_v57, %v7435_v22  ;;  %v7438_v46 = vpop.f32.mrb[34].mxu0  ;;  %8313 = vmatprep.subr.bf16.mxu1 %v8740_v55 }
 0x282   : > { %1880 = vst [vmem:[#allocation2 + $0x20] sm:$0xff] %v9793_v7  ;;  %v6380_v16 = vpack.c.bf16 %v1413_v11, %v1412_v4  ;;  %v8737_v54 = vld [vmem:[%s11329_s6 + $0x1c8] sm:$0xff]   ;;  %v7439_v45 = vpop.f32.mrb[35].mxu0  ;;  %v9825_v11 = vadd.f32 %v9529_v35, %v9721_v33 }
 0x283   : > { %v1383_v13 = vld [vmem:[#allocation2 + $0x2f] sm:$0xff]  ;;  %1369 = vst [vmem:[#allocation2 + $0x40] sm:$0xff] %v1353_v30  ;;  %v1219_v4 = vadd.f32 %v7437_v2, %v9717_v47  ;;  %v7440_v39 = vadd.f32 %v7439_v45, %v7438_v46  ;;  %v1501_v22 = vpack.c.bf16 %v1353_v30, %v1352_v24  ;;  %v9839_v24 = vmax.f32 %v9817_v31, 0.0 }
 0x284   : > { %v1414_v59 = vld [vmem:[#allocation2 + $0x29] sm:$0xff]  ;;  %8292 = vmatmul.mubr.msk.bf16.vlgmr.msra.gmra.mrb[48].mxu0 %vm9514_vm5, %v6380_v16  ;;  %8314 = vmatpush3.bf16.msra.mxu1 %v8740_v55  ;;  %v6359_v2 = vpack.c.bf16 %v1383_v13, %v1382_v62 }
 0x285   : > { %1881 = vst [vmem:[#allocation2 + $0x28] sm:$0xff] %v9806_v51  ;;  %7556 = vmatpush3.bf16.msra.mxu0 %v8736_v9  ;;  %v1316_v57 = vadd.f32 %v9752_v0, %v1219_v4  ;;  %v1222_v3 = vadd.f32 %v7440_v39, %v9717_v47  ;;  %v8739_v45 = vld [vmem:[%s11329_s6 + $0x1d0] sm:$0xff]   ;;  %8315 = vmatprep.subr.bf16.mxu1 %v8745_v25  ;;  %v8749_v35 = vld [vmem:[%s11329_s6 + $0x228] sm:$0xff]   ;;  %11438 = vst [vmem:[#allocation33_spill] sm:$0xff] %v9839_v24 }
 0x286   : > { %7557 = vmatprep.subr.bf16.mxu0 %v8737_v54  ;;  %v8741_v16 = vld [vmem:[%s11329_s6 + $0x190] sm:$0xff]   ;;  %v9848_v54 = vmax.f32 %v9825_v11, 0.0  ;;  %v8742_v39 = vld [vmem:[%s11329_s6 + $0x1d8] sm:$0xff]  }
 0x287   : > { %v1354_v9 = vmax.f32 %v1316_v57, 0.0  ;;  %v1319_v55 = vadd.f32 %v9761_v56, %v1222_v3  ;;  %v7441_v0 = vpop.f32.mrb[36].mxu0  ;;  %6360 = vmatmul.mubr.msk.bf16.gmra.mrb[40].mxu1 %vm9508_vm4, %v6359_v2  ;;  %v8752_v2 = vld [vmem:[%s11329_s6 + $0x230] sm:$0xff]  }
 0x288   : > { %v1384_v62 = vld [vmem:[#allocation2 + $0x37] sm:$0xff]  ;;  %v7442_v46 = vpop.f32.mrb[37].mxu0  ;;  %1723 = vmatprep.mubr.bf16.mxu1 %v1501_v22  ;;  %11439 = vst [vmem:[#allocation34_spill] sm:$0xff] %v9848_v54  ;;  %8316 = vmatpush3.bf16.msra.mxu1 %v8745_v25 }
 0x289   : > { %v1415_v30 = vld [vmem:[#allocation2 + $0x31] sm:$0xff]  ;;  %7558 = vmatpush3.bf16.msra.mxu0 %v8738_v50  ;;  %1370 = vst [vmem:[#allocation2 + $0x48] sm:$0xff] %v1354_v9  ;;  %v1355_v3 = vmax.f32 %v1319_v55, 0.0  ;;  %v7443_v56 = vadd.f32 %v7442_v46, %v7441_v0  ;;  %v7444_v13 = vpop.f32.mrb[38].mxu0  ;;  %8317 = vmatprep.subr.bf16.mxu1 %v8749_v35  ;;  %v9859_v55 = vadd.f32 %v9542_v43, %v9721_v33 }
 0x28a   : > { %1882 = vst [vmem:[#allocation2 + $0x30] sm:$0xff] %v9839_v24  ;;  %v6383_v4 = vpack.c.bf16 %v1415_v30, %v1414_v59  ;;  %7559 = vmatprep.subr.bf16.mxu0 %v8739_v45  ;;  %v1385_v22 = vld [vmem:[#allocation2 + $0x3f] sm:$0xff]  ;;  %v7445_v57 = vpop.f32.mrb[39].mxu0  ;;  %v9867_v0 = vadd.f32 %v9721_v33, %v9582_v15 }
 0x28b   : > { %v1416_v50 = vld [vmem:[#allocation2 + $0x39] sm:$0xff]  ;;  %11440 = vst [vmem:[#allocation35_spill] sm:$0xff] %v9859_v55  ;;  %1371 = vst [vmem:[#allocation2 + $0x50] sm:$0xff] %v1355_v3  ;;  %v1227_v59 = vadd.f32 %v7443_v56, %v9717_v47  ;;  %v7446_v45 = vadd.f32 %v7445_v57, %v7444_v13  ;;  %v1504_v25 = vpack.c.bf16 %v1355_v3, %v1354_v9  ;;  %v9881_v9 = vmax.f32 %v9859_v55, 0.0 }
 0x28c   : > { %1883 = vst [vmem:[#allocation2 + $0x38] sm:$0xff] %v9848_v54  ;;  %8295 = vmatprep.mubr.msk.bf16.mxu0 %vm9514_vm5, %v6383_v4  ;;  %11441 = vst [vmem:[#allocation36_spill] sm:$0xff] %v9867_v0  ;;  %v8743_v43 = vld [vmem:[%s11329_s6 + $0x198] sm:$0xff]   ;;  %v6362_v31 = vpack.c.bf16 %v1385_v22, %v1384_v62  ;;  %v8744_v56 = vld [vmem:[%s11329_s6 + $0x1e0] sm:$0xff]   ;;  %8318 = vmatpush3.bf16.msra.mxu1 %v8749_v35 }
 0x28d   : > { %7560 = vmatpush3.bf16.msra.mxu0 %v8741_v16  ;;  %v1324_v30 = vadd.f32 %v9747_v18, %v1227_v59  ;;  %v1230_v46 = vadd.f32 %v7446_v45, %v9717_v47  ;;  %8319 = vmatprep.subr.bf16.mxu1 %v8752_v2  ;;  %v8755_v15 = vld [vmem:[%s11329_s6 + $0x238] sm:$0xff]   ;;  %11442 = vst [vmem:[#allocation37_spill] sm:$0xff] %v9881_v9  ;;  %v8746_v35 = vld [vmem:[%s11329_s6 + $0x1a0] sm:$0xff]  }
 0x28e   : > { %7561 = vmatprep.subr.bf16.mxu0 %v8742_v39  ;;  %v9890_v39 = vmax.f32 %v9867_v0, 0.0 }
 0x28f   : > { %v1356_v16 = vmax.f32 %v1324_v30, 0.0  ;;  %v1327_v18 = vadd.f32 %v9759_v60, %v1230_v46  ;;  %v7447_v3 = vpop.f32.mrb[40].mxu0  ;;  %6363 = vmatmul.mubr.msk.bf16.gmra.mrb[44].mxu1 %vm9508_vm4, %v6362_v31  ;;  %v8747_v31 = vld [vmem:[%s11329_s6 + $0x1e8] sm:$0xff]   ;;  %v9898_v30 = vadd.f32 %v9721_v33, %v9592_v28 }
 0x290   : > { %v1386_v62 = vld [vmem:[#allocation2 + $0x47] sm:$0xff]  ;;  %v7448_v4 = vpop.f32.mrb[41].mxu0  ;;  %1731 = vmatprep.mubr.bf16.mxu1 %v1504_v25  ;;  %11443 = vst [vmem:[#allocation38_spill] sm:$0xff] %v9890_v39  ;;  %8320 = vmatpush3.bf16.msra.mxu1 %v8752_v2  ;;  %v9906_v2 = vadd.f32 %v9574_v6, %v9721_v33 }
 0x291   : > { %v1417_v13 = vld [vmem:[#allocation2 + $0x41] sm:$0xff]  ;;  %7562 = vmatpush3.bf16.msra.mxu0 %v8743_v43  ;;  %1372 = vst [vmem:[#allocation2 + $0x58] sm:$0xff] %v1356_v16  ;;  %v1357_v60 = vmax.f32 %v1327_v18, 0.0  ;;  %v7449_v22 = vadd.f32 %v7448_v4, %v7447_v3  ;;  %v7450_v57 = vpop.f32.mrb[42].mxu0  ;;  %8321 = vmatprep.subr.bf16.mxu1 %v8755_v15  ;;  %11444 = vst [vmem:[#allocation39_spill] sm:$0xff] %v9898_v30  ;;  %v8750_v4 = vld [vmem:[%s11329_s6 + $0x1f0] sm:$0xff]  }
 0x292   : > { %1884 = vst [vmem:[#allocation2 + $0x40] sm:$0xff] %v9881_v9  ;;  %v6386_v59 = vpack.c.bf16 %v1417_v13, %v1416_v50  ;;  %7563 = vmatprep.subr.bf16.mxu0 %v8744_v56  ;;  %v1387_v45 = vld [vmem:[#allocation2 + $0x4f] sm:$0xff]  ;;  %v7451_v43 = vpop.f32.mrb[43].mxu0  ;;  %11445 = vst [vmem:[#allocation40_spill] sm:$0xff] %v9906_v2 }
 0x293   : > { %v1418_v25 = vld [vmem:[#allocation2 + $0x49] sm:$0xff]  ;;  %1373 = vst [vmem:[#allocation2 + $0x60] sm:$0xff] %v1357_v60  ;;  %v1235_v46 = vadd.f32 %v7449_v22, %v9717_v47  ;;  %v7452_v50 = vadd.f32 %v7451_v43, %v7450_v57  ;;  %v1507_v56 = vpack.c.bf16 %v1357_v60, %v1356_v16  ;;  %v6365_v13 = vpack.c.bf16 %v1387_v45, %v1386_v62  ;;  %v8753_v43 = vld [vmem:[%s11329_s6 + $0x1f8] sm:$0xff]  }
 0x294   : > { %1885 = vst [vmem:[#allocation2 + $0x48] sm:$0xff] %v9890_v39  ;;  %8296 = vmatmul.mubr.msk.bf16.gmra.mrb[52].mxu0 %vm9514_vm5, %v6386_v59  ;;  %v8748_v28 = vld [vmem:[%s11329_s6 + $0x1a8] sm:$0xff]   ;;  %8322 = vmatpush3.bf16.msra.mxu1 %v8755_v15  ;;  %v9917_v16 = vmax.f32 %v9898_v30, 0.0  ;;  %v8751_v62 = vld [vmem:[%s11329_s6 + $0x1b0] sm:$0xff]   ;;  %v9926_v15 = vmax.f32 %v9906_v2, 0.0 }
 0x295   : > { %7564 = vmatpush3.bf16.msra.mxu0 %v8746_v35  ;;  %v1332_v18 = vadd.f32 %v9790_v5, %v1235_v46  ;;  %v1238_v3 = vadd.f32 %v7452_v50, %v9717_v47 }
 0x296   : > { %7565 = vmatprep.subr.bf16.mxu0 %v8747_v31  ;;  %11446 = vst [vmem:[#allocation41_spill] sm:$0xff] %v9917_v16  ;;  %11447 = vst [vmem:[#allocation42_spill] sm:$0xff] %v9926_v15 }
 0x297   : > { %v1358_v6 = vmax.f32 %v1332_v18, 0.0  ;;  %v1335_v35 = vadd.f32 %v9800_v44, %v1238_v3  ;;  %v7453_v60 = vpop.f32.mrb[44].mxu0  ;;  %6366 = vmatmul.mubr.msk.bf16.gmra.mrb[48].mxu1 %vm9508_vm4, %v6365_v13  ;;  %v8754_v13 = vld [vmem:[%s11329_s6 + $0x1b8] sm:$0xff]  }
 0x298   : > { %v1388_v5 = vld [vmem:[#allocation2 + $0x57] sm:$0xff]  ;;  %v7454_v57 = vpop.f32.mrb[45].mxu0  ;;  %1739 = vmatprep.mubr.bf16.mxu1 %v1507_v56 }
 0x299   : > { %v1419_v22 = vld [vmem:[#allocation2 + $0x51] sm:$0xff]  ;;  %7566 = vmatpush3.bf16.msra.mxu0 %v8748_v28  ;;  %1374 = vst [vmem:[#allocation2 + $0x68] sm:$0xff] %v1358_v6  ;;  %v1359_v44 = vmax.f32 %v1335_v35, 0.0  ;;  %v7455_v59 = vadd.f32 %v7454_v57, %v7453_v60  ;;  %v7456_v31 = vpop.f32.mrb[46].mxu0  ;;  %v9934_v28 = vadd.f32 %v9587_v23, %v9721_v33 }
 0x29a   : > { %1886 = vst [vmem:[#allocation2 + $0x50] sm:$0xff] %v9917_v16  ;;  %v6389_v45 = vpack.c.bf16 %v1419_v22, %v1418_v25  ;;  %7567 = vmatprep.subr.bf16.mxu0 %v8750_v4  ;;  %v1389_v46 = vld [vmem:[#allocation2 + $0x5f] sm:$0xff]  ;;  %v7457_v56 = vpop.f32.mrb[47].mxu0  ;;  %v9945_v4 = vadd.f32 %v9721_v33, %v9648_v38 }
 0x29b   : > { %v1420_v50 = vld [vmem:[#allocation2 + $0x59] sm:$0xff]  ;;  %11448 = vst [vmem:[#allocation43_spill] sm:$0xff] %v9934_v28  ;;  %1375 = vst [vmem:[#allocation2 + $0x70] sm:$0xff] %v1359_v44  ;;  %v1243_v18 = vadd.f32 %v7455_v59, %v9717_v47  ;;  %v7458_v3 = vadd.f32 %v7457_v56, %v7456_v31  ;;  %v1510_v25 = vpack.c.bf16 %v1359_v44, %v1358_v6  ;;  %v9950_v22 = vmax.f32 %v9934_v28, 0.0 }
 0x29c   : > { %1887 = vst [vmem:[#allocation2 + $0x58] sm:$0xff] %v9926_v15  ;;  %8299 = vmatprep.mubr.msk.bf16.mxu0 %vm9514_vm5, %v6389_v45  ;;  %11449 = vst [vmem:[#allocation44_spill] sm:$0xff] %v9945_v4  ;;  %v6368_v60 = vpack.c.bf16 %v1389_v46, %v1388_v5  ;;  %v9956_v38 = vmax.f32 %v9945_v4, 0.0  ;;  %v9968_v45 = vadd.f32 %v9646_v34, %v9721_v33 }
 0x29d   : > { %7568 = vmatpush3.bf16.msra.mxu0 %v8751_v62  ;;  %v1340_v23 = vadd.f32 %v9785_v37, %v1243_v18  ;;  %v1246_v35 = vadd.f32 %v7458_v3, %v9717_v47  ;;  %11450 = vst [vmem:[#allocation45_spill] sm:$0xff] %v9950_v22 }
 0x29e   : > { %7569 = vmatprep.subr.bf16.mxu0 %v8753_v43  ;;  %11451 = vst [vmem:[#allocation46_spill] sm:$0xff] %v9956_v38  ;;  %11453 = vst [vmem:[#allocation48_spill] sm:$0xff] %v9968_v45  ;;  %v9972_v43 = vadd.f32 %v9650_v40, %v9721_v33  ;;  %v9980_v18 = vmax.f32 %v9968_v45, 0.0 }
 0x29f   : > { %v1360_v57 = vmax.f32 %v1340_v23, 0.0  ;;  %v1343_v6 = vadd.f32 %v9798_v53, %v1246_v35  ;;  %6369 = vmatmul.mubr.msk.bf16.gmra.mrb[52].mxu1 %vm9508_vm4, %v6368_v60  ;;  %v9961_v53 = vadd.f32 %v9721_v33, %v9652_v42  ;;  %v1926_v23 = vld [vmem:[#allocation2 + $0x11] sm:$0xff]  ;;  %v9992_v35 = vpack.c.bf16 %v9755_v49, %v9734_v32 }
 0x2a0   : > { %v1390_v62 = vld [vmem:[#allocation2 + $0x67] sm:$0xff]  ;;  %1747 = vmatprep.mubr.bf16.mxu1 %v1510_v25  ;;  %11454 = vst [vmem:[#allocation49_spill] sm:$0xff] %v9972_v43  ;;  %11456 = vst [vmem:[#allocation51_spill] sm:$0xff] %v9980_v18  ;;  %v9983_v34 = vmax.f32 %v9972_v43, 0.0 }
 0x2a1   : > { %v1421_v44 = vld [vmem:[#allocation2 + $0x61] sm:$0xff]  ;;  %7570 = vmatpush3.bf16.msra.mxu0 %v8754_v13  ;;  %1376 = vst [vmem:[#allocation2 + $0x78] sm:$0xff] %v1360_v57  ;;  %v1361_v37 = vmax.f32 %v1343_v6, 0.0  ;;  %11452 = vst [vmem:[#allocation47_spill] sm:$0xff] %v9961_v53 }
 0x2a2   : > { %1888 = vst [vmem:[#allocation2 + $0x60] sm:$0xff] %v9950_v22  ;;  %v6392_v47 = vpack.c.bf16 %v1421_v44, %v1420_v50  ;;  %v1391_v5 = vld [vmem:[#allocation2 + $0x6f] sm:$0xff]  ;;  %v9975_v50 = vmax.f32 %v9961_v53, 0.0  ;;  %11457 = vst [vmem:[#allocation52_spill] sm:$0xff] %v9983_v34  ;;  %v1893_v44 = vld [vmem:[#allocation2 + $0x7] sm:$0xff] }
 0x2a3   : > { %v1422_v59 = vld [vmem:[#allocation2 + $0x69] sm:$0xff]  ;;  %1377 = vst [vmem:[#allocation2 + $0x80] sm:$0xff] %v1361_v37  ;;  %v1513_v31 = vpack.c.bf16 %v1361_v37, %v1360_v57  ;;  %v6371_v46 = vpack.c.bf16 %v1391_v5, %v1390_v62  ;;  %11458 = vst [vmem:[#allocation53_spill] sm:$0xff] %v9992_v35  ;;  %v1928_v37 = vld [vmem:[#allocation2 + $0x21] sm:$0xff] }
 0x2a4   : > { %1889 = vst [vmem:[#allocation2 + $0x68] sm:$0xff] %v9956_v38  ;;  %8300 = vmatmul.mubr.msk.bf16.gmra.mrb[56].mxu0 %vm9514_vm5, %v6392_v47  ;;  %11455 = vst [vmem:[#allocation50_spill] sm:$0xff] %v9975_v50  ;;  %v1925_v57 = vld [vmem:[#allocation2 + $0x9] sm:$0xff]  ;;  %v1930_v5 = vld [vmem:[#allocation2 + $0x31] sm:$0xff] }
 0x2a5   : > { %v6498_v6 = vpack.c.bf16 %v1926_v23, %v1925_v57  ;;  %v1894_v62 = vld [vmem:[#allocation2 + $0xf] sm:$0xff]  ;;  %v10014_v23 = vpack.c.bf16 %v9839_v24, %v9806_v51 }
 0x2a6   : > { %v6474_v47 = vpack.c.bf16 %v1894_v62, %v1893_v44  ;;  %v1898_v44 = vld [vmem:[#allocation2 + $0x2f] sm:$0xff] }
 0x2a7   : > { %6372 = vmatmul.mubr.msk.bf16.gmra.mrb[56].mxu1 %vm9508_vm4, %v6371_v46  ;;  %11460 = vst [vmem:[#allocation55_spill] sm:$0xff] %v10014_v23 }
 0x2a8   : > { %v1392_v42 = vld [vmem:[#allocation2 + $0x77] sm:$0xff]  ;;  %1755 = vmatprep.mubr.bf16.mxu1 %v1513_v31 }
 0x2a9   : > { %v1423_v56 = vld [vmem:[#allocation2 + $0x71] sm:$0xff]  ;;  %v1927_v31 = vld [vmem:[#allocation2 + $0x19] sm:$0xff] }
 0x2aa   : > { %1890 = vst [vmem:[#allocation2 + $0x70] sm:$0xff] %v9975_v50  ;;  %v6395_v40 = vpack.c.bf16 %v1423_v56, %v1422_v59  ;;  %v1393_v33 = vld [vmem:[#allocation2 + $0x7f] sm:$0xff]  ;;  %v10003_v59 = vpack.c.bf16 %v9793_v7, %v9765_v12  ;;  %v6501_v46 = vpack.c.bf16 %v1928_v37, %v1927_v31  ;;  %v1897_v37 = vld [vmem:[#allocation2 + $0x27] sm:$0xff] }
 0x2ab   : > { %v1424_v3 = vld [vmem:[#allocation2 + $0x79] sm:$0xff]  ;;  %v1425_v25 = vld [vmem:[#allocation2 + $0x81] sm:$0xff]  ;;  %v6374_v60 = vpack.c.bf16 %v1393_v33, %v1392_v42  ;;  %v1929_v42 = vld [vmem:[#allocation2 + $0x29] sm:$0xff] }
 0x2ac   : > { %1891 = vst [vmem:[#allocation2 + $0x78] sm:$0xff] %v9980_v18  ;;  %8303 = vmatprep.mubr.msk.bf16.mxu0 %vm9514_vm5, %v6395_v40  ;;  %v6398_v13 = vpack.c.bf16 %v1425_v25, %v1424_v3  ;;  %1892 = vst [vmem:[#allocation2 + $0x80] sm:$0xff] %v9983_v34  ;;  %v6504_v56 = vpack.c.bf16 %v1930_v5, %v1929_v42  ;;  %v1896_v40 = vld [vmem:[#allocation2 + $0x1f] sm:$0xff]  ;;  %v1895_v33 = vld [vmem:[#allocation2 + $0x17] sm:$0xff]  ;;  %v6480_v5 = vpack.c.bf16 %v1898_v44, %v1897_v37 }
 0x2ad   : > { %11459 = vst [vmem:[#allocation54_spill] sm:$0xff] %v10003_v59  ;;  %v1932_v3 = vld [vmem:[#allocation2 + $0x41] sm:$0xff]  ;;  %v6477_v25 = vpack.c.bf16 %v1896_v40, %v1895_v33  ;;  %v1935_v42 = vld [vmem:[#allocation2 + $0x59] sm:$0xff]  ;;  %v1902_v44 = vld [vmem:[#allocation2 + $0x4f] sm:$0xff] }
 0x2ae   : > { %8304 = vmatmul.mubr.msk.bf16.gmra.mrb[60].mxu0 %vm9514_vm5, %v6398_v13  ;;  %v1934_v13 = vld [vmem:[#allocation2 + $0x51] sm:$0xff]  ;;  %v1901_v37 = vld [vmem:[#allocation2 + $0x47] sm:$0xff] }
 0x2af   : > { %2214 = vmatprep.mubr.bf16.mxu0 %v9992_v35  ;;  %6375 = vmatmul.mubr.msk.bf16.gmra.mrb[60].mxu1 %vm9508_vm4, %v6374_v60  ;;  %v1931_v60 = vld [vmem:[#allocation2 + $0x39] sm:$0xff] }
 0x2b0   : > { %8323 = vmatprep.mubr.msk.bf16.mxu1 %vm9514_vm5, %v6498_v6  ;;  %v6507_v57 = vpack.c.bf16 %v1932_v3, %v1931_v60  ;;  %v1933_v6 = vld [vmem:[#allocation2 + $0x49] sm:$0xff]  ;;  %v1900_v3 = vld [vmem:[#allocation2 + $0x3f] sm:$0xff] }
 0x2b1   : > { %v6510_v62 = vpack.c.bf16 %v1934_v13, %v1933_v6  ;;  %v1937_v40 = vld [vmem:[#allocation2 + $0x69] sm:$0xff]  ;;  %v10036_v6 = vpack.c.bf16 %v9917_v16, %v9890_v39 }
 0x2b3   : > { %v1938_v31 = vld [vmem:[#allocation2 + $0x71] sm:$0xff]  ;;  %v1939_v13 = vld [vmem:[#allocation2 + $0x79] sm:$0xff]  ;;  %v1940_v60 = vld [vmem:[#allocation2 + $0x81] sm:$0xff]  ;;  %11462 = vst [vmem:[#allocation57_spill] sm:$0xff] %v10036_v6 }
 0x2b4   : > { %v6516_v33 = vpack.c.bf16 %v1938_v31, %v1937_v40  ;;  %v1904_v31 = vld [vmem:[#allocation2 + $0x5f] sm:$0xff]  ;;  %v10052_v40 = vpack.c.bf16 %v9975_v50, %v9956_v38 }
 0x2b6   : > { %6475 = vmatmul.mubr.msk.bf16.vlgmr.msra.gmra.mrb[64].mxu0 %vm9508_vm4, %v6474_v47  ;;  %v1936_v47 = vld [vmem:[#allocation2 + $0x61] sm:$0xff]  ;;  %11464 = vst [vmem:[#allocation59_spill] sm:$0xff] %v10052_v40 }
 0x2b7   : > { %2222 = vmatprep.mubr.bf16.mxu0 %v10003_v59  ;;  %8324 = vmatmul.mubr.msk.bf16.vlgmr.msra.gmra.mrb[64].mxu1 %vm9514_vm5, %v6501_v46  ;;  %v10025_v46 = vpack.c.bf16 %v9881_v9, %v9848_v54 }
 0x2b8   : > { %8327 = vmatprep.mubr.msk.bf16.mxu1 %vm9514_vm5, %v6504_v56  ;;  %v6513_v56 = vpack.c.bf16 %v1936_v47, %v1935_v42  ;;  %v6486_v47 = vpack.c.bf16 %v1902_v44, %v1901_v37  ;;  %v1903_v42 = vld [vmem:[#allocation2 + $0x57] sm:$0xff]  ;;  %v8757_v44 = vld [vmem:[%s11329_s6 + $0x280] sm:$0xff]  }
 0x2b9   : > { %11461 = vst [vmem:[#allocation56_spill] sm:$0xff] %v10025_v46  ;;  %v8758_v37 = vld [vmem:[%s11329_s6 + $0x240] sm:$0xff]   ;;  %7635 = vmatprep.subr.bf16.mxu1 %v8757_v44  ;;  %v8769_v44 = vld [vmem:[%s11329_s6 + $0x2a8] sm:$0xff]  }
 0x2ba   : > { %7636 = vmatpush3.bf16.msra.mxu1 %v8758_v37  ;;  %v8770_v37 = vld [vmem:[%s11329_s6 + $0x268] sm:$0xff]  }
 0x2be   : > { %6478 = vmatmul.mubr.msk.bf16.gmra.mrb[68].mxu0 %vm9508_vm4, %v6477_v25  ;;  %v1899_v25 = vld [vmem:[#allocation2 + $0x37] sm:$0xff] }
 0x2bf   : > { %2230 = vmatprep.mubr.bf16.mxu0 %v10014_v23  ;;  %8328 = vmatmul.mubr.msk.bf16.gmra.mrb[68].mxu1 %vm9514_vm5, %v6507_v57  ;;  %v6483_v57 = vpack.c.bf16 %v1900_v3, %v1899_v25  ;;  %v1905_v3 = vld [vmem:[#allocation2 + $0x67] sm:$0xff] }
 0x2c0   : > { %8331 = vmatprep.mubr.msk.bf16.mxu1 %vm9514_vm5, %v6510_v62  ;;  %v6519_v62 = vpack.c.bf16 %v1940_v60, %v1939_v13  ;;  %v10059_v13 = vpack.c.bf16 %v9983_v34, %v9980_v18  ;;  %v1907_v60 = vld [vmem:[#allocation2 + $0x77] sm:$0xff] }
 0x2c2   : > { %11465 = vst [vmem:[#allocation60_spill] sm:$0xff] %v10059_v13 }
 0x2c6   : > { %6481 = vmatmul.mubr.msk.bf16.gmra.mrb[72].mxu0 %vm9508_vm4, %v6480_v5  ;;  %v10045_v5 = vpack.c.bf16 %v9950_v22, %v9926_v15 }
 0x2c7   : > { %2238 = vmatprep.mubr.bf16.mxu0 %v10025_v46  ;;  %8332 = vmatmul.mubr.msk.bf16.gmra.mrb[72].mxu1 %vm9514_vm5, %v6513_v56  ;;  %v6489_v56 = vpack.c.bf16 %v1904_v31, %v1903_v42  ;;  %v8759_v31 = vld [vmem:[%s11329_s6 + $0x288] sm:$0xff]  }
 0x2c8   : > { %8335 = vmatprep.mubr.msk.bf16.mxu1 %vm9514_vm5, %v6516_v33  ;;  %11463 = vst [vmem:[#allocation58_spill] sm:$0xff] %v10045_v5  ;;  %v1906_v33 = vld [vmem:[#allocation2 + $0x6f] sm:$0xff]  ;;  %7637 = vmatprep.subr.bf16.mxu1 %v8759_v31 }
 0x2c9   : > { %v6492_v25 = vpack.c.bf16 %v1906_v33, %v1905_v3  ;;  %v8760_v42 = vld [vmem:[%s11329_s6 + $0x248] sm:$0xff]   ;;  %v8763_v33 = vld [vmem:[%s11329_s6 + $0x250] sm:$0xff]  }
 0x2ca   : > { %7638 = vmatpush3.bf16.msra.mxu1 %v8760_v42  ;;  %v8761_v3 = vld [vmem:[%s11329_s6 + $0x2c8] sm:$0xff]   ;;  %v8772_v31 = vld [vmem:[%s11329_s6 + $0x2b0] sm:$0xff]  }
 0x2cb   : > { %v8773_v42 = vld [vmem:[%s11329_s6 + $0x270] sm:$0xff]  }
 0x2ce   : > { %6484 = vmatmul.mubr.msk.bf16.gmra.mrb[76].mxu0 %vm9508_vm4, %v6483_v57  ;;  %v1908_v57 = vld [vmem:[#allocation2 + $0x7f] sm:$0xff] }
 0x2cf   : > { %2246 = vmatprep.mubr.bf16.mxu0 %v10036_v6  ;;  %8336 = vmatmul.mubr.msk.bf16.gmra.mrb[76].mxu1 %vm9514_vm5, %v6519_v62  ;;  %v6495_v62 = vpack.c.bf16 %v1908_v57, %v1907_v60  ;;  %v8765_v60 = vld [vmem:[%s11329_s6 + $0x258] sm:$0xff]   ;;  %v8767_v57 = vld [vmem:[%s11329_s6 + $0x2a0] sm:$0xff]  }
 0x2d6   : > { %6487 = vmatmul.mubr.msk.bf16.gmra.mrb[80].mxu0 %vm9508_vm4, %v6486_v47  ;;  %v8756_v47 = vld [vmem:[%s11329_s6 + $0x2c0] sm:$0xff]  }
 0x2d7   : > { %2254 = vmatprep.mubr.bf16.mxu0 %v10045_v5  ;;  %8339 = vmatprep.subr.bf16.mxu0 %v8756_v47 }
 0x2d8   : > { %8340 = vmatpush3.bf16.msra.mxu0 %v8756_v47  ;;  %v8766_v47 = vld [vmem:[%s11329_s6 + $0x2d0] sm:$0xff]  }
 0x2d9   : > { %8341 = vmatprep.subr.bf16.mxu0 %v8761_v3 }
 0x2dc   : > { %8342 = vmatpush3.bf16.msra.mxu0 %v8761_v3  ;;  %v8775_v3 = vld [vmem:[%s11329_s6 + $0x278] sm:$0xff]  }
 0x2dd   : > { %8343 = vmatprep.subr.bf16.mxu0 %v8766_v47 }
 0x2de   : > { %6490 = vmatmul.mubr.msk.bf16.gmra.mrb[84].mxu0 %vm9508_vm4, %v6489_v56  ;;  %v8762_v56 = vld [vmem:[%s11329_s6 + $0x290] sm:$0xff]  }
 0x2df   : > { %2262 = vmatprep.mubr.bf16.mxu0 %v10052_v40  ;;  %7639 = vmatprep.subr.bf16.mxu1 %v8762_v56  ;;  %v8771_v56 = vld [vmem:[%s11329_s6 + $0x2d8] sm:$0xff]  }
 0x2e0   : > { %7640 = vmatpush3.bf16.msra.mxu1 %v8763_v33  ;;  %8344 = vmatpush3.bf16.msra.mxu0 %v8766_v47  ;;  %v8774_v33 = vld [vmem:[%s11329_s6 + $0x2b8] sm:$0xff]  }
 0x2e1   : > { %8345 = vmatprep.subr.bf16.mxu0 %v8771_v56 }
 0x2e4   : > { %8346 = vmatpush3.bf16.msra.mxu0 %v8771_v56 }
 0x2e6   : > { %6493 = vmatmul.mubr.msk.bf16.gmra.mrb[88].mxu0 %vm9508_vm4, %v6492_v25  ;;  %v8764_v25 = vld [vmem:[%s11329_s6 + $0x298] sm:$0xff]  }
 0x2e7   : > { %2270 = vmatprep.mubr.bf16.mxu0 %v10059_v13  ;;  %7641 = vmatprep.subr.bf16.mxu1 %v8764_v25  ;;  %v8776_v25 = vld [vmem:[%s11329_s6 + $0x2e0] sm:$0xff]  }
 0x2e8   : > { %7642 = vmatpush3.bf16.msra.mxu1 %v8765_v60  ;;  %8347 = vmatprep.subr.bf16.mxu0 %v8776_v25  ;;  %v8777_v60 = vld [vmem:[%s11329_s6 + $0x2e8] sm:$0xff]  }
 0x2e9   : > { %7643 = vmatprep.subr.bf16.mxu1 %v8767_v57  ;;  %8348 = vmatpush3.bf16.msra.mxu0 %v8776_v25  ;;  %v8778_v57 = vld [vmem:[%s11329_s6 + $0x2f0] sm:$0xff]  }
 0x2ea   : > { %8349 = vmatprep.subr.bf16.mxu0 %v8777_v60 }
 0x2ed   : > { %8350 = vmatpush3.bf16.msra.mxu0 %v8777_v60 }
 0x2ee   : > { %6496 = vmatmul.mubr.msk.bf16.gmra.mrb[92].mxu0 %vm9508_vm4, %v6495_v62  ;;  %v8768_v62 = vld [vmem:[%s11329_s6 + $0x260] sm:$0xff]   ;;  %8351 = vmatprep.subr.bf16.mxu0 %v8778_v57 }
 0x2ef   : > { %7644 = vmatpush3.bf16.msra.mxu1 %v8768_v62  ;;  %v8779_v62 = vld [vmem:[%s11329_s6 + $0x2f8] sm:$0xff]  }
 0x2f0   : > { %7645 = vmatprep.subr.bf16.mxu1 %v8769_v44  ;;  %v10141_v44 = vld [vmem:[%s11329_s6 + $0x380] sm:$0xff]  }
 0x2f1   : > { %8352 = vmatpush3.bf16.msra.mxu0 %v8778_v57 }
 0x2f2   : > { %8353 = vmatprep.subr.bf16.mxu0 %v8779_v62 }
 0x2f3   : > { %7646 = vmatpush3.bf16.msra.mxu1 %v8770_v37  ;;  %v8783_v37 = vld [vmem:[%s11329_s6 + $0x340] sm:$0xff]  }
 0x2f4   : > { %7647 = vmatprep.subr.bf16.mxu1 %v8772_v31 }
 0x2f5   : > { %8354 = vmatpush3.bf16.msra.mxu0 %v8779_v62 }
 0x2f6   : > { %7715 = vmatprep.subr.bf16.mxu0 %v8783_v37 }
 0x2f7   : > { %7648 = vmatpush3.bf16.msra.mxu1 %v8773_v42 }
 0x2f8   : > { %7649 = vmatprep.subr.bf16.mxu1 %v8774_v33 }
 0x2fb   : > { %7650 = vmatpush3.bf16.msra.mxu1 %v8775_v3 }
 0x2fc   : > { %8371 = vmatprep.subr.bf16.mxu1 %v10141_v44 }
 0x34a   : > { %v7491_v47 = vpop.f32.mrb[32].mxu1 }
 0x34b   : > { %v7492_v31 = vpop.f32.mrb[33].mxu1 }
 0x34c   : > { %v10147_v42 = vadd.f32 %v7492_v31, %v7491_v47  ;;  %v7494_v56 = vpop.f32.mrb[34].mxu1 }
 0x34d   : > { %v7495_v33 = vpop.f32.mrb[35].mxu1 }
 0x34e   : > { %v10149_v3 = vadd.f32 %v7495_v33, %v7494_v56 }
 0x352   : > { %v7497_v25 = vpop.f32.mrb[36].mxu1 }
 0x353   : > { %v7498_v60 = vpop.f32.mrb[37].mxu1 }
 0x354   : > { %v10151_v57 = vadd.f32 %v7498_v60, %v7497_v25  ;;  %v7500_v62 = vpop.f32.mrb[38].mxu1 }
 0x355   : > { %v7501_v13 = vpop.f32.mrb[39].mxu1 }
 0x356   : > { %v10153_v40 = vadd.f32 %v7501_v13, %v7500_v62 }
 0x35a   : > { %v7503_v5 = vpop.f32.mrb[40].mxu1 }
 0x35b   : > { %v7504_v6 = vpop.f32.mrb[41].mxu1 }
 0x35c   : > { %v10155_v46 = vadd.f32 %v7504_v6, %v7503_v5  ;;  %v7506_v37 = vpop.f32.mrb[42].mxu1 }
 0x35d   : > { %v7507_v23 = vpop.f32.mrb[43].mxu1 }
 0x35e   : > { %v10157_v47 = vadd.f32 %v7507_v23, %v7506_v37 }
 0x362   : > { %v7509_v31 = vpop.f32.mrb[44].mxu1 }
 0x363   : > { %v7510_v59 = vpop.f32.mrb[45].mxu1 }
 0x364   : > { %v10159_v56 = vadd.f32 %v7510_v59, %v7509_v31  ;;  %v7512_v33 = vpop.f32.mrb[46].mxu1 }
 0x365   : > { %v7513_v35 = vpop.f32.mrb[47].mxu1 }
 0x366   : > { %v10161_v25 = vadd.f32 %v7513_v35, %v7512_v33 }
 0x36a   : > { %v7515_v60 = vpop.f32.mrb[48].mxu1 }
 0x36b   : > { %v7516_v34 = vpop.f32.mrb[49].mxu1 }
 0x36c   : > { %v10163_v13 = vadd.f32 %v7516_v34, %v7515_v60  ;;  %v7518_v62 = vpop.f32.mrb[50].mxu1 }
 0x36d   : > { %v7519_v18 = vpop.f32.mrb[51].mxu1 }
 0x36e   : > { %v10165_v6 = vadd.f32 %v7519_v18, %v7518_v62 }
 0x372   : > { %v7521_v5 = vpop.f32.mrb[52].mxu1 }
 0x373   : > { %v7522_v50 = vpop.f32.mrb[53].mxu1 }
 0x374   : > { %v10167_v23 = vadd.f32 %v7522_v50, %v7521_v5  ;;  %v7524_v37 = vpop.f32.mrb[54].mxu1 }
 0x375   : > { %v7525_v38 = vpop.f32.mrb[55].mxu1 }
 0x376   : > { %v10169_v59 = vadd.f32 %v7525_v38, %v7524_v37  ;;  %v10179_v38 = vld [vmem:[#allocation10 + $0x2] ss:$0 sm:$0xff] }
 0x37a   : > { %v7527_v31 = vpop.f32.mrb[56].mxu1 }
 0x37b   : > { %v7528_v22 = vpop.f32.mrb[57].mxu1 }
 0x37c   : > { %v10171_v35 = vadd.f32 %v7528_v22, %v7527_v31  ;;  %v7530_v33 = vpop.f32.mrb[58].mxu1 }
 0x37d   : > { %v7531_v15 = vpop.f32.mrb[59].mxu1 }
 0x37e   : > { %v10173_v34 = vadd.f32 %v7531_v15, %v7530_v33 }
 0x382   : > { %v7533_v60 = vpop.f32.mrb[60].mxu1 }
 0x383   : > { %v7534_v16 = vpop.f32.mrb[61].mxu1 }
 0x384   : > { %v10175_v18 = vadd.f32 %v7534_v16, %v7533_v60  ;;  %v7536_v62 = vpop.f32.mrb[62].mxu1 }
 0x385   : > { %v7537_v39 = vpop.f32.mrb[63].mxu1 }
 0x386   : > { %v10177_v50 = vadd.f32 %v7537_v39, %v7536_v62 }
 0x389   : > { %v7571_v5 = vpop.f32.mrb[64].mxu0 }
 0x38a   : > { %v7572_v9 = vpop.f32.mrb[65].mxu0  ;;  %v8325_v22 = vpop.f32.mrb[64].mxu1 }
 0x38b   : > { %v7573_v37 = vadd.f32 %v7572_v9, %v7571_v5  ;;  %v7574_v54 = vpop.f32.mrb[66].mxu0  ;;  %v2313_v24 = vpop.f32.mrb[65].mxu1 }
 0x38c   : > { %v7575_v31 = vpop.f32.mrb[67].mxu0  ;;  %v8326_v33 = vpop.f32.mrb[66].mxu1 }
 0x38d   : > { %v7576_v51 = vadd.f32 %v7575_v31, %v7574_v54  ;;  %v2217_v15 = vadd.f32 %v7573_v37, %v10179_v38  ;;  %v2316_v7 = vpop.f32.mrb[67].mxu1 }
 0x38f   : > { %v2314_v16 = vadd.f32 %v2313_v24, %v2217_v15  ;;  %v2220_v60 = vadd.f32 %v7576_v51, %v10179_v38 }
 0x391   : > { %v2376_v12 = vmax.f32 %v2314_v16, 0.0  ;;  %v2317_v39 = vadd.f32 %v2316_v7, %v2220_v60  ;;  %v7577_v62 = vpop.f32.mrb[68].mxu0 }
 0x392   : > { %v7578_v49 = vpop.f32.mrb[69].mxu0  ;;  %v10183_v5 = vpop.f32.mrb[68].mxu1 }
 0x393   : > { %2392 = vst [vmem:[#allocation2 + $0x8] sm:$0xff] %v2376_v12  ;;  %v2377_v32 = vmax.f32 %v2317_v39, 0.0  ;;  %v7579_v43 = vadd.f32 %v7578_v49, %v7577_v62  ;;  %v7580_v9 = vpop.f32.mrb[70].mxu0  ;;  %v2329_v53 = vpop.f32.mrb[69].mxu1 }
 0x394   : > { %v7581_v45 = vpop.f32.mrb[71].mxu0  ;;  %v10186_v24 = vpop.f32.mrb[70].mxu1 }
 0x395   : > { %v2522_v54 = vpack.c.bf16 %v2377_v32, %v2376_v12  ;;  %2393 = vst [vmem:[#allocation2 + $0x10] sm:$0xff] %v2377_v32  ;;  %v2225_v37 = vadd.f32 %v7579_v43, %v10179_v38  ;;  %v7582_v31 = vadd.f32 %v7581_v45, %v7580_v9  ;;  %v2332_v51 = vpop.f32.mrb[71].mxu1 }
 0x397   : > { %v2322_v15 = vadd.f32 %v8325_v22, %v2225_v37  ;;  %v2228_v7 = vadd.f32 %v7582_v31, %v10179_v38  ;;  %2729 = vmatprep.mubr.bf16.mxu1 %v2522_v54 }
 0x399   : > { %v2378_v16 = vmax.f32 %v2322_v15, 0.0  ;;  %v2325_v60 = vadd.f32 %v8326_v33, %v2228_v7  ;;  %v7583_v49 = vpop.f32.mrb[72].mxu0  ;;  %v8781_v15 = vld [vmem:[%s11329_s6 + $0x388] sm:$0xff]  }
 0x39a   : > { %v7584_v39 = vpop.f32.mrb[73].mxu0  ;;  %v10189_v12 = vpop.f32.mrb[72].mxu1  ;;  %v2408_v45 = vld [vmem:[#allocation2 + $0x7] sm:$0xff] }
 0x39b   : > { %2394 = vst [vmem:[#allocation2 + $0x18] sm:$0xff] %v2378_v16  ;;  %v2379_v62 = vmax.f32 %v2325_v60, 0.0  ;;  %v7585_v4 = vadd.f32 %v7584_v39, %v7583_v49  ;;  %v7586_v30 = vpop.f32.mrb[74].mxu0  ;;  %v10191_v43 = vpop.f32.mrb[73].mxu1 }
 0x39c   : > { %v7587_v32 = vpop.f32.mrb[75].mxu0  ;;  %v2409_v9 = vld [vmem:[#allocation2 + $0xf] sm:$0xff]  ;;  %v10194_v37 = vpop.f32.mrb[74].mxu1 }
 0x39d   : > { %v2440_v28 = vld [vmem:[#allocation2 + $0x9] sm:$0xff]  ;;  %2395 = vst [vmem:[#allocation2 + $0x20] sm:$0xff] %v2379_v62  ;;  %v2233_v22 = vadd.f32 %v7585_v4, %v10179_v38  ;;  %v7588_v54 = vadd.f32 %v7587_v32, %v7586_v30  ;;  %v6595_v33 = vpack.c.bf16 %v2409_v9, %v2408_v45  ;;  %v2525_v31 = vpack.c.bf16 %v2379_v62, %v2378_v16  ;;  %v10200_v7 = vpop.f32.mrb[75].mxu1 }
 0x39e   : > { %2907 = vst [vmem:[#allocation2 + $0x8] sm:$0xff] %v9470_v61  ;;  %v8782_v45 = vld [vmem:[%s11329_s6 + $0x390] sm:$0xff]  }
 0x39f   : > { %v2330_v60 = vadd.f32 %v2329_v53, %v2233_v22  ;;  %v2236_v49 = vadd.f32 %v7588_v54, %v10179_v38  ;;  %6596 = vmatmul.mubr.msk.bf16.vlgmr.msra.gmra.mrb[80].mxu1 %vm9508_vm4, %v6595_v33 }
 0x3a0   : > { %2737 = vmatprep.mubr.bf16.mxu1 %v2525_v31  ;;  %8372 = vmatpush3.bf16.msra.mxu1 %v10141_v44 }
 0x3a1   : > { %v2380_v30 = vmax.f32 %v2330_v60, 0.0  ;;  %v2333_v4 = vadd.f32 %v2332_v51, %v2236_v49  ;;  %v7589_v16 = vpop.f32.mrb[76].mxu0  ;;  %8373 = vmatprep.subr.bf16.mxu1 %v8781_v15 }
 0x3a2   : > { %v7590_v39 = vpop.f32.mrb[77].mxu0  ;;  %v2441_v62 = vld [vmem:[#allocation2 + $0x11] sm:$0xff]  ;;  %v10209_v54 = vpop.f32.mrb[76].mxu1 }
 0x3a3   : > { %v2410_v32 = vld [vmem:[#allocation2 + $0x17] sm:$0xff]  ;;  %2396 = vst [vmem:[#allocation2 + $0x28] sm:$0xff] %v2380_v30  ;;  %v2381_v53 = vmax.f32 %v2333_v4, 0.0  ;;  %v7591_v9 = vadd.f32 %v7590_v39, %v7589_v16  ;;  %v7592_v22 = vpop.f32.mrb[78].mxu0  ;;  %v6619_v33 = vpack.c.bf16 %v2441_v62, %v2440_v28  ;;  %v10212_v51 = vpop.f32.mrb[77].mxu1 }
 0x3a4   : > { %2908 = vst [vmem:[#allocation2 + $0x10] sm:$0xff] %v9477_v1  ;;  %v7593_v44 = vpop.f32.mrb[79].mxu0  ;;  %v2411_v31 = vld [vmem:[#allocation2 + $0x1f] sm:$0xff]  ;;  %8374 = vmatpush3.bf16.msra.mxu1 %v8781_v15  ;;  %v10215_v2 = vpop.f32.mrb[78].mxu1 }
 0x3a5   : > { %v2442_v60 = vld [vmem:[#allocation2 + $0x19] sm:$0xff]  ;;  %2397 = vst [vmem:[#allocation2 + $0x30] sm:$0xff] %v2381_v53  ;;  %v2241_v49 = vadd.f32 %v7591_v9, %v10179_v38  ;;  %v7594_v0 = vadd.f32 %v7593_v44, %v7592_v22  ;;  %8355 = vmatprep.mubr.msk.bf16.mxu0 %vm9514_vm5, %v6619_v33  ;;  %v6598_v4 = vpack.c.bf16 %v2411_v31, %v2410_v32  ;;  %v10223_v39 = vpop.f32.mrb[79].mxu1 }
 0x3a6   : > { %v2528_v16 = vpack.c.bf16 %v2381_v53, %v2380_v30  ;;  %2909 = vst [vmem:[#allocation2 + $0x18] sm:$0xff] %v9467_v58  ;;  %v8786_v28 = vld [vmem:[%s11329_s6 + $0x398] sm:$0xff]   ;;  %8375 = vmatprep.subr.bf16.mxu1 %v8782_v45  ;;  %v8784_v9 = vld [vmem:[%s11329_s6 + $0x300] sm:$0xff]  }
 0x3a7   : > { %v2338_v15 = vadd.f32 %v10183_v5, %v2241_v49  ;;  %v2244_v62 = vadd.f32 %v7594_v0, %v10179_v38  ;;  %6599 = vmatmul.mubr.msk.bf16.gmra.mrb[84].mxu1 %vm9508_vm4, %v6598_v4  ;;  %v8791_v0 = vld [vmem:[%s11329_s6 + $0x3a0] sm:$0xff]  }
 0x3a8   : > { %2745 = vmatprep.mubr.bf16.mxu1 %v2528_v16  ;;  %8376 = vmatpush3.bf16.msra.mxu1 %v8782_v45 }
 0x3a9   : > { %v2382_v32 = vmax.f32 %v2338_v15, 0.0  ;;  %v2341_v30 = vadd.f32 %v10186_v24, %v2244_v62  ;;  %v7595_v53 = vpop.f32.mrb[80].mxu0  ;;  %8377 = vmatprep.subr.bf16.mxu1 %v8786_v28  ;;  %v8785_v24 = vld [vmem:[%s11329_s6 + $0x348] sm:$0xff]  }
 0x3aa   : > { %v7596_v22 = vpop.f32.mrb[81].mxu0  ;;  %v2443_v33 = vld [vmem:[#allocation2 + $0x21] sm:$0xff] }
 0x3ab   : > { %v2412_v44 = vld [vmem:[#allocation2 + $0x27] sm:$0xff]  ;;  %2398 = vst [vmem:[#allocation2 + $0x38] sm:$0xff] %v2382_v32  ;;  %v2383_v5 = vmax.f32 %v2341_v30, 0.0  ;;  %v7597_v31 = vadd.f32 %v7596_v22, %v7595_v53  ;;  %v7598_v45 = vpop.f32.mrb[82].mxu0  ;;  %v6622_v49 = vpack.c.bf16 %v2443_v33, %v2442_v60 }
 0x3ac   : > { %2910 = vst [vmem:[#allocation2 + $0x20] sm:$0xff] %v9474_v63  ;;  %v7599_v4 = vpop.f32.mrb[83].mxu0  ;;  %v2413_v16 = vld [vmem:[#allocation2 + $0x2f] sm:$0xff]  ;;  %8378 = vmatpush3.bf16.msra.mxu1 %v8786_v28 }
 0x3ad   : > { %v2444_v15 = vld [vmem:[#allocation2 + $0x29] sm:$0xff]  ;;  %2399 = vst [vmem:[#allocation2 + $0x40] sm:$0xff] %v2383_v5  ;;  %v2249_v62 = vadd.f32 %v7597_v31, %v10179_v38  ;;  %v7600_v55 = vadd.f32 %v7599_v4, %v7598_v45  ;;  %8356 = vmatmul.mubr.msk.bf16.vlgmr.msra.gmra.mrb[48].mxu0 %vm9514_vm5, %v6622_v49  ;;  %v6601_v30 = vpack.c.bf16 %v2413_v16, %v2412_v44 }
 0x3ae   : > { %v2531_v53 = vpack.c.bf16 %v2383_v5, %v2382_v32  ;;  %2911 = vst [vmem:[#allocation2 + $0x28] sm:$0xff] %v9495_v14  ;;  %v8796_v60 = vld [vmem:[%s11329_s6 + $0x3a8] sm:$0xff]   ;;  %7716 = vmatpush3.bf16.msra.mxu0 %v8784_v9  ;;  %8379 = vmatprep.subr.bf16.mxu1 %v8791_v0  ;;  %v8788_v32 = vld [vmem:[%s11329_s6 + $0x350] sm:$0xff]  }
 0x3af   : > { %v8787_v28 = vld [vmem:[%s11329_s6 + $0x308] sm:$0xff]   ;;  %v2346_v22 = vadd.f32 %v10191_v43, %v2249_v62  ;;  %v2252_v33 = vadd.f32 %v7600_v55, %v10179_v38  ;;  %6602 = vmatmul.mubr.msk.bf16.gmra.mrb[88].mxu1 %vm9508_vm4, %v6601_v30  ;;  %7717 = vmatprep.subr.bf16.mxu0 %v8785_v24  ;;  %v8789_v43 = vld [vmem:[%s11329_s6 + $0x310] sm:$0xff]  }
 0x3b0   : > { %2753 = vmatprep.mubr.bf16.mxu1 %v2531_v53  ;;  %8380 = vmatpush3.bf16.msra.mxu1 %v8791_v0  ;;  %v8800_v49 = vld [vmem:[%s11329_s6 + $0x3b0] sm:$0xff]  }
 0x3b1   : > { %v2384_v9 = vmax.f32 %v2346_v22, 0.0  ;;  %v2349_v44 = vadd.f32 %v10200_v7, %v2252_v33  ;;  %v7601_v5 = vpop.f32.mrb[84].mxu0  ;;  %8381 = vmatprep.subr.bf16.mxu1 %v8796_v60  ;;  %v8790_v7 = vld [vmem:[%s11329_s6 + $0x358] sm:$0xff]  }
 0x3b2   : > { %v7602_v55 = vpop.f32.mrb[85].mxu0  ;;  %v2445_v31 = vld [vmem:[#allocation2 + $0x31] sm:$0xff]  ;;  %7718 = vmatpush3.bf16.msra.mxu0 %v8787_v28 }
 0x3b3   : > { %v2414_v45 = vld [vmem:[#allocation2 + $0x37] sm:$0xff]  ;;  %2400 = vst [vmem:[#allocation2 + $0x48] sm:$0xff] %v2384_v9  ;;  %v2385_v24 = vmax.f32 %v2349_v44, 0.0  ;;  %v7603_v0 = vadd.f32 %v7602_v55, %v7601_v5  ;;  %v7604_v4 = vpop.f32.mrb[86].mxu0  ;;  %v6625_v16 = vpack.c.bf16 %v2445_v31, %v2444_v15  ;;  %7719 = vmatprep.subr.bf16.mxu0 %v8788_v32 }
 0x3b4   : > { %2912 = vst [vmem:[#allocation2 + $0x30] sm:$0xff] %v9506_v19  ;;  %v7605_v62 = vpop.f32.mrb[87].mxu0  ;;  %v2415_v30 = vld [vmem:[#allocation2 + $0x3f] sm:$0xff]  ;;  %8382 = vmatpush3.bf16.msra.mxu1 %v8796_v60 }
 0x3b5   : > { %v2446_v53 = vld [vmem:[#allocation2 + $0x39] sm:$0xff]  ;;  %2401 = vst [vmem:[#allocation2 + $0x50] sm:$0xff] %v2385_v24  ;;  %v2257_v28 = vadd.f32 %v7603_v0, %v10179_v38  ;;  %v7606_v22 = vadd.f32 %v7605_v62, %v7604_v4  ;;  %8359 = vmatprep.mubr.msk.bf16.mxu0 %vm9514_vm5, %v6625_v16  ;;  %v6604_v33 = vpack.c.bf16 %v2415_v30, %v2414_v45 }
 0x3b6   : > { %v2534_v15 = vpack.c.bf16 %v2385_v24, %v2384_v9  ;;  %2913 = vst [vmem:[#allocation2 + $0x38] sm:$0xff] %v9490_v10  ;;  %v8803_v32 = vld [vmem:[%s11329_s6 + $0x3b8] sm:$0xff]   ;;  %7720 = vmatpush3.bf16.msra.mxu0 %v8789_v43  ;;  %8383 = vmatprep.subr.bf16.mxu1 %v8800_v49  ;;  %v8793_v9 = vld [vmem:[%s11329_s6 + $0x360] sm:$0xff]  }
 0x3b7   : > { %v8792_v60 = vld [vmem:[%s11329_s6 + $0x318] sm:$0xff]   ;;  %v2354_v44 = vadd.f32 %v10189_v12, %v2257_v28  ;;  %v2260_v5 = vadd.f32 %v7606_v22, %v10179_v38  ;;  %6605 = vmatmul.mubr.msk.bf16.gmra.mrb[92].mxu1 %vm9508_vm4, %v6604_v33  ;;  %7721 = vmatprep.subr.bf16.mxu0 %v8790_v7  ;;  %v8794_v0 = vld [vmem:[%s11329_s6 + $0x320] sm:$0xff]  }
 0x3b8   : > { %2761 = vmatprep.mubr.bf16.mxu1 %v2534_v15  ;;  %8384 = vmatpush3.bf16.msra.mxu1 %v8800_v49 }
 0x3b9   : > { %v2386_v43 = vmax.f32 %v2354_v44, 0.0  ;;  %v2357_v55 = vadd.f32 %v10194_v37, %v2260_v5  ;;  %v7607_v31 = vpop.f32.mrb[88].mxu0  ;;  %8385 = vmatprep.subr.bf16.mxu1 %v8803_v32  ;;  %v8795_v37 = vld [vmem:[%s11329_s6 + $0x368] sm:$0xff]   ;;  %v8798_v5 = vld [vmem:[%s11329_s6 + $0x370] sm:$0xff]  }
 0x3ba   : > { %v7608_v45 = vpop.f32.mrb[89].mxu0  ;;  %v2447_v24 = vld [vmem:[#allocation2 + $0x41] sm:$0xff]  ;;  %7722 = vmatpush3.bf16.msra.mxu0 %v8792_v60 }
 0x3bb   : > { %v2416_v12 = vld [vmem:[#allocation2 + $0x47] sm:$0xff]  ;;  %2402 = vst [vmem:[#allocation2 + $0x58] sm:$0xff] %v2386_v43  ;;  %v2387_v4 = vmax.f32 %v2357_v55, 0.0  ;;  %v7609_v16 = vadd.f32 %v7608_v45, %v7607_v31  ;;  %v7610_v7 = vpop.f32.mrb[90].mxu0  ;;  %v6628_v62 = vpack.c.bf16 %v2447_v24, %v2446_v53  ;;  %7723 = vmatprep.subr.bf16.mxu0 %v8793_v9 }
 0x3bc   : > { %2914 = vst [vmem:[#allocation2 + $0x40] sm:$0xff] %v9501_v17  ;;  %v7611_v49 = vpop.f32.mrb[91].mxu0  ;;  %v2417_v30 = vld [vmem:[#allocation2 + $0x4f] sm:$0xff]  ;;  %8386 = vmatpush3.bf16.msra.mxu1 %v8803_v32 }
 0x3bd   : > { %v2448_v28 = vld [vmem:[#allocation2 + $0x49] sm:$0xff]  ;;  %2403 = vst [vmem:[#allocation2 + $0x60] sm:$0xff] %v2387_v4  ;;  %v2265_v22 = vadd.f32 %v7609_v16, %v10179_v38  ;;  %v7612_v33 = vadd.f32 %v7611_v49, %v7610_v7  ;;  %8360 = vmatmul.mubr.msk.bf16.gmra.mrb[52].mxu0 %vm9514_vm5, %v6628_v62  ;;  %v6607_v15 = vpack.c.bf16 %v2417_v30, %v2416_v12 }
 0x3be   : > { %v2537_v53 = vpack.c.bf16 %v2387_v4, %v2386_v43  ;;  %2915 = vst [vmem:[#allocation2 + $0x48] sm:$0xff] %v9539_v41  ;;  %7724 = vmatpush3.bf16.msra.mxu0 %v8794_v0  ;;  %v8797_v60 = vld [vmem:[%s11329_s6 + $0x328] sm:$0xff]  }
 0x3bf   : > { %v2362_v44 = vadd.f32 %v10212_v51, %v2265_v22  ;;  %v2268_v32 = vadd.f32 %v7612_v33, %v10179_v38  ;;  %6608 = vmatmul.mubr.msk.bf16.gmra.mrb[96].mxu1 %vm9508_vm4, %v6607_v15  ;;  %7725 = vmatprep.subr.bf16.mxu0 %v8795_v37  ;;  %v8799_v51 = vld [vmem:[%s11329_s6 + $0x330] sm:$0xff]  }
 0x3c0   : > { %2769 = vmatprep.mubr.bf16.mxu1 %v2537_v53 }
 0x3c1   : > { %v2388_v9 = vmax.f32 %v2362_v44, 0.0  ;;  %v2365_v43 = vadd.f32 %v10223_v39, %v2268_v32  ;;  %v7613_v55 = vpop.f32.mrb[92].mxu0  ;;  %v8801_v39 = vld [vmem:[%s11329_s6 + $0x378] sm:$0xff]  }
 0x3c2   : > { %v7614_v31 = vpop.f32.mrb[93].mxu0  ;;  %v2449_v45 = vld [vmem:[#allocation2 + $0x51] sm:$0xff]  ;;  %7726 = vmatpush3.bf16.msra.mxu0 %v8797_v60 }
 0x3c3   : > { %v2418_v24 = vld [vmem:[#allocation2 + $0x57] sm:$0xff]  ;;  %2404 = vst [vmem:[#allocation2 + $0x68] sm:$0xff] %v2388_v9  ;;  %v2389_v12 = vmax.f32 %v2365_v43, 0.0  ;;  %v7615_v0 = vadd.f32 %v7614_v31, %v7613_v55  ;;  %v7616_v4 = vpop.f32.mrb[94].mxu0  ;;  %v6631_v16 = vpack.c.bf16 %v2449_v45, %v2448_v28  ;;  %7727 = vmatprep.subr.bf16.mxu0 %v8798_v5 }
 0x3c4   : > { %2916 = vst [vmem:[#allocation2 + $0x50] sm:$0xff] %v9554_v52  ;;  %v7617_v7 = vpop.f32.mrb[95].mxu0  ;;  %v2419_v62 = vld [vmem:[#allocation2 + $0x5f] sm:$0xff] }
 0x3c5   : > { %v2450_v37 = vld [vmem:[#allocation2 + $0x59] sm:$0xff]  ;;  %2405 = vst [vmem:[#allocation2 + $0x70] sm:$0xff] %v2389_v12  ;;  %v2273_v49 = vadd.f32 %v7615_v0, %v10179_v38  ;;  %v7618_v30 = vadd.f32 %v7617_v7, %v7616_v4  ;;  %8363 = vmatprep.mubr.msk.bf16.mxu0 %vm9514_vm5, %v6631_v16  ;;  %v6610_v22 = vpack.c.bf16 %v2419_v62, %v2418_v24  ;;  %v2955_v7 = vld [vmem:[#allocation2 + $0x9] sm:$0xff] }
 0x3c6   : > { %v2540_v33 = vpack.c.bf16 %v2389_v12, %v2388_v9  ;;  %2917 = vst [vmem:[#allocation2 + $0x58] sm:$0xff] %v9531_v36  ;;  %7728 = vmatpush3.bf16.msra.mxu0 %v8799_v51  ;;  %v8802_v28 = vld [vmem:[%s11329_s6 + $0x338] sm:$0xff]  }
 0x3c7   : > { %v2370_v15 = vadd.f32 %v10209_v54, %v2273_v49  ;;  %v2276_v53 = vadd.f32 %v7618_v30, %v10179_v38  ;;  %6611 = vmatmul.mubr.msk.bf16.gmra.mrb[100].mxu1 %vm9508_vm4, %v6610_v22  ;;  %7729 = vmatprep.subr.bf16.mxu0 %v8801_v39  ;;  %v2956_v51 = vld [vmem:[#allocation2 + $0x11] sm:$0xff]  ;;  %v2958_v30 = vld [vmem:[#allocation2 + $0x21] sm:$0xff] }
 0x3c8   : > { %2777 = vmatprep.mubr.bf16.mxu1 %v2540_v33  ;;  %v6740_v62 = vpack.c.bf16 %v2956_v51, %v2955_v7  ;;  %v2924_v49 = vld [vmem:[#allocation2 + $0xf] sm:$0xff]  ;;  %v2923_v33 = vld [vmem:[#allocation2 + $0x7] sm:$0xff] }
 0x3c9   : > { %v2390_v60 = vmax.f32 %v2370_v15, 0.0  ;;  %v2373_v44 = vadd.f32 %v10215_v2, %v2276_v53  ;;  %v2960_v22 = vld [vmem:[#allocation2 + $0x31] sm:$0xff]  ;;  %v6716_v15 = vpack.c.bf16 %v2924_v49, %v2923_v33 }
 0x3ca   : > { %v2451_v32 = vld [vmem:[#allocation2 + $0x61] sm:$0xff]  ;;  %7730 = vmatpush3.bf16.msra.mxu0 %v8802_v28  ;;  %v2957_v28 = vld [vmem:[#allocation2 + $0x19] sm:$0xff]  ;;  %v2928_v51 = vld [vmem:[#allocation2 + $0x2f] sm:$0xff] }
 0x3cb   : > { %v2420_v5 = vld [vmem:[#allocation2 + $0x67] sm:$0xff]  ;;  %2406 = vst [vmem:[#allocation2 + $0x78] sm:$0xff] %v2390_v60  ;;  %v2391_v9 = vmax.f32 %v2373_v44, 0.0  ;;  %v6634_v43 = vpack.c.bf16 %v2451_v32, %v2450_v37  ;;  %v11466_v37 = vld [vmem:[#allocation14_spill] sm:$0xff]  ;;  %v6743_v53 = vpack.c.bf16 %v2958_v30, %v2957_v28  ;;  %v11469_v30 = vld [vmem:[#allocation17_spill] sm:$0xff] }
 0x3cc   : > { %2918 = vst [vmem:[#allocation2 + $0x60] sm:$0xff] %v9549_v48  ;;  %v2421_v55 = vld [vmem:[#allocation2 + $0x6f] sm:$0xff]  ;;  %v11467_v32 = vld [vmem:[#allocation15_spill] sm:$0xff] }
 0x3cd   : > { %v2452_v54 = vld [vmem:[#allocation2 + $0x69] sm:$0xff]  ;;  %2407 = vst [vmem:[#allocation2 + $0x80] sm:$0xff] %v2391_v9  ;;  %8364 = vmatmul.mubr.msk.bf16.gmra.mrb[56].mxu0 %vm9514_vm5, %v6634_v43  ;;  %v6613_v38 = vpack.c.bf16 %v2421_v55, %v2420_v5  ;;  %v2543_v31 = vpack.c.bf16 %v2391_v9, %v2390_v60  ;;  %v2926_v5 = vld [vmem:[#allocation2 + $0x1f] sm:$0xff]  ;;  %v2964_v43 = vld [vmem:[#allocation2 + $0x51] sm:$0xff] }
 0x3ce   : > { %2919 = vst [vmem:[#allocation2 + $0x68] sm:$0xff] %v9584_v21  ;;  %v2959_v60 = vld [vmem:[#allocation2 + $0x29] sm:$0xff]  ;;  %v2962_v9 = vld [vmem:[#allocation2 + $0x41] sm:$0xff]  ;;  %v2925_v55 = vld [vmem:[#allocation2 + $0x17] sm:$0xff] }
 0x3cf   : > { %6614 = vmatmul.mubr.msk.bf16.gmra.mrb[104].mxu1 %vm9508_vm4, %v6613_v38  ;;  %v6746_v44 = vpack.c.bf16 %v2960_v22, %v2959_v60  ;;  %v6719_v38 = vpack.c.bf16 %v2926_v5, %v2925_v55  ;;  %v2930_v22 = vld [vmem:[#allocation2 + $0x3f] sm:$0xff]  ;;  %v2932_v5 = vld [vmem:[#allocation2 + $0x4f] sm:$0xff] }
 0x3d0   : > { %2785 = vmatprep.mubr.bf16.mxu1 %v2543_v31  ;;  %v11471_v55 = vld [vmem:[#allocation19_spill] sm:$0xff] }
 0x3d2   : > { %v2453_v2 = vld [vmem:[#allocation2 + $0x71] sm:$0xff] }
 0x3d3   : > { %v2422_v45 = vld [vmem:[#allocation2 + $0x77] sm:$0xff]  ;;  %v6637_v24 = vpack.c.bf16 %v2453_v2, %v2452_v54  ;;  %v2963_v2 = vld [vmem:[#allocation2 + $0x49] sm:$0xff] }
 0x3d4   : > { %2920 = vst [vmem:[#allocation2 + $0x70] sm:$0xff] %v9595_v29  ;;  %v2423_v12 = vld [vmem:[#allocation2 + $0x7f] sm:$0xff] }
 0x3d5   : > { %v2454_v0 = vld [vmem:[#allocation2 + $0x79] sm:$0xff]  ;;  %v2455_v4 = vld [vmem:[#allocation2 + $0x81] sm:$0xff]  ;;  %8367 = vmatprep.mubr.msk.bf16.mxu0 %vm9514_vm5, %v6637_v24  ;;  %v6616_v16 = vpack.c.bf16 %v2423_v12, %v2422_v45  ;;  %v6752_v45 = vpack.c.bf16 %v2964_v43, %v2963_v2  ;;  %v11468_v24 = vld [vmem:[#allocation16_spill] sm:$0xff] }
 0x3d6   : > { %v6640_v39 = vpack.c.bf16 %v2455_v4, %v2454_v0  ;;  %2921 = vst [vmem:[#allocation2 + $0x78] sm:$0xff] %v9577_v8  ;;  %2922 = vst [vmem:[#allocation2 + $0x80] sm:$0xff] %v9590_v26  ;;  %v2961_v54 = vld [vmem:[#allocation2 + $0x39] sm:$0xff]  ;;  %v2966_v12 = vld [vmem:[#allocation2 + $0x61] sm:$0xff] }
 0x3d7   : > { %6617 = vmatmul.mubr.msk.bf16.gmra.mrb[108].mxu1 %vm9508_vm4, %v6616_v16  ;;  %v6749_v31 = vpack.c.bf16 %v2962_v9, %v2961_v54  ;;  %v2927_v4 = vld [vmem:[#allocation2 + $0x27] sm:$0xff]  ;;  %v2965_v16 = vld [vmem:[#allocation2 + $0x59] sm:$0xff] }
 0x3d8   : > { %8368 = vmatmul.mubr.msk.bf16.gmra.mrb[60].mxu0 %vm9514_vm5, %v6640_v39  ;;  %8387 = vmatprep.mubr.msk.bf16.mxu1 %vm9514_vm5, %v6740_v62  ;;  %v6722_v39 = vpack.c.bf16 %v2928_v51, %v2927_v4  ;;  %v6755_v7 = vpack.c.bf16 %v2966_v12, %v2965_v16  ;;  %v2931_v9 = vld [vmem:[#allocation2 + $0x47] sm:$0xff]  ;;  %v2934_v54 = vld [vmem:[#allocation2 + $0x5f] sm:$0xff] }
 0x3d9   : > { %3236 = vmatprep.mubr.bf16.mxu0 %v11466_v37  ;;  %v6728_v43 = vpack.c.bf16 %v2932_v5, %v2931_v9  ;;  %v11472_v2 = vld [vmem:[#allocation20_spill] sm:$0xff]  ;;  %v8815_v9 = vld [vmem:[%s11329_s6 + $0x420] sm:$0xff]  }
 0x3da   : > { %v2935_v51 = vld [vmem:[#allocation2 + $0x67] sm:$0xff] }
 0x3db   : > { %v2967_v62 = vld [vmem:[#allocation2 + $0x69] sm:$0xff] }
 0x3dc   : > { %v8809_v5 = vld [vmem:[%s11329_s6 + $0x448] sm:$0xff]  }
 0x3dd   : > { %v2968_v0 = vld [vmem:[#allocation2 + $0x71] sm:$0xff]  ;;  %v2969_v33 = vld [vmem:[#allocation2 + $0x79] sm:$0xff]  ;;  %v2970_v28 = vld [vmem:[#allocation2 + $0x81] sm:$0xff] }
 0x3de   : > { %v6758_v49 = vpack.c.bf16 %v2968_v0, %v2967_v62  ;;  %v6761_v60 = vpack.c.bf16 %v2970_v28, %v2969_v33  ;;  %v11473_v0 = vld [vmem:[#allocation21_spill] sm:$0xff]  ;;  %v2938_v16 = vld [vmem:[#allocation2 + $0x7f] sm:$0xff]  ;;  %v8808_v33 = vld [vmem:[%s11329_s6 + $0x3c8] sm:$0xff]  }
 0x3df   : > { %8388 = vmatmul.mubr.msk.bf16.vlgmr.msra.gmra.mrb[112].mxu1 %vm9514_vm5, %v6743_v53  ;;  %v2937_v4 = vld [vmem:[#allocation2 + $0x77] sm:$0xff]  ;;  %v8804_v62 = vld [vmem:[%s11329_s6 + $0x440] sm:$0xff]  }
 0x3e0   : > { %6717 = vmatmul.mubr.msk.bf16.vlgmr.msra.gmra.mrb[96].mxu0 %vm9508_vm4, %v6716_v15  ;;  %8391 = vmatprep.mubr.msk.bf16.mxu1 %vm9514_vm5, %v6746_v44  ;;  %v2929_v15 = vld [vmem:[#allocation2 + $0x37] sm:$0xff] }
 0x3e1   : > { %3244 = vmatprep.mubr.bf16.mxu0 %v11467_v32  ;;  %v6725_v53 = vpack.c.bf16 %v2930_v22, %v2929_v15  ;;  %v11470_v44 = vld [vmem:[#allocation18_spill] sm:$0xff]  ;;  %8403 = vmatprep.subr.bf16.mxu0 %v8804_v62  ;;  %v8807_v22 = vld [vmem:[%s11329_s6 + $0x408] sm:$0xff]   ;;  %v8810_v28 = vld [vmem:[%s11329_s6 + $0x410] sm:$0xff]  }
 0x3e2   : > { %8404 = vmatpush3.bf16.msra.mxu0 %v8804_v62  ;;  %v8811_v15 = vld [vmem:[%s11329_s6 + $0x3d0] sm:$0xff]  }
 0x3e3   : > { %8405 = vmatprep.subr.bf16.mxu0 %v8809_v5  ;;  %v8826_v62 = vld [vmem:[%s11329_s6 + $0x470] sm:$0xff]  }
 0x3e6   : > { %8406 = vmatpush3.bf16.msra.mxu0 %v8809_v5 }
 0x3e7   : > { %8392 = vmatmul.mubr.msk.bf16.gmra.mrb[116].mxu1 %vm9514_vm5, %v6749_v31 }
 0x3e8   : > { %6720 = vmatmul.mubr.msk.bf16.gmra.mrb[100].mxu0 %vm9508_vm4, %v6719_v38  ;;  %8395 = vmatprep.mubr.msk.bf16.mxu1 %vm9514_vm5, %v6752_v45  ;;  %v2933_v38 = vld [vmem:[#allocation2 + $0x57] sm:$0xff]  ;;  %v2936_v45 = vld [vmem:[#allocation2 + $0x6f] sm:$0xff] }
 0x3e9   : > { %3252 = vmatprep.mubr.bf16.mxu0 %v11468_v24  ;;  %v6731_v31 = vpack.c.bf16 %v2934_v54, %v2933_v38  ;;  %v6734_v12 = vpack.c.bf16 %v2936_v45, %v2935_v51  ;;  %v8817_v54 = vld [vmem:[%s11329_s6 + $0x428] sm:$0xff]   ;;  %v8820_v45 = vld [vmem:[%s11329_s6 + $0x430] sm:$0xff]  }
 0x3ea   : > { %v8818_v38 = vld [vmem:[%s11329_s6 + $0x3e8] sm:$0xff]   ;;  %v8821_v51 = vld [vmem:[%s11329_s6 + $0x3f0] sm:$0xff]  }
 0x3ef   : > { %8396 = vmatmul.mubr.msk.bf16.gmra.mrb[120].mxu1 %vm9514_vm5, %v6755_v7  ;;  %v8805_v7 = vld [vmem:[%s11329_s6 + $0x400] sm:$0xff]  }
 0x3f0   : > { %6723 = vmatmul.mubr.msk.bf16.gmra.mrb[104].mxu0 %vm9508_vm4, %v6722_v39  ;;  %8399 = vmatprep.mubr.msk.bf16.mxu1 %vm9514_vm5, %v6758_v49  ;;  %v6737_v39 = vpack.c.bf16 %v2938_v16, %v2937_v4  ;;  %v8806_v49 = vld [vmem:[%s11329_s6 + $0x3c0] sm:$0xff]   ;;  %v8822_v4 = vld [vmem:[%s11329_s6 + $0x438] sm:$0xff]  }
 0x3f1   : > { %3260 = vmatprep.mubr.bf16.mxu0 %v11469_v30  ;;  %7795 = vmatprep.subr.bf16.mxu1 %v8805_v7  ;;  %v8823_v16 = vld [vmem:[%s11329_s6 + $0x3f8] sm:$0xff]   ;;  %v8825_v7 = vld [vmem:[%s11329_s6 + $0x468] sm:$0xff]  }
 0x3f2   : > { %7796 = vmatpush3.bf16.msra.mxu1 %v8806_v49  ;;  %v8828_v49 = vld [vmem:[%s11329_s6 + $0x478] sm:$0xff]  }
 0x3f3   : > { %7797 = vmatprep.subr.bf16.mxu1 %v8807_v22  ;;  %v10457_v22 = vld [vmem:[%s11329_s6 + $0x500] sm:$0xff]  }
 0x3f6   : > { %7798 = vmatpush3.bf16.msra.mxu1 %v8808_v33  ;;  %v8831_v33 = vld [vmem:[%s11329_s6 + $0x4c0] sm:$0xff]  }
 0x3f7   : > { %8400 = vmatmul.mubr.msk.bf16.gmra.mrb[124].mxu1 %vm9514_vm5, %v6761_v60  ;;  %7799 = vmatprep.subr.bf16.mxu1 %v8810_v28  ;;  %v8813_v60 = vld [vmem:[%s11329_s6 + $0x3d8] sm:$0xff]  }
 0x3f8   : > { %6726 = vmatmul.mubr.msk.bf16.gmra.mrb[108].mxu0 %vm9508_vm4, %v6725_v53  ;;  %v8812_v53 = vld [vmem:[%s11329_s6 + $0x418] sm:$0xff]  }
 0x3f9   : > { %3268 = vmatprep.mubr.bf16.mxu0 %v11470_v44 }
 0x3fa   : > { %7800 = vmatpush3.bf16.msra.mxu1 %v8811_v15  ;;  %v10463_v15 = vld [vmem:[#allocation10 + $0x1] ss:$0 sm:$0xff] }
 0x3fb   : > { %7801 = vmatprep.subr.bf16.mxu1 %v8812_v53  ;;  %v10465_v53 = vld [vmem:[#allocation10 + $0x3] ss:$0 sm:$0xff] }
 0x3fe   : > { %7802 = vmatpush3.bf16.msra.mxu1 %v8813_v60 }
 0x3ff   : > { %7803 = vmatprep.subr.bf16.mxu1 %v8815_v9 }
 0x400   : > { %6729 = vmatmul.mubr.msk.bf16.gmra.mrb[112].mxu0 %vm9508_vm4, %v6728_v43  ;;  %v8816_v43 = vld [vmem:[%s11329_s6 + $0x3e0] sm:$0xff]  }
 0x401   : > { %3276 = vmatprep.mubr.bf16.mxu0 %v11471_v55 }
 0x402   : > { %7804 = vmatpush3.bf16.msra.mxu1 %v8816_v43 }
 0x403   : > { %7805 = vmatprep.subr.bf16.mxu1 %v8817_v54  ;;  %v1702_v54 = vadd.f32 %v10147_v42, %v10463_v15 }
 0x406   : > { %7806 = vmatpush3.bf16.msra.mxu1 %v8818_v38 }
 0x407   : > { %7807 = vmatprep.subr.bf16.mxu1 %v8820_v45  ;;  %v1705_v45 = vadd.f32 %v10149_v3, %v10463_v15  ;;  %v1713_v3 = vadd.f32 %v10153_v40, %v10463_v15 }
 0x408   : > { %6732 = vmatmul.mubr.msk.bf16.gmra.mrb[116].mxu0 %vm9508_vm4, %v6731_v31  ;;  %v8814_v31 = vld [vmem:[%s11329_s6 + $0x450] sm:$0xff]  }
 0x409   : > { %3284 = vmatprep.mubr.bf16.mxu0 %v11472_v2  ;;  %8407 = vmatprep.subr.bf16.mxu0 %v8814_v31 }
 0x40a   : > { %8408 = vmatpush3.bf16.msra.mxu0 %v8814_v31  ;;  %7808 = vmatpush3.bf16.msra.mxu1 %v8821_v51 }
 0x40b   : > { %7809 = vmatprep.subr.bf16.mxu1 %v8822_v4 }
 0x40e   : > { %7810 = vmatpush3.bf16.msra.mxu1 %v8823_v16 }
 0x40f   : > { %8435 = vmatprep.subr.bf16.mxu1 %v10457_v22 }
 0x410   : > { %6735 = vmatmul.mubr.msk.bf16.gmra.mrb[120].mxu0 %vm9508_vm4, %v6734_v12  ;;  %v8819_v12 = vld [vmem:[%s11329_s6 + $0x458] sm:$0xff]  }
 0x411   : > { %3292 = vmatprep.mubr.bf16.mxu0 %v11473_v0  ;;  %8409 = vmatprep.subr.bf16.mxu0 %v8819_v12 }
 0x412   : > { %8410 = vmatpush3.bf16.msra.mxu0 %v8819_v12 }
 0x418   : > { %6738 = vmatmul.mubr.msk.bf16.gmra.mrb[124].mxu0 %vm9508_vm4, %v6737_v39  ;;  %v8824_v39 = vld [vmem:[%s11329_s6 + $0x460] sm:$0xff]  }
 0x419   : > { %8411 = vmatprep.subr.bf16.mxu0 %v8824_v39 }
 0x41a   : > { %8412 = vmatpush3.bf16.msra.mxu0 %v8824_v39 }
 0x41b   : > { %8413 = vmatprep.subr.bf16.mxu0 %v8825_v7 }
 0x41e   : > { %8414 = vmatpush3.bf16.msra.mxu0 %v8825_v7 }
 0x41f   : > { %8415 = vmatprep.subr.bf16.mxu0 %v8826_v62 }
 0x422   : > { %8416 = vmatpush3.bf16.msra.mxu0 %v8826_v62 }
 0x423   : > { %8417 = vmatprep.subr.bf16.mxu0 %v8828_v49 }
 0x426   : > { %8418 = vmatpush3.bf16.msra.mxu0 %v8828_v49 }
 0x427   : > { %7875 = vmatprep.subr.bf16.mxu0 %v8831_v33  ;;  %v1710_v33 = vadd.f32 %v10151_v57, %v10463_v15 }
 0x472   : > { %v7651_v28 = vpop.f32.mrb[80].mxu1 }
 0x473   : > { %v7652_v60 = vpop.f32.mrb[81].mxu1 }
 0x474   : > { %v7653_v5 = vadd.f32 %v7652_v60, %v7651_v28  ;;  %v7654_v9 = vpop.f32.mrb[82].mxu1 }
 0x475   : > { %v7655_v43 = vpop.f32.mrb[83].mxu1 }
 0x476   : > { %v2732_v38 = vadd.f32 %v7653_v5, %v10465_v53  ;;  %v7656_v31 = vadd.f32 %v7655_v43, %v7654_v9 }
 0x478   : > { %v2735_v51 = vadd.f32 %v7656_v31, %v10465_v53  ;;  %v8565_v12 = vadd.f32 %v2732_v38, %v1702_v54 }
 0x47a   : > { %v7657_v4 = vpop.f32.mrb[84].mxu1  ;;  %v8569_v16 = vadd.f32 %v2735_v51, %v1705_v45 }
 0x47b   : > { %v7658_v39 = vpop.f32.mrb[85].mxu1 }
 0x47c   : > { %v7659_v7 = vadd.f32 %v7658_v39, %v7657_v4  ;;  %v7660_v62 = vpop.f32.mrb[86].mxu1 }
 0x47d   : > { %v7661_v49 = vpop.f32.mrb[87].mxu1 }
 0x47e   : > { %v2740_v42 = vadd.f32 %v7659_v7, %v10465_v53  ;;  %v7662_v28 = vadd.f32 %v7661_v49, %v7660_v62 }
 0x480   : > { %v2743_v60 = vadd.f32 %v7662_v28, %v10465_v53  ;;  %v8357_v5 = vpop.f32.mrb[48].mxu0  ;;  %v8563_v9 = vadd.f32 %v2740_v42, %v1710_v33  ;;  %v1718_v33 = vadd.f32 %v10155_v46, %v10463_v15  ;;  %v1721_v28 = vadd.f32 %v10157_v47, %v10463_v15 }
 0x481   : > { %v2828_v43 = vpop.f32.mrb[49].mxu0  ;;  %v1726_v46 = vadd.f32 %v10159_v56, %v10463_v15  ;;  %v1729_v47 = vadd.f32 %v10161_v25, %v10463_v15 }
 0x482   : > { %v8564_v54 = vadd.f32 %v8563_v9, %v8357_v5  ;;  %v8566_v38 = vadd.f32 %v8565_v12, %v2828_v43  ;;  %v7663_v31 = vpop.f32.mrb[88].mxu1  ;;  %v8358_v45 = vpop.f32.mrb[50].mxu0  ;;  %v8567_v51 = vadd.f32 %v2743_v60, %v1713_v3 }
 0x483   : > { %v7664_v57 = vpop.f32.mrb[89].mxu1  ;;  %v2831_v4 = vpop.f32.mrb[51].mxu0 }
 0x484   : > { %5981 = vst [vmem:[%s9330_s24 + $0x40] sm:$0xff] %v8564_v54  ;;  %5973 = vst [vmem:[%s9330_s24] sm:$0xff] %v8566_v38  ;;  %v8568_v39 = vadd.f32 %v8567_v51, %v8358_v45  ;;  %v7665_v7 = vadd.f32 %v7664_v57, %v7663_v31  ;;  %v8570_v62 = vadd.f32 %v8569_v16, %v2831_v4  ;;  %v7666_v40 = vpop.f32.mrb[90].mxu1 }
 0x485   : > { %v7667_v49 = vpop.f32.mrb[91].mxu1 }
 0x486   : > { %5985 = vst [vmem:[%s9330_s24 + $0x60] sm:$0xff] %v8568_v39  ;;  %v2748_v42 = vadd.f32 %v7665_v7, %v10465_v53  ;;  %5977 = vst [vmem:[%s9330_s24 + $0x20] sm:$0xff] %v8570_v62  ;;  %v7668_v12 = vadd.f32 %v7667_v49, %v7666_v40 }
 0x488   : > { %v2751_v3 = vadd.f32 %v7668_v12, %v10465_v53  ;;  %v8573_v60 = vadd.f32 %v2748_v42, %v1718_v33 }
 0x48a   : > { %v7669_v5 = vpop.f32.mrb[92].mxu1  ;;  %v8577_v9 = vadd.f32 %v2751_v3, %v1721_v28 }
 0x48b   : > { %v7670_v43 = vpop.f32.mrb[93].mxu1 }
 0x48c   : > { %v7671_v16 = vadd.f32 %v7670_v43, %v7669_v5  ;;  %v7672_v54 = vpop.f32.mrb[94].mxu1  ;;  %v1734_v43 = vadd.f32 %v10163_v13, %v10463_v15  ;;  %v1742_v13 = vadd.f32 %v10167_v23, %v10463_v15 }
 0x48d   : > { %v7673_v38 = vpop.f32.mrb[95].mxu1 }
 0x48e   : > { %v2756_v31 = vadd.f32 %v7671_v16, %v10465_v53  ;;  %v7674_v45 = vadd.f32 %v7673_v38, %v7672_v54  ;;  %v1737_v54 = vadd.f32 %v10165_v6, %v10463_v15  ;;  %v1745_v6 = vadd.f32 %v10169_v59, %v10463_v15 }
 0x490   : > { %v2759_v51 = vadd.f32 %v7674_v45, %v10465_v53  ;;  %v8361_v57 = vpop.f32.mrb[52].mxu0  ;;  %v8571_v4 = vadd.f32 %v2756_v31, %v1726_v46 }
 0x491   : > { %v2844_v39 = vpop.f32.mrb[53].mxu0 }
 0x492   : > { %v8572_v7 = vadd.f32 %v8571_v4, %v8361_v57  ;;  %v8574_v62 = vadd.f32 %v8573_v60, %v2844_v39  ;;  %v7675_v40 = vpop.f32.mrb[96].mxu1  ;;  %v8362_v49 = vpop.f32.mrb[54].mxu0  ;;  %v8575_v33 = vadd.f32 %v2759_v51, %v1729_v47 }
 0x493   : > { %v7676_v56 = vpop.f32.mrb[97].mxu1  ;;  %v2847_v42 = vpop.f32.mrb[55].mxu0 }
 0x494   : > { %5997 = vst [vmem:[%s9330_s24 + $0xc0] sm:$0xff] %v8572_v7  ;;  %5989 = vst [vmem:[%s9330_s24 + $0x80] sm:$0xff] %v8574_v62  ;;  %v8576_v12 = vadd.f32 %v8575_v33, %v8362_v49  ;;  %v7677_v28 = vadd.f32 %v7676_v56, %v7675_v40  ;;  %v8578_v3 = vadd.f32 %v8577_v9, %v2847_v42  ;;  %v7678_v25 = vpop.f32.mrb[98].mxu1 }
 0x495   : > { %v7679_v5 = vpop.f32.mrb[99].mxu1 }
 0x496   : > { %6001 = vst [vmem:[%s9330_s24 + $0xe0] sm:$0xff] %v8576_v12  ;;  %v2764_v16 = vadd.f32 %v7677_v28, %v10465_v53  ;;  %5993 = vst [vmem:[%s9330_s24 + $0xa0] sm:$0xff] %v8578_v3  ;;  %v7680_v60 = vadd.f32 %v7679_v5, %v7678_v25 }
 0x498   : > { %v2767_v38 = vadd.f32 %v7680_v60, %v10465_v53  ;;  %v8581_v46 = vadd.f32 %v2764_v16, %v1734_v43  ;;  %v1750_v60 = vadd.f32 %v10171_v35, %v10463_v15 }
 0x49a   : > { %v7681_v31 = vpop.f32.mrb[100].mxu1  ;;  %v8585_v45 = vadd.f32 %v2767_v38, %v1737_v54 }
 0x49b   : > { %v7682_v47 = vpop.f32.mrb[101].mxu1 }
 0x49c   : > { %v7683_v9 = vadd.f32 %v7682_v47, %v7681_v31  ;;  %v7684_v51 = vpop.f32.mrb[102].mxu1 }
 0x49d   : > { %v7685_v57 = vpop.f32.mrb[103].mxu1 }
 0x49e   : > { %v2772_v4 = vadd.f32 %v7683_v9, %v10465_v53  ;;  %v7686_v39 = vadd.f32 %v7685_v57, %v7684_v51 }
 0x4a0   : > { %v2775_v7 = vadd.f32 %v7686_v39, %v10465_v53  ;;  %v8365_v62 = vpop.f32.mrb[56].mxu0  ;;  %v8579_v40 = vadd.f32 %v2772_v4, %v1742_v13 }
 0x4a1   : > { %v2860_v49 = vpop.f32.mrb[57].mxu0 }
 0x4a2   : > { %v8580_v33 = vadd.f32 %v8579_v40, %v8365_v62  ;;  %v8582_v56 = vadd.f32 %v8581_v46, %v2860_v49  ;;  %v7687_v42 = vpop.f32.mrb[104].mxu1  ;;  %v8366_v12 = vpop.f32.mrb[58].mxu0  ;;  %v8583_v28 = vadd.f32 %v2775_v7, %v1745_v6  ;;  %v1753_v46 = vadd.f32 %v10173_v34, %v10463_v15 }
 0x4a3   : > { %v7688_v23 = vpop.f32.mrb[105].mxu1  ;;  %v2863_v3 = vpop.f32.mrb[59].mxu0  ;;  %v1758_v40 = vadd.f32 %v10175_v18, %v10463_v15  ;;  %v10529_v18 = vld [vmem:[#allocation10 + $0x4] ss:$0 sm:$0xff] }
 0x4a4   : > { %6013 = vst [vmem:[%s9330_s24 + $0x140] sm:$0xff] %v8580_v33  ;;  %6005 = vst [vmem:[%s9330_s24 + $0x100] sm:$0xff] %v8582_v56  ;;  %v8584_v25 = vadd.f32 %v8583_v28, %v8366_v12  ;;  %v7689_v5 = vadd.f32 %v7688_v23, %v7687_v42  ;;  %v8586_v43 = vadd.f32 %v8585_v45, %v2863_v3  ;;  %v7690_v59 = vpop.f32.mrb[106].mxu1 }
 0x4a5   : > { %v7691_v16 = vpop.f32.mrb[107].mxu1  ;;  %v1761_v56 = vadd.f32 %v10177_v50, %v10463_v15 }
 0x4a6   : > { %6017 = vst [vmem:[%s9330_s24 + $0x160] sm:$0xff] %v8584_v25  ;;  %v2780_v54 = vadd.f32 %v7689_v5, %v10465_v53  ;;  %6009 = vst [vmem:[%s9330_s24 + $0x120] sm:$0xff] %v8586_v43  ;;  %v7692_v38 = vadd.f32 %v7691_v16, %v7690_v59 }
 0x4a8   : > { %v2783_v31 = vadd.f32 %v7692_v38, %v10465_v53  ;;  %v8589_v47 = vadd.f32 %v2780_v54, %v1750_v60 }
 0x4aa   : > { %v7693_v9 = vpop.f32.mrb[108].mxu1  ;;  %v8593_v45 = vadd.f32 %v2783_v31, %v1753_v46 }
 0x4ab   : > { %v8369_v51 = vpop.f32.mrb[60].mxu0  ;;  %v7694_v57 = vpop.f32.mrb[109].mxu1 }
 0x4ac   : > { %v2876_v13 = vpop.f32.mrb[61].mxu0  ;;  %v7695_v4 = vadd.f32 %v7694_v57, %v7693_v9  ;;  %v7696_v39 = vpop.f32.mrb[110].mxu1 }
 0x4ad   : > { %v8590_v35 = vadd.f32 %v8589_v47, %v2876_v13  ;;  %v8370_v6 = vpop.f32.mrb[62].mxu0  ;;  %v7697_v7 = vpop.f32.mrb[111].mxu1 }
 0x4ae   : > { %v2879_v62 = vpop.f32.mrb[63].mxu0  ;;  %v2788_v34 = vadd.f32 %v7695_v4, %v10465_v53  ;;  %v7698_v49 = vadd.f32 %v7697_v7, %v7696_v39 }
 0x4af   : > { %6021 = vst [vmem:[%s9330_s24 + $0x180] sm:$0xff] %v8590_v35  ;;  %v8594_v33 = vadd.f32 %v8593_v45, %v2879_v62 }
 0x4b0   : > { %v8587_v42 = vadd.f32 %v2788_v34, %v1758_v40  ;;  %v2791_v12 = vadd.f32 %v7698_v49, %v10465_v53 }
 0x4b1   : > { %6025 = vst [vmem:[%s9330_s24 + $0x1a0] sm:$0xff] %v8594_v33 }
 0x4b2   : > { %v8588_v28 = vadd.f32 %v8587_v42, %v8369_v51  ;;  %v8591_v23 = vadd.f32 %v2791_v12, %v1761_v56  ;;  %v8389_v25 = vpop.f32.mrb[112].mxu1 }
 0x4b3   : > { %v7731_v3 = vpop.f32.mrb[96].mxu0  ;;  %v3335_v43 = vpop.f32.mrb[113].mxu1 }
 0x4b4   : > { %v7732_v5 = vpop.f32.mrb[97].mxu0  ;;  %6029 = vst [vmem:[%s9330_s24 + $0x1c0] sm:$0xff] %v8588_v28  ;;  %v8592_v59 = vadd.f32 %v8591_v23, %v8370_v6  ;;  %v8390_v54 = vpop.f32.mrb[114].mxu1 }
 0x4b5   : > { %v7733_v16 = vadd.f32 %v7732_v5, %v7731_v3  ;;  %v7734_v60 = vpop.f32.mrb[98].mxu0  ;;  %v3338_v50 = vpop.f32.mrb[115].mxu1 }
 0x4b6   : > { %v7735_v38 = vpop.f32.mrb[99].mxu0  ;;  %6033 = vst [vmem:[%s9330_s24 + $0x1e0] sm:$0xff] %v8592_v59 }
 0x4b7   : > { %v3239_v15 = vadd.f32 %v7733_v16, %v10529_v18  ;;  %v7736_v53 = vadd.f32 %v7735_v38, %v7734_v60 }
 0x4b9   : > { %v3336_v46 = vadd.f32 %v3335_v43, %v3239_v15  ;;  %v3242_v31 = vadd.f32 %v7736_v53, %v10529_v18 }
 0x4ba   : > { %v10535_v45 = vpop.f32.mrb[116].mxu1 }
 0x4bb   : > { %v3398_v47 = vmax.f32 %v3336_v46, 0.0  ;;  %v3339_v9 = vadd.f32 %v3338_v50, %v3242_v31  ;;  %v7737_v51 = vpop.f32.mrb[100].mxu0  ;;  %v3351_v13 = vpop.f32.mrb[117].mxu1 }
 0x4bc   : > { %v7738_v57 = vpop.f32.mrb[101].mxu0  ;;  %v10537_v6 = vpop.f32.mrb[118].mxu1 }
 0x4bd   : > { %3414 = vst [vmem:[#allocation2 + $0x8] sm:$0xff] %v3398_v47  ;;  %v3399_v4 = vmax.f32 %v3339_v9, 0.0  ;;  %v7739_v35 = vadd.f32 %v7738_v57, %v7737_v51  ;;  %v7740_v39 = vpop.f32.mrb[102].mxu0  ;;  %v3354_v62 = vpop.f32.mrb[119].mxu1  ;;  %v8829_v9 = vld [vmem:[%s11329_s6 + $0x508] sm:$0xff]  }
 0x4be   : > { %v7741_v7 = vpop.f32.mrb[103].mxu0 }
 0x4bf   : > { %v3544_v40 = vpack.c.bf16 %v3399_v4, %v3398_v47  ;;  %3415 = vst [vmem:[#allocation2 + $0x10] sm:$0xff] %v3399_v4  ;;  %v3247_v34 = vadd.f32 %v7739_v35, %v10529_v18  ;;  %v7742_v49 = vadd.f32 %v7741_v7, %v7740_v39 }
 0x4c1   : > { %v3344_v33 = vadd.f32 %v8389_v25, %v3247_v34  ;;  %v3250_v56 = vadd.f32 %v7742_v49, %v10529_v18  ;;  %3751 = vmatprep.mubr.bf16.mxu1 %v3544_v40 }
 0x4c2   : > { %v10541_v23 = vpop.f32.mrb[120].mxu1 }
 0x4c3   : > { %v3400_v42 = vmax.f32 %v3344_v33, 0.0  ;;  %v3347_v12 = vadd.f32 %v8390_v54, %v3250_v56  ;;  %v7743_v28 = vpop.f32.mrb[104].mxu0  ;;  %v10543_v5 = vpop.f32.mrb[121].mxu1 }
 0x4c4   : > { %v7744_v3 = vpop.f32.mrb[105].mxu0  ;;  %v10545_v60 = vpop.f32.mrb[122].mxu1  ;;  %v3430_v25 = vld [vmem:[#allocation2 + $0x7] sm:$0xff] }
 0x4c5   : > { %3416 = vst [vmem:[#allocation2 + $0x18] sm:$0xff] %v3400_v42  ;;  %v3401_v43 = vmax.f32 %v3347_v12, 0.0  ;;  %v7745_v59 = vadd.f32 %v7744_v3, %v7743_v28  ;;  %v7746_v16 = vpop.f32.mrb[106].mxu0  ;;  %v10547_v50 = vpop.f32.mrb[123].mxu1 }
 0x4c6   : > { %v7747_v38 = vpop.f32.mrb[107].mxu0  ;;  %v3431_v15 = vld [vmem:[#allocation2 + $0xf] sm:$0xff] }
 0x4c7   : > { %v3462_v53 = vld [vmem:[#allocation2 + $0x9] sm:$0xff]  ;;  %3417 = vst [vmem:[#allocation2 + $0x20] sm:$0xff] %v3401_v43  ;;  %v3255_v54 = vadd.f32 %v7745_v59, %v10529_v18  ;;  %v7748_v46 = vadd.f32 %v7747_v38, %v7746_v16  ;;  %v6837_v31 = vpack.c.bf16 %v3431_v15, %v3430_v25  ;;  %v3547_v47 = vpack.c.bf16 %v3401_v43, %v3400_v42 }
 0x4c8   : > { %3929 = vst [vmem:[#allocation2 + $0x8] sm:$0xff] %v9470_v61 }
 0x4c9   : > { %v3352_v51 = vadd.f32 %v3351_v13, %v3255_v54  ;;  %v3258_v57 = vadd.f32 %v7748_v46, %v10529_v18  ;;  %6838 = vmatmul.mubr.msk.bf16.vlgmr.msra.gmra.mrb[128].mxu1 %vm9508_vm4, %v6837_v31  ;;  %v8830_v13 = vld [vmem:[%s11329_s6 + $0x510] sm:$0xff]  }
 0x4ca   : > { %3759 = vmatprep.mubr.bf16.mxu1 %v3547_v47  ;;  %8436 = vmatpush3.bf16.msra.mxu1 %v10457_v22  ;;  %v10558_v7 = vpop.f32.mrb[124].mxu1 }
 0x4cb   : > { %v3402_v4 = vmax.f32 %v3352_v51, 0.0  ;;  %v3355_v35 = vadd.f32 %v3354_v62, %v3258_v57  ;;  %v7749_v39 = vpop.f32.mrb[108].mxu0  ;;  %8437 = vmatprep.subr.bf16.mxu1 %v8829_v9  ;;  %v10560_v40 = vpop.f32.mrb[125].mxu1 }
 0x4cc   : > { %v7750_v61 = vpop.f32.mrb[109].mxu0  ;;  %v3463_v34 = vld [vmem:[#allocation2 + $0x11] sm:$0xff]  ;;  %v10565_v22 = vpop.f32.mrb[126].mxu1 }
 0x4cd   : > { %v3432_v49 = vld [vmem:[#allocation2 + $0x17] sm:$0xff]  ;;  %3418 = vst [vmem:[#allocation2 + $0x28] sm:$0xff] %v3402_v4  ;;  %v3403_v33 = vmax.f32 %v3355_v35, 0.0  ;;  %v7751_v56 = vadd.f32 %v7750_v61, %v7749_v39  ;;  %v7752_v42 = vpop.f32.mrb[110].mxu0  ;;  %v6861_v62 = vpack.c.bf16 %v3463_v34, %v3462_v53  ;;  %v10568_v28 = vpop.f32.mrb[127].mxu1 }
 0x4ce   : > { %3930 = vst [vmem:[#allocation2 + $0x10] sm:$0xff] %v9477_v1  ;;  %v7753_v12 = vpop.f32.mrb[111].mxu0  ;;  %v3433_v3 = vld [vmem:[#allocation2 + $0x1f] sm:$0xff]  ;;  %8438 = vmatpush3.bf16.msra.mxu1 %v8829_v9 }
 0x4cf   : > { %v3464_v43 = vld [vmem:[#allocation2 + $0x19] sm:$0xff]  ;;  %3419 = vst [vmem:[#allocation2 + $0x30] sm:$0xff] %v3403_v33  ;;  %v3263_v59 = vadd.f32 %v7751_v56, %v10529_v18  ;;  %v7754_v16 = vadd.f32 %v7753_v12, %v7752_v42  ;;  %8419 = vmatprep.mubr.msk.bf16.mxu0 %vm9514_vm5, %v6861_v62  ;;  %v6840_v38 = vpack.c.bf16 %v3433_v3, %v3432_v49  ;;  %v8835_v62 = vld [vmem:[%s11329_s6 + $0x488] sm:$0xff]  }
 0x4d0   : > { %v3550_v25 = vpack.c.bf16 %v3403_v33, %v3402_v4  ;;  %3931 = vst [vmem:[#allocation2 + $0x18] sm:$0xff] %v9467_v58  ;;  %v8832_v1 = vld [vmem:[%s11329_s6 + $0x518] sm:$0xff]   ;;  %8439 = vmatprep.subr.bf16.mxu1 %v8830_v13  ;;  %v8833_v58 = vld [vmem:[%s11329_s6 + $0x480] sm:$0xff]  }
 0x4d1   : > { %v3360_v15 = vadd.f32 %v10535_v45, %v3263_v59  ;;  %v3266_v53 = vadd.f32 %v7754_v16, %v10529_v18  ;;  %6841 = vmatmul.mubr.msk.bf16.gmra.mrb[132].mxu1 %vm9508_vm4, %v6840_v38  ;;  %v8837_v45 = vld [vmem:[%s11329_s6 + $0x520] sm:$0xff]  }
 0x4d2   : > { %3767 = vmatprep.mubr.bf16.mxu1 %v3550_v25  ;;  %8440 = vmatpush3.bf16.msra.mxu1 %v8830_v13 }
 0x4d3   : > { %v3404_v54 = vmax.f32 %v3360_v15, 0.0  ;;  %v3363_v46 = vadd.f32 %v10537_v6, %v3266_v53  ;;  %v7755_v31 = vpop.f32.mrb[112].mxu0  ;;  %8441 = vmatprep.subr.bf16.mxu1 %v8832_v1  ;;  %v8834_v6 = vld [vmem:[%s11329_s6 + $0x4c8] sm:$0xff]   ;;  %v8847_v15 = vld [vmem:[%s11329_s6 + $0x530] sm:$0xff]  }
 0x4d4   : > { %v7756_v47 = vpop.f32.mrb[113].mxu0  ;;  %v3465_v9 = vld [vmem:[#allocation2 + $0x21] sm:$0xff] }
 0x4d5   : > { %v3434_v51 = vld [vmem:[#allocation2 + $0x27] sm:$0xff]  ;;  %3420 = vst [vmem:[#allocation2 + $0x38] sm:$0xff] %v3404_v54  ;;  %v3405_v57 = vmax.f32 %v3363_v46, 0.0  ;;  %v7757_v4 = vadd.f32 %v7756_v47, %v7755_v31  ;;  %v7758_v35 = vpop.f32.mrb[114].mxu0  ;;  %v6864_v39 = vpack.c.bf16 %v3465_v9, %v3464_v43 }
 0x4d6   : > { %3932 = vst [vmem:[#allocation2 + $0x20] sm:$0xff] %v9474_v63  ;;  %v7759_v61 = vpop.f32.mrb[115].mxu0  ;;  %v3435_v34 = vld [vmem:[#allocation2 + $0x2f] sm:$0xff]  ;;  %8442 = vmatpush3.bf16.msra.mxu1 %v8832_v1 }
 0x4d7   : > { %v3466_v49 = vld [vmem:[#allocation2 + $0x29] sm:$0xff]  ;;  %3421 = vst [vmem:[#allocation2 + $0x40] sm:$0xff] %v3405_v57  ;;  %v3271_v13 = vadd.f32 %v7757_v4, %v10529_v18  ;;  %v7760_v33 = vadd.f32 %v7759_v61, %v7758_v35  ;;  %8420 = vmatmul.mubr.msk.bf16.vlgmr.msra.gmra.mrb[128].mxu0 %vm9514_vm5, %v6864_v39  ;;  %v6843_v56 = vpack.c.bf16 %v3435_v34, %v3434_v51  ;;  %v8840_v35 = vld [vmem:[%s11329_s6 + $0x498] sm:$0xff]  }
 0x4d8   : > { %v3553_v42 = vpack.c.bf16 %v3405_v57, %v3404_v54  ;;  %3933 = vst [vmem:[#allocation2 + $0x28] sm:$0xff] %v9495_v14  ;;  %v8842_v63 = vld [vmem:[%s11329_s6 + $0x528] sm:$0xff]   ;;  %7876 = vmatpush3.bf16.msra.mxu0 %v8833_v58  ;;  %8443 = vmatprep.subr.bf16.mxu1 %v8837_v45  ;;  %v8836_v14 = vld [vmem:[%s11329_s6 + $0x4d0] sm:$0xff]  }
 0x4d9   : > { %v3368_v12 = vadd.f32 %v10543_v5, %v3271_v13  ;;  %v3274_v3 = vadd.f32 %v7760_v33, %v10529_v18  ;;  %6844 = vmatmul.mubr.msk.bf16.gmra.mrb[136].mxu1 %vm9508_vm4, %v6843_v56  ;;  %7877 = vmatprep.subr.bf16.mxu0 %v8834_v6  ;;  %v8838_v5 = vld [vmem:[%s11329_s6 + $0x490] sm:$0xff]   ;;  %v8843_v56 = vld [vmem:[%s11329_s6 + $0x4a0] sm:$0xff]  }
 0x4da   : > { %3775 = vmatprep.mubr.bf16.mxu1 %v3553_v42  ;;  %8444 = vmatpush3.bf16.msra.mxu1 %v8837_v45 }
 0x4db   : > { %v3406_v43 = vmax.f32 %v3368_v12, 0.0  ;;  %v3371_v59 = vadd.f32 %v10547_v50, %v3274_v3  ;;  %v7761_v16 = vpop.f32.mrb[116].mxu0  ;;  %8445 = vmatprep.subr.bf16.mxu1 %v8842_v63  ;;  %v8839_v50 = vld [vmem:[%s11329_s6 + $0x4d8] sm:$0xff]  }
 0x4dc   : > { %v7762_v38 = vpop.f32.mrb[117].mxu0  ;;  %v3467_v25 = vld [vmem:[#allocation2 + $0x31] sm:$0xff]  ;;  %7878 = vmatpush3.bf16.msra.mxu0 %v8835_v62 }
 0x4dd   : > { %v3436_v1 = vld [vmem:[#allocation2 + $0x37] sm:$0xff]  ;;  %3422 = vst [vmem:[#allocation2 + $0x48] sm:$0xff] %v3406_v43  ;;  %v3407_v53 = vmax.f32 %v3371_v59, 0.0  ;;  %v7763_v54 = vadd.f32 %v7762_v38, %v7761_v16  ;;  %v7764_v46 = vpop.f32.mrb[118].mxu0  ;;  %v6867_v31 = vpack.c.bf16 %v3467_v25, %v3466_v49  ;;  %7879 = vmatprep.subr.bf16.mxu0 %v8836_v14 }
 0x4de   : > { %3934 = vst [vmem:[#allocation2 + $0x30] sm:$0xff] %v9506_v19  ;;  %v7765_v58 = vpop.f32.mrb[119].mxu0  ;;  %v3437_v47 = vld [vmem:[#allocation2 + $0x3f] sm:$0xff]  ;;  %8446 = vmatpush3.bf16.msra.mxu1 %v8842_v63 }
 0x4df   : > { %v3468_v9 = vld [vmem:[#allocation2 + $0x39] sm:$0xff]  ;;  %3423 = vst [vmem:[#allocation2 + $0x50] sm:$0xff] %v3407_v53  ;;  %v3279_v51 = vadd.f32 %v7763_v54, %v10529_v18  ;;  %v7766_v45 = vadd.f32 %v7765_v58, %v7764_v46  ;;  %8423 = vmatprep.mubr.msk.bf16.mxu0 %vm9514_vm5, %v6867_v31  ;;  %v6846_v57 = vpack.c.bf16 %v3437_v47, %v3436_v1 }
 0x4e0   : > { %v3556_v4 = vpack.c.bf16 %v3407_v53, %v3406_v43  ;;  %3935 = vst [vmem:[#allocation2 + $0x38] sm:$0xff] %v9490_v10  ;;  %v8851_v19 = vld [vmem:[%s11329_s6 + $0x538] sm:$0xff]   ;;  %7880 = vmatpush3.bf16.msra.mxu0 %v8838_v5  ;;  %8447 = vmatprep.subr.bf16.mxu1 %v8847_v15  ;;  %v8841_v10 = vld [vmem:[%s11329_s6 + $0x4e0] sm:$0xff]  }
 0x4e1   : > { %v3376_v39 = vadd.f32 %v10541_v23, %v3279_v51  ;;  %v3282_v6 = vadd.f32 %v7766_v45, %v10529_v18  ;;  %6847 = vmatmul.mubr.msk.bf16.gmra.mrb[140].mxu1 %vm9508_vm4, %v6846_v57  ;;  %7881 = vmatprep.subr.bf16.mxu0 %v8839_v50 }
 0x4e2   : > { %3783 = vmatprep.mubr.bf16.mxu1 %v3556_v4  ;;  %8448 = vmatpush3.bf16.msra.mxu1 %v8847_v15  ;;  %v8846_v15 = vld [vmem:[%s11329_s6 + $0x4f0] sm:$0xff]  }
 0x4e3   : > { %v3408_v61 = vmax.f32 %v3376_v39, 0.0  ;;  %v3379_v34 = vadd.f32 %v10545_v60, %v3282_v6  ;;  %v7767_v49 = vpop.f32.mrb[120].mxu0  ;;  %8449 = vmatprep.subr.bf16.mxu1 %v8851_v19  ;;  %v8844_v60 = vld [vmem:[%s11329_s6 + $0x4e8] sm:$0xff]  }
 0x4e4   : > { %v7768_v13 = vpop.f32.mrb[121].mxu0  ;;  %v3469_v33 = vld [vmem:[#allocation2 + $0x41] sm:$0xff]  ;;  %7882 = vmatpush3.bf16.msra.mxu0 %v8840_v35 }
 0x4e5   : > { %v3438_v23 = vld [vmem:[#allocation2 + $0x47] sm:$0xff]  ;;  %3424 = vst [vmem:[#allocation2 + $0x58] sm:$0xff] %v3408_v61  ;;  %v3409_v42 = vmax.f32 %v3379_v34, 0.0  ;;  %v7769_v63 = vadd.f32 %v7768_v13, %v7767_v49  ;;  %v7770_v62 = vpop.f32.mrb[122].mxu0  ;;  %v6870_v12 = vpack.c.bf16 %v3469_v33, %v3468_v9  ;;  %7883 = vmatprep.subr.bf16.mxu0 %v8841_v10 }
 0x4e6   : > { %3936 = vst [vmem:[#allocation2 + $0x40] sm:$0xff] %v9501_v17  ;;  %v7771_v3 = vpop.f32.mrb[123].mxu0  ;;  %v3439_v14 = vld [vmem:[#allocation2 + $0x4f] sm:$0xff]  ;;  %8450 = vmatpush3.bf16.msra.mxu1 %v8851_v19 }
 0x4e7   : > { %v3470_v43 = vld [vmem:[#allocation2 + $0x49] sm:$0xff]  ;;  %3425 = vst [vmem:[#allocation2 + $0x60] sm:$0xff] %v3409_v42  ;;  %v3287_v59 = vadd.f32 %v7769_v63, %v10529_v18  ;;  %v7772_v16 = vadd.f32 %v7771_v3, %v7770_v62  ;;  %8424 = vmatmul.mubr.msk.bf16.gmra.mrb[132].mxu0 %vm9514_vm5, %v6870_v12  ;;  %v6849_v5 = vpack.c.bf16 %v3439_v14, %v3438_v23 }
 0x4e8   : > { %v3559_v38 = vpack.c.bf16 %v3409_v42, %v3408_v61  ;;  %3937 = vst [vmem:[#allocation2 + $0x48] sm:$0xff] %v9539_v41  ;;  %7884 = vmatpush3.bf16.msra.mxu0 %v8843_v56  ;;  %v8845_v17 = vld [vmem:[%s11329_s6 + $0x4a8] sm:$0xff]  }
 0x4e9   : > { %v3384_v25 = vadd.f32 %v10560_v40, %v3287_v59  ;;  %v3290_v1 = vadd.f32 %v7772_v16, %v10529_v18  ;;  %6850 = vmatmul.mubr.msk.bf16.gmra.mrb[144].mxu1 %vm9508_vm4, %v6849_v5  ;;  %7885 = vmatprep.subr.bf16.mxu0 %v8844_v60  ;;  %v8848_v40 = vld [vmem:[%s11329_s6 + $0x4b0] sm:$0xff]   ;;  %v3980_v16 = vld [vmem:[#allocation2 + $0x21] sm:$0xff] }
 0x4ea   : > { %3791 = vmatprep.mubr.bf16.mxu1 %v3559_v38  ;;  %v3982_v5 = vld [vmem:[#allocation2 + $0x31] sm:$0xff]  ;;  %v3945_v38 = vld [vmem:[#allocation2 + $0x7] sm:$0xff] }
 0x4eb   : > { %v3410_v53 = vmax.f32 %v3384_v25, 0.0  ;;  %v3387_v41 = vadd.f32 %v10568_v28, %v3290_v1  ;;  %v7773_v54 = vpop.f32.mrb[124].mxu0  ;;  %v8849_v28 = vld [vmem:[%s11329_s6 + $0x4f8] sm:$0xff]   ;;  %v3981_v25 = vld [vmem:[#allocation2 + $0x29] sm:$0xff] }
 0x4ec   : > { %v7774_v46 = vpop.f32.mrb[125].mxu0  ;;  %v3471_v31 = vld [vmem:[#allocation2 + $0x51] sm:$0xff]  ;;  %7886 = vmatpush3.bf16.msra.mxu0 %v8845_v17  ;;  %v6988_v1 = vpack.c.bf16 %v3982_v5, %v3981_v25 }
 0x4ed   : > { %v3440_v50 = vld [vmem:[#allocation2 + $0x57] sm:$0xff]  ;;  %3426 = vst [vmem:[#allocation2 + $0x68] sm:$0xff] %v3410_v53  ;;  %v3411_v58 = vmax.f32 %v3387_v41, 0.0  ;;  %v7775_v47 = vadd.f32 %v7774_v46, %v7773_v54  ;;  %v7776_v9 = vpop.f32.mrb[126].mxu0  ;;  %v6873_v51 = vpack.c.bf16 %v3471_v31, %v3470_v43  ;;  %7887 = vmatprep.subr.bf16.mxu0 %v8846_v15 }
 0x4ee   : > { %3938 = vst [vmem:[#allocation2 + $0x50] sm:$0xff] %v9554_v52  ;;  %v7777_v45 = vpop.f32.mrb[127].mxu0  ;;  %v3441_v57 = vld [vmem:[#allocation2 + $0x5f] sm:$0xff]  ;;  %v3947_v41 = vld [vmem:[#allocation2 + $0x17] sm:$0xff] }
 0x4ef   : > { %v3472_v4 = vld [vmem:[#allocation2 + $0x59] sm:$0xff]  ;;  %3427 = vst [vmem:[#allocation2 + $0x70] sm:$0xff] %v3411_v58  ;;  %v3295_v19 = vadd.f32 %v7775_v47, %v10529_v18  ;;  %v7778_v35 = vadd.f32 %v7777_v45, %v7776_v9  ;;  %8427 = vmatprep.mubr.msk.bf16.mxu0 %vm9514_vm5, %v6873_v51  ;;  %v6852_v39 = vpack.c.bf16 %v3441_v57, %v3440_v50  ;;  %v3984_v15 = vld [vmem:[#allocation2 + $0x41] sm:$0xff] }
 0x4f0   : > { %v3562_v6 = vpack.c.bf16 %v3411_v58, %v3410_v53  ;;  %3939 = vst [vmem:[#allocation2 + $0x58] sm:$0xff] %v9531_v36  ;;  %7888 = vmatpush3.bf16.msra.mxu0 %v8848_v40  ;;  %v8850_v52 = vld [vmem:[%s11329_s6 + $0x4b8] sm:$0xff]   ;;  %v3949_v9 = vld [vmem:[#allocation2 + $0x27] sm:$0xff] }
 0x4f1   : > { %v3392_v10 = vadd.f32 %v10558_v7, %v3295_v19  ;;  %v3298_v61 = vadd.f32 %v7778_v35, %v10529_v18  ;;  %6853 = vmatmul.mubr.msk.bf16.gmra.mrb[148].mxu1 %vm9508_vm4, %v6852_v39  ;;  %7889 = vmatprep.subr.bf16.mxu0 %v8849_v28  ;;  %v3983_v54 = vld [vmem:[#allocation2 + $0x39] sm:$0xff] }
 0x4f2   : > { %3799 = vmatprep.mubr.bf16.mxu1 %v3562_v6  ;;  %v6991_v31 = vpack.c.bf16 %v3984_v15, %v3983_v54  ;;  %v3951_v39 = vld [vmem:[#allocation2 + $0x37] sm:$0xff] }
 0x4f3   : > { %v3412_v34 = vmax.f32 %v3392_v10, 0.0  ;;  %v3395_v49 = vadd.f32 %v10565_v22, %v3298_v61  ;;  %v3953_v61 = vld [vmem:[#allocation2 + $0x47] sm:$0xff]  ;;  %v8870_v5 = vld [vmem:[%s11329_s6 + $0x5b8] sm:$0xff]  }
 0x4f4   : > { %v3473_v13 = vld [vmem:[#allocation2 + $0x61] sm:$0xff]  ;;  %7890 = vmatpush3.bf16.msra.mxu0 %v8850_v52  ;;  %v8876_v25 = vld [vmem:[%s11329_s6 + $0x5f8] sm:$0xff]  }
 0x4f5   : > { %v3442_v33 = vld [vmem:[#allocation2 + $0x67] sm:$0xff]  ;;  %3428 = vst [vmem:[#allocation2 + $0x78] sm:$0xff] %v3412_v34  ;;  %v3413_v36 = vmax.f32 %v3395_v49, 0.0  ;;  %v6876_v23 = vpack.c.bf16 %v3473_v13, %v3472_v4  ;;  %v3954_v10 = vld [vmem:[#allocation2 + $0x4f] sm:$0xff] }
 0x4f6   : > { %3940 = vst [vmem:[#allocation2 + $0x60] sm:$0xff] %v9549_v48  ;;  %v3443_v56 = vld [vmem:[#allocation2 + $0x6f] sm:$0xff] }
 0x4f7   : > { %v3474_v7 = vld [vmem:[#allocation2 + $0x69] sm:$0xff]  ;;  %3429 = vst [vmem:[#allocation2 + $0x80] sm:$0xff] %v3413_v36  ;;  %8428 = vmatmul.mubr.msk.bf16.gmra.mrb[136].mxu0 %vm9514_vm5, %v6876_v23  ;;  %v6855_v18 = vpack.c.bf16 %v3443_v56, %v3442_v33  ;;  %v3565_v42 = vpack.c.bf16 %v3413_v36, %v3412_v34  ;;  %v3978_v48 = vld [vmem:[#allocation2 + $0x11] sm:$0xff] }
 0x4f8   : > { %3941 = vst [vmem:[#allocation2 + $0x68] sm:$0xff] %v9584_v21  ;;  %v3977_v21 = vld [vmem:[#allocation2 + $0x9] sm:$0xff]  ;;  %v3986_v53 = vld [vmem:[#allocation2 + $0x51] sm:$0xff] }
 0x4f9   : > { %6856 = vmatmul.mubr.msk.bf16.gmra.mrb[152].mxu1 %vm9508_vm4, %v6855_v18  ;;  %v6982_v59 = vpack.c.bf16 %v3978_v48, %v3977_v21  ;;  %v3985_v50 = vld [vmem:[#allocation2 + $0x49] sm:$0xff]  ;;  %v3955_v49 = vld [vmem:[#allocation2 + $0x57] sm:$0xff]  ;;  %v8854_v18 = vld [vmem:[%s11329_s6 + $0x540] sm:$0xff]  }
 0x4fa   : > { %3807 = vmatprep.mubr.bf16.mxu1 %v3565_v42  ;;  %v6994_v40 = vpack.c.bf16 %v3986_v53, %v3985_v50  ;;  %v8856_v42 = vld [vmem:[%s11329_s6 + $0x548] sm:$0xff]   ;;  %v8861_v48 = vld [vmem:[%s11329_s6 + $0x558] sm:$0xff]   ;;  %v8862_v21 = vld [vmem:[%s11329_s6 + $0x5d0] sm:$0xff]  }
 0x4fc   : > { %v3475_v22 = vld [vmem:[#allocation2 + $0x71] sm:$0xff] }
 0x4fd   : > { %v3444_v63 = vld [vmem:[#allocation2 + $0x77] sm:$0xff]  ;;  %v6879_v62 = vpack.c.bf16 %v3475_v22, %v3474_v7  ;;  %v3956_v34 = vld [vmem:[#allocation2 + $0x5f] sm:$0xff] }
 0x4fe   : > { %3942 = vst [vmem:[#allocation2 + $0x70] sm:$0xff] %v9595_v29  ;;  %v3445_v12 = vld [vmem:[#allocation2 + $0x7f] sm:$0xff]  ;;  %v3946_v29 = vld [vmem:[#allocation2 + $0xf] sm:$0xff]  ;;  %v6973_v13 = vpack.c.bf16 %v3956_v34, %v3955_v49 }
 0x4ff   : > { %v3476_v60 = vld [vmem:[#allocation2 + $0x79] sm:$0xff]  ;;  %v3477_v3 = vld [vmem:[#allocation2 + $0x81] sm:$0xff]  ;;  %8431 = vmatprep.mubr.msk.bf16.mxu0 %vm9514_vm5, %v6879_v62  ;;  %v6858_v14 = vpack.c.bf16 %v3445_v12, %v3444_v63  ;;  %v6958_v17 = vpack.c.bf16 %v3946_v29, %v3945_v38  ;;  %v8858_v22 = vld [vmem:[%s11329_s6 + $0x590] sm:$0xff]  }
 0x500   : > { %v6882_v43 = vpack.c.bf16 %v3477_v3, %v3476_v60  ;;  %3943 = vst [vmem:[#allocation2 + $0x78] sm:$0xff] %v9577_v8  ;;  %3944 = vst [vmem:[#allocation2 + $0x80] sm:$0xff] %v9590_v26  ;;  %v3979_v8 = vld [vmem:[#allocation2 + $0x19] sm:$0xff]  ;;  %v3988_v58 = vld [vmem:[#allocation2 + $0x61] sm:$0xff] }
 0x501   : > { %6859 = vmatmul.mubr.msk.bf16.gmra.mrb[156].mxu1 %vm9508_vm4, %v6858_v14  ;;  %v6985_v26 = vpack.c.bf16 %v3980_v16, %v3979_v8  ;;  %v3987_v51 = vld [vmem:[#allocation2 + $0x59] sm:$0xff]  ;;  %v3957_v36 = vld [vmem:[#allocation2 + $0x67] sm:$0xff]  ;;  %v8859_v63 = vld [vmem:[%s11329_s6 + $0x550] sm:$0xff]  }
 0x502   : > { %8432 = vmatmul.mubr.msk.bf16.gmra.mrb[140].mxu0 %vm9514_vm5, %v6882_v43  ;;  %8451 = vmatprep.mubr.msk.bf16.mxu1 %vm9514_vm5, %v6982_v59  ;;  %v6997_v45 = vpack.c.bf16 %v3988_v58, %v3987_v51  ;;  %v8860_v62 = vld [vmem:[%s11329_s6 + $0x598] sm:$0xff]   ;;  %v8857_v12 = vld [vmem:[%s11329_s6 + $0x5c8] sm:$0xff]   ;;  %v8863_v60 = vld [vmem:[%s11329_s6 + $0x5a0] sm:$0xff]  }
 0x503   : > { %4258 = vmatprep.mubr.bf16.mxu0 %v11466_v37  ;;  %v3948_v37 = vld [vmem:[#allocation2 + $0x1f] sm:$0xff]  ;;  %v8865_v14 = vld [vmem:[%s11329_s6 + $0x5a8] sm:$0xff]   ;;  %v8868_v59 = vld [vmem:[%s11329_s6 + $0x5b0] sm:$0xff]  }
 0x504   : > { %v6961_v46 = vpack.c.bf16 %v3948_v37, %v3947_v41  ;;  %v8864_v3 = vld [vmem:[%s11329_s6 + $0x560] sm:$0xff]   ;;  %v8866_v43 = vld [vmem:[%s11329_s6 + $0x568] sm:$0xff]   ;;  %v8869_v29 = vld [vmem:[%s11329_s6 + $0x570] sm:$0xff]  }
 0x505   : > { %v3989_v57 = vld [vmem:[#allocation2 + $0x69] sm:$0xff]  ;;  %v8867_v16 = vld [vmem:[%s11329_s6 + $0x5d8] sm:$0xff]   ;;  %v8872_v8 = vld [vmem:[%s11329_s6 + $0x5e0] sm:$0xff]  }
 0x506   : > { %v3958_v33 = vld [vmem:[#allocation2 + $0x6f] sm:$0xff]  ;;  %v8871_v38 = vld [vmem:[%s11329_s6 + $0x578] sm:$0xff]   ;;  %v8880_v37 = vld [vmem:[%s11329_s6 + $0x640] sm:$0xff]  }
 0x507   : > { %v3990_v47 = vld [vmem:[#allocation2 + $0x71] sm:$0xff]  ;;  %v3991_v19 = vld [vmem:[#allocation2 + $0x79] sm:$0xff]  ;;  %v3992_v35 = vld [vmem:[#allocation2 + $0x81] sm:$0xff]  ;;  %v6976_v23 = vpack.c.bf16 %v3958_v33, %v3957_v36 }
 0x508   : > { %v7000_v4 = vpack.c.bf16 %v3990_v47, %v3989_v57  ;;  %v7003_v52 = vpack.c.bf16 %v3992_v35, %v3991_v19  ;;  %v3960_v56 = vld [vmem:[#allocation2 + $0x7f] sm:$0xff] }
 0x509   : > { %8452 = vmatmul.mubr.msk.bf16.vlgmr.msra.gmra.mrb[160].mxu1 %vm9514_vm5, %v6985_v26  ;;  %v8875_v26 = vld [vmem:[%s11329_s6 + $0x5f0] sm:$0xff]  }
 0x50a   : > { %6959 = vmatmul.mubr.msk.bf16.vlgmr.msra.gmra.mrb[144].mxu0 %vm9508_vm4, %v6958_v17  ;;  %8455 = vmatprep.mubr.msk.bf16.mxu1 %vm9514_vm5, %v6988_v1  ;;  %v8873_v17 = vld [vmem:[%s11329_s6 + $0x5e8] sm:$0xff]   ;;  %v10809_v1 = vld [vmem:[%s11329_s6 + $0x680] sm:$0xff]  }
 0x50b   : > { %4266 = vmatprep.mubr.bf16.mxu0 %v11467_v32  ;;  %v3950_v32 = vld [vmem:[#allocation2 + $0x2f] sm:$0xff] }
 0x50c   : > { %v6964_v28 = vpack.c.bf16 %v3950_v32, %v3949_v9  ;;  %v10815_v9 = vld [vmem:[#allocation10 + $0x5] ss:$0 sm:$0xff] }
 0x511   : > { %8456 = vmatmul.mubr.msk.bf16.gmra.mrb[164].mxu1 %vm9514_vm5, %v6991_v31 }
 0x512   : > { %6962 = vmatmul.mubr.msk.bf16.gmra.mrb[148].mxu0 %vm9508_vm4, %v6961_v46  ;;  %8459 = vmatprep.mubr.msk.bf16.mxu1 %vm9514_vm5, %v6994_v40 }
 0x513   : > { %4274 = vmatprep.mubr.bf16.mxu0 %v11468_v24  ;;  %v3952_v24 = vld [vmem:[#allocation2 + $0x3f] sm:$0xff] }
 0x514   : > { %v6967_v6 = vpack.c.bf16 %v3952_v24, %v3951_v39 }
 0x519   : > { %8460 = vmatmul.mubr.msk.bf16.gmra.mrb[168].mxu1 %vm9514_vm5, %v6997_v45 }
 0x51a   : > { %6965 = vmatmul.mubr.msk.bf16.gmra.mrb[152].mxu0 %vm9508_vm4, %v6964_v28  ;;  %8463 = vmatprep.mubr.msk.bf16.mxu1 %vm9514_vm5, %v7000_v4 }
 0x51b   : > { %4282 = vmatprep.mubr.bf16.mxu0 %v11469_v30  ;;  %v6970_v30 = vpack.c.bf16 %v3954_v10, %v3953_v61  ;;  %v11474_v10 = vld [vmem:[#allocation25_spill] sm:$0xff] }
 0x521   : > { %8464 = vmatmul.mubr.msk.bf16.gmra.mrb[172].mxu1 %vm9514_vm5, %v7003_v52 }
 0x522   : > { %6968 = vmatmul.mubr.msk.bf16.gmra.mrb[156].mxu0 %vm9508_vm4, %v6967_v6 }
 0x523   : > { %4290 = vmatprep.mubr.bf16.mxu0 %v11470_v44  ;;  %v3959_v44 = vld [vmem:[#allocation2 + $0x77] sm:$0xff] }
 0x524   : > { %v6979_v7 = vpack.c.bf16 %v3960_v56, %v3959_v44  ;;  %v11476_v56 = vld [vmem:[#allocation28_spill] sm:$0xff] }
 0x52a   : > { %6971 = vmatmul.mubr.msk.bf16.gmra.mrb[160].mxu0 %vm9508_vm4, %v6970_v30 }
 0x52b   : > { %4298 = vmatprep.mubr.bf16.mxu0 %v11471_v55  ;;  %v8853_v55 = vld [vmem:[%s11329_s6 + $0x580] sm:$0xff]  }
 0x52c   : > { %7955 = vmatprep.subr.bf16.mxu1 %v8853_v55 }
 0x52d   : > { %7956 = vmatpush3.bf16.msra.mxu1 %v8854_v18 }
 0x532   : > { %6974 = vmatmul.mubr.msk.bf16.gmra.mrb[164].mxu0 %vm9508_vm4, %v6973_v13  ;;  %v11475_v13 = vld [vmem:[#allocation22_spill] sm:$0xff] }
 0x533   : > { %4306 = vmatprep.mubr.bf16.mxu0 %v11472_v2  ;;  %v8852_v2 = vld [vmem:[%s11329_s6 + $0x5c0] sm:$0xff]  }
 0x534   : > { %8467 = vmatprep.subr.bf16.mxu0 %v8852_v2 }
 0x535   : > { %8468 = vmatpush3.bf16.msra.mxu0 %v8852_v2  ;;  %v11477_v2 = vld [vmem:[#allocation24_spill] sm:$0xff] }
 0x536   : > { %8469 = vmatprep.subr.bf16.mxu0 %v8857_v12 }
 0x539   : > { %8470 = vmatpush3.bf16.msra.mxu0 %v8857_v12 }
 0x53a   : > { %6977 = vmatmul.mubr.msk.bf16.gmra.mrb[168].mxu0 %vm9508_vm4, %v6976_v23  ;;  %8471 = vmatprep.subr.bf16.mxu0 %v8862_v21 }
 0x53b   : > { %4314 = vmatprep.mubr.bf16.mxu0 %v11473_v0  ;;  %v8855_v0 = vld [vmem:[%s11329_s6 + $0x588] sm:$0xff]  }
 0x53c   : > { %7957 = vmatprep.subr.bf16.mxu1 %v8855_v0 }
 0x53d   : > { %7958 = vmatpush3.bf16.msra.mxu1 %v8856_v42  ;;  %8472 = vmatpush3.bf16.msra.mxu0 %v8862_v21 }
 0x53e   : > { %7959 = vmatprep.subr.bf16.mxu1 %v8858_v22  ;;  %8473 = vmatprep.subr.bf16.mxu0 %v8867_v16 }
 0x541   : > { %7960 = vmatpush3.bf16.msra.mxu1 %v8859_v63  ;;  %8474 = vmatpush3.bf16.msra.mxu0 %v8867_v16 }
 0x542   : > { %6980 = vmatmul.mubr.msk.bf16.gmra.mrb[172].mxu0 %vm9508_vm4, %v6979_v7  ;;  %7961 = vmatprep.subr.bf16.mxu1 %v8860_v62 }
 0x543   : > { %8475 = vmatprep.subr.bf16.mxu0 %v8872_v8 }
 0x545   : > { %7962 = vmatpush3.bf16.msra.mxu1 %v8861_v48  ;;  %8476 = vmatpush3.bf16.msra.mxu0 %v8872_v8 }
 0x546   : > { %7963 = vmatprep.subr.bf16.mxu1 %v8863_v60  ;;  %8477 = vmatprep.subr.bf16.mxu0 %v8873_v17 }
 0x549   : > { %7964 = vmatpush3.bf16.msra.mxu1 %v8864_v3  ;;  %8478 = vmatpush3.bf16.msra.mxu0 %v8873_v17 }
 0x54a   : > { %7965 = vmatprep.subr.bf16.mxu1 %v8865_v14  ;;  %8479 = vmatprep.subr.bf16.mxu0 %v8875_v26 }
 0x54d   : > { %7966 = vmatpush3.bf16.msra.mxu1 %v8866_v43  ;;  %8480 = vmatpush3.bf16.msra.mxu0 %v8875_v26 }
 0x54e   : > { %7967 = vmatprep.subr.bf16.mxu1 %v8868_v59  ;;  %8481 = vmatprep.subr.bf16.mxu0 %v8876_v25 }
 0x551   : > { %7968 = vmatpush3.bf16.msra.mxu1 %v8869_v29  ;;  %8482 = vmatpush3.bf16.msra.mxu0 %v8876_v25 }
 0x552   : > { %7969 = vmatprep.subr.bf16.mxu1 %v8870_v5  ;;  %8035 = vmatprep.subr.bf16.mxu0 %v8880_v37  ;;  %v11478_v37 = vld [vmem:[#allocation29_spill] sm:$0xff] }
 0x555   : > { %7970 = vmatpush3.bf16.msra.mxu1 %v8871_v38 }
 0x556   : > { %8499 = vmatprep.subr.bf16.mxu1 %v10809_v1 }
 0x59c   : > { %v7811_v15 = vpop.f32.mrb[128].mxu1 }
 0x59d   : > { %v7812_v53 = vpop.f32.mrb[129].mxu1 }
 0x59e   : > { %v7813_v41 = vadd.f32 %v7812_v53, %v7811_v15  ;;  %v7814_v54 = vpop.f32.mrb[130].mxu1 }
 0x59f   : > { %v7815_v46 = vpop.f32.mrb[131].mxu1 }
 0x5a0   : > { %v7816_v31 = vadd.f32 %v7815_v46, %v7814_v54  ;;  %v3754_v57 = vadd.f32 %v7813_v41, %v10815_v9  ;;  %v11479_v46 = vld [vmem:[#allocation35_spill] sm:$0xff] }
 0x5a2   : > { %v3757_v52 = vadd.f32 %v7816_v31, %v10815_v9 }
 0x5a4   : > { %v7817_v50 = vpop.f32.mrb[132].mxu1 }
 0x5a5   : > { %v7818_v40 = vpop.f32.mrb[133].mxu1 }
 0x5a6   : > { %v7819_v32 = vadd.f32 %v7818_v40, %v7817_v50  ;;  %v7820_v58 = vpop.f32.mrb[134].mxu1  ;;  %v11480_v40 = vld [vmem:[#allocation32_spill] sm:$0xff] }
 0x5a7   : > { %v7821_v47 = vpop.f32.mrb[135].mxu1 }
 0x5a8   : > { %v7822_v51 = vadd.f32 %v7821_v47, %v7820_v58  ;;  %v3762_v28 = vadd.f32 %v7819_v32, %v10815_v9 }
 0x5aa   : > { %v8421_v45 = vpop.f32.mrb[128].mxu0  ;;  %v3765_v4 = vadd.f32 %v7822_v51, %v10815_v9 }
 0x5ab   : > { %v3859_v24 = vadd.f32 %v8421_v45, %v3762_v28  ;;  %v3850_v19 = vpop.f32.mrb[129].mxu0 }
 0x5ac   : > { %v3851_v35 = vadd.f32 %v3850_v19, %v3754_v57  ;;  %v7823_v39 = vpop.f32.mrb[136].mxu1  ;;  %v8422_v6 = vpop.f32.mrb[130].mxu0 }
 0x5ad   : > { %v3915_v61 = vadd.f32 %v3859_v24, %v11474_v10  ;;  %v3862_v30 = vadd.f32 %v8422_v6, %v3765_v4  ;;  %v7824_v34 = vpop.f32.mrb[137].mxu1  ;;  %v3853_v49 = vpop.f32.mrb[131].mxu0 }
 0x5ae   : > { %v3913_v33 = vadd.f32 %v3851_v35, %v11475_v13  ;;  %v7825_v36 = vadd.f32 %v7824_v34, %v7823_v39  ;;  %v3854_v23 = vadd.f32 %v3853_v49, %v3757_v52  ;;  %v7826_v44 = vpop.f32.mrb[138].mxu1 }
 0x5af   : > { %5982 = vst [vmem:[%s9330_s24 + $0x48] sm:$0xff] %v3915_v61  ;;  %v3916_v7 = vadd.f32 %v3862_v30, %v11476_v56  ;;  %v7827_v55 = vpop.f32.mrb[139].mxu1 }
 0x5b0   : > { %5974 = vst [vmem:[%s9330_s24 + $0x8] sm:$0xff] %v3913_v33  ;;  %v3914_v18 = vadd.f32 %v3854_v23, %v11477_v2  ;;  %v7828_v0 = vadd.f32 %v7827_v55, %v7826_v44  ;;  %v3770_v14 = vadd.f32 %v7825_v36, %v10815_v9  ;;  %v11481_v33 = vld [vmem:[#allocation40_spill] sm:$0xff] }
 0x5b1   : > { %5986 = vst [vmem:[%s9330_s24 + $0x68] sm:$0xff] %v3916_v7  ;;  %v11482_v55 = vld [vmem:[#allocation36_spill] sm:$0xff] }
 0x5b2   : > { %5978 = vst [vmem:[%s9330_s24 + $0x28] sm:$0xff] %v3914_v18  ;;  %v3773_v38 = vadd.f32 %v7828_v0, %v10815_v9 }
 0x5b4   : > { %v7829_v42 = vpop.f32.mrb[140].mxu1 }
 0x5b5   : > { %v7830_v22 = vpop.f32.mrb[141].mxu1 }
 0x5b6   : > { %v7831_v63 = vadd.f32 %v7830_v22, %v7829_v42  ;;  %v7832_v62 = vpop.f32.mrb[142].mxu1 }
 0x5b7   : > { %v7833_v48 = vpop.f32.mrb[143].mxu1 }
 0x5b8   : > { %v7834_v12 = vadd.f32 %v7833_v48, %v7832_v62  ;;  %v3778_v60 = vadd.f32 %v7831_v63, %v10815_v9  ;;  %v11483_v63 = vld [vmem:[#allocation43_spill] sm:$0xff] }
 0x5ba   : > { %v8425_v3 = vpop.f32.mrb[132].mxu0  ;;  %v3781_v43 = vadd.f32 %v7834_v12, %v10815_v9  ;;  %v11484_v12 = vld [vmem:[#allocation39_spill] sm:$0xff] }
 0x5bb   : > { %v3875_v21 = vadd.f32 %v8425_v3, %v3778_v60  ;;  %v3866_v59 = vpop.f32.mrb[133].mxu0 }
 0x5bc   : > { %v3867_v29 = vadd.f32 %v3866_v59, %v3770_v14  ;;  %v7835_v16 = vpop.f32.mrb[144].mxu1  ;;  %v8426_v5 = vpop.f32.mrb[134].mxu0 }
 0x5bd   : > { %v3919_v8 = vadd.f32 %v3875_v21, %v9825_v11  ;;  %v3878_v17 = vadd.f32 %v8426_v5, %v3781_v43  ;;  %v7836_v26 = vpop.f32.mrb[145].mxu1  ;;  %v3869_v25 = vpop.f32.mrb[135].mxu0 }
 0x5be   : > { %v3917_v15 = vadd.f32 %v3867_v29, %v11478_v37  ;;  %v7837_v53 = vadd.f32 %v7836_v26, %v7835_v16  ;;  %v3870_v41 = vadd.f32 %v3869_v25, %v3773_v38  ;;  %v7838_v54 = vpop.f32.mrb[146].mxu1 }
 0x5bf   : > { %5998 = vst [vmem:[%s9330_s24 + $0xc8] sm:$0xff] %v3919_v8  ;;  %v3920_v31 = vadd.f32 %v3878_v17, %v11479_v46  ;;  %v7839_v50 = vpop.f32.mrb[147].mxu1 }
 0x5c0   : > { %5990 = vst [vmem:[%s9330_s24 + $0x88] sm:$0xff] %v3917_v15  ;;  %v3918_v32 = vadd.f32 %v3870_v41, %v11480_v40  ;;  %v7840_v58 = vadd.f32 %v7839_v50, %v7838_v54  ;;  %v3786_v35 = vadd.f32 %v7837_v53, %v10815_v9  ;;  %v11485_v53 = vld [vmem:[#allocation44_spill] sm:$0xff] }
 0x5c1   : > { %6002 = vst [vmem:[%s9330_s24 + $0xe8] sm:$0xff] %v3920_v31 }
 0x5c2   : > { %5994 = vst [vmem:[%s9330_s24 + $0xa8] sm:$0xff] %v3918_v32  ;;  %v3789_v49 = vadd.f32 %v7840_v58, %v10815_v9  ;;  %v11486_v58 = vld [vmem:[#allocation47_spill] sm:$0xff] }
 0x5c4   : > { %v7841_v47 = vpop.f32.mrb[148].mxu1 }
 0x5c5   : > { %v7842_v51 = vpop.f32.mrb[149].mxu1 }
 0x5c6   : > { %v7843_v28 = vadd.f32 %v7842_v51, %v7841_v47  ;;  %v7844_v45 = vpop.f32.mrb[150].mxu1  ;;  %v11487_v51 = vld [vmem:[#allocation48_spill] sm:$0xff] }
 0x5c7   : > { %v7845_v57 = vpop.f32.mrb[151].mxu1 }
 0x5c8   : > { %v7846_v4 = vadd.f32 %v7845_v57, %v7844_v45  ;;  %v3794_v24 = vadd.f32 %v7843_v28, %v10815_v9 }
 0x5ca   : > { %v8429_v19 = vpop.f32.mrb[136].mxu0  ;;  %v3797_v39 = vadd.f32 %v7846_v4, %v10815_v9 }
 0x5cb   : > { %v3891_v6 = vadd.f32 %v8429_v19, %v3794_v24  ;;  %v3882_v52 = vpop.f32.mrb[137].mxu0  ;;  %v10862_v19 = vld [vmem:[#allocation10 + $0x6] ss:$0 sm:$0xff] }
 0x5cc   : > { %v3883_v61 = vadd.f32 %v3882_v52, %v3786_v35  ;;  %v7847_v30 = vpop.f32.mrb[152].mxu1  ;;  %v8430_v34 = vpop.f32.mrb[138].mxu0 }
 0x5cd   : > { %v3923_v36 = vadd.f32 %v3891_v6, %v11481_v33  ;;  %v3894_v23 = vadd.f32 %v8430_v34, %v3797_v39  ;;  %v7848_v44 = vpop.f32.mrb[153].mxu1  ;;  %v3885_v7 = vpop.f32.mrb[139].mxu0  ;;  %v11488_v39 = vld [vmem:[#allocation49_spill] sm:$0xff] }
 0x5ce   : > { %v3921_v18 = vadd.f32 %v3883_v61, %v11482_v55  ;;  %v7849_v0 = vadd.f32 %v7848_v44, %v7847_v30  ;;  %v3886_v42 = vadd.f32 %v3885_v7, %v3789_v49  ;;  %v7850_v22 = vpop.f32.mrb[154].mxu1 }
 0x5cf   : > { %6014 = vst [vmem:[%s9330_s24 + $0x148] sm:$0xff] %v3923_v36  ;;  %v3924_v62 = vadd.f32 %v3894_v23, %v11483_v63  ;;  %v7851_v48 = vpop.f32.mrb[155].mxu1 }
 0x5d0   : > { %6006 = vst [vmem:[%s9330_s24 + $0x108] sm:$0xff] %v3921_v18  ;;  %v3922_v60 = vadd.f32 %v3886_v42, %v11484_v12  ;;  %v7852_v3 = vadd.f32 %v7851_v48, %v7850_v22  ;;  %v3802_v21 = vadd.f32 %v7849_v0, %v10815_v9 }
 0x5d1   : > { %6018 = vst [vmem:[%s9330_s24 + $0x168] sm:$0xff] %v3924_v62 }
 0x5d2   : > { %6010 = vst [vmem:[%s9330_s24 + $0x128] sm:$0xff] %v3922_v60  ;;  %v3805_v17 = vadd.f32 %v7852_v3, %v10815_v9 }
 0x5d4   : > { %v7853_v14 = vpop.f32.mrb[156].mxu1 }
 0x5d5   : > { %v8433_v43 = vpop.f32.mrb[140].mxu0  ;;  %v7854_v59 = vpop.f32.mrb[157].mxu1 }
 0x5d6   : > { %v3898_v29 = vpop.f32.mrb[141].mxu0  ;;  %v7855_v16 = vadd.f32 %v7854_v59, %v7853_v14  ;;  %v7856_v38 = vpop.f32.mrb[158].mxu1 }
 0x5d7   : > { %v3899_v5 = vadd.f32 %v3898_v29, %v3802_v21  ;;  %v8434_v8 = vpop.f32.mrb[142].mxu0  ;;  %v7857_v26 = vpop.f32.mrb[159].mxu1 }
 0x5d8   : > { %v3901_v25 = vpop.f32.mrb[143].mxu0  ;;  %v3810_v15 = vadd.f32 %v7855_v16, %v10815_v9  ;;  %v7858_v54 = vadd.f32 %v7857_v26, %v7856_v38 }
 0x5d9   : > { %v3925_v41 = vadd.f32 %v3899_v5, %v11485_v53  ;;  %v3902_v31 = vadd.f32 %v3901_v25, %v3805_v17 }
 0x5da   : > { %v3907_v50 = vadd.f32 %v8433_v43, %v3810_v15  ;;  %v3813_v32 = vadd.f32 %v7858_v54, %v10815_v9 }
 0x5db   : > { %6022 = vst [vmem:[%s9330_s24 + $0x188] sm:$0xff] %v3925_v41  ;;  %v3926_v47 = vadd.f32 %v3902_v31, %v11486_v58 }
 0x5dc   : > { %v3927_v28 = vadd.f32 %v3907_v50, %v11487_v51  ;;  %v3910_v45 = vadd.f32 %v8434_v8, %v3813_v32  ;;  %v8453_v4 = vpop.f32.mrb[160].mxu1 }
 0x5dd   : > { %6026 = vst [vmem:[%s9330_s24 + $0x1a8] sm:$0xff] %v3926_v47  ;;  %v7891_v57 = vpop.f32.mrb[144].mxu0  ;;  %v4357_v35 = vpop.f32.mrb[161].mxu1 }
 0x5de   : > { %v7892_v24 = vpop.f32.mrb[145].mxu0  ;;  %6030 = vst [vmem:[%s9330_s24 + $0x1c8] sm:$0xff] %v3927_v28  ;;  %v3928_v6 = vadd.f32 %v3910_v45, %v11488_v39  ;;  %v8454_v30 = vpop.f32.mrb[162].mxu1 }
 0x5df   : > { %v7893_v52 = vadd.f32 %v7892_v24, %v7891_v57  ;;  %v7894_v61 = vpop.f32.mrb[146].mxu0  ;;  %v4360_v34 = vpop.f32.mrb[163].mxu1 }
 0x5e0   : > { %v7895_v9 = vpop.f32.mrb[147].mxu0  ;;  %6034 = vst [vmem:[%s9330_s24 + $0x1e8] sm:$0xff] %v3928_v6 }
 0x5e1   : > { %v4261_v49 = vadd.f32 %v7893_v52, %v10862_v19  ;;  %v7896_v36 = vadd.f32 %v7895_v9, %v7894_v61  ;;  %v11489_v61 = vld [vmem:[#allocation23_spill] sm:$0xff] }
 0x5e3   : > { %v4358_v23 = vadd.f32 %v4357_v35, %v4261_v49  ;;  %v4264_v44 = vadd.f32 %v7896_v36, %v10862_v19 }
 0x5e4   : > { %v10869_v42 = vpop.f32.mrb[164].mxu1 }
 0x5e5   : > { %v4420_v7 = vmax.f32 %v4358_v23, 0.0  ;;  %v4361_v18 = vadd.f32 %v4360_v34, %v4264_v44  ;;  %v7897_v0 = vpop.f32.mrb[148].mxu0  ;;  %v4373_v62 = vpop.f32.mrb[165].mxu1 }
 0x5e6   : > { %v7898_v22 = vpop.f32.mrb[149].mxu0  ;;  %v10871_v14 = vpop.f32.mrb[166].mxu1 }
 0x5e7   : > { %4436 = vst [vmem:[#allocation2 + $0x8] sm:$0xff] %v4420_v7  ;;  %v4421_v48 = vmax.f32 %v4361_v18, 0.0  ;;  %v7899_v60 = vadd.f32 %v7898_v22, %v7897_v0  ;;  %v7900_v3 = vpop.f32.mrb[150].mxu0  ;;  %v4376_v21 = vpop.f32.mrb[167].mxu1 }
 0x5e8   : > { %v7901_v43 = vpop.f32.mrb[151].mxu0 }
 0x5e9   : > { %v4566_v59 = vpack.c.bf16 %v4421_v48, %v4420_v7  ;;  %4437 = vst [vmem:[#allocation2 + $0x10] sm:$0xff] %v4421_v48  ;;  %v4269_v29 = vadd.f32 %v7899_v60, %v10862_v19  ;;  %v7902_v16 = vadd.f32 %v7901_v43, %v7900_v3 }
 0x5eb   : > { %v4366_v5 = vadd.f32 %v8453_v4, %v4269_v29  ;;  %v4272_v38 = vadd.f32 %v7902_v16, %v10862_v19  ;;  %4773 = vmatprep.mubr.bf16.mxu1 %v4566_v59 }
 0x5ec   : > { %v10875_v25 = vpop.f32.mrb[168].mxu1 }
 0x5ed   : > { %v4422_v8 = vmax.f32 %v4366_v5, 0.0  ;;  %v4369_v17 = vadd.f32 %v8454_v30, %v4272_v38  ;;  %v7903_v26 = vpop.f32.mrb[152].mxu0  ;;  %v10877_v41 = vpop.f32.mrb[169].mxu1  ;;  %v8877_v30 = vld [vmem:[%s11329_s6 + $0x688] sm:$0xff]  }
 0x5ee   : > { %v7904_v15 = vpop.f32.mrb[153].mxu0  ;;  %v10879_v32 = vpop.f32.mrb[170].mxu1  ;;  %v4452_v45 = vld [vmem:[#allocation2 + $0x7] sm:$0xff] }
 0x5ef   : > { %4438 = vst [vmem:[#allocation2 + $0x18] sm:$0xff] %v4422_v8  ;;  %v4423_v54 = vmax.f32 %v4369_v17, 0.0  ;;  %v7905_v31 = vadd.f32 %v7904_v15, %v7903_v26  ;;  %v7906_v50 = vpop.f32.mrb[154].mxu0  ;;  %v10881_v28 = vpop.f32.mrb[171].mxu1  ;;  %v11491_v15 = vld [vmem:[#allocation27_spill] sm:$0xff] }
 0x5f0   : > { %v7907_v47 = vpop.f32.mrb[155].mxu0  ;;  %v4453_v57 = vld [vmem:[#allocation2 + $0xf] sm:$0xff] }
 0x5f1   : > { %v4484_v4 = vld [vmem:[#allocation2 + $0x9] sm:$0xff]  ;;  %4439 = vst [vmem:[#allocation2 + $0x20] sm:$0xff] %v4423_v54  ;;  %v4277_v24 = vadd.f32 %v7905_v31, %v10862_v19  ;;  %v7908_v35 = vadd.f32 %v7907_v47, %v7906_v50  ;;  %v7079_v6 = vpack.c.bf16 %v4453_v57, %v4452_v45  ;;  %v4569_v52 = vpack.c.bf16 %v4423_v54, %v4422_v8  ;;  %v8879_v54 = vld [vmem:[%s11329_s6 + $0x698] sm:$0xff]  }
 0x5f2   : > { %4951 = vst [vmem:[#allocation2 + $0x8] sm:$0xff] %v11489_v61 }
 0x5f3   : > { %v4374_v9 = vadd.f32 %v4373_v62, %v4277_v24  ;;  %v4280_v34 = vadd.f32 %v7908_v35, %v10862_v19  ;;  %7080 = vmatmul.mubr.msk.bf16.vlgmr.msra.gmra.mrb[176].mxu1 %vm9508_vm4, %v7079_v6  ;;  %v8878_v62 = vld [vmem:[%s11329_s6 + $0x690] sm:$0xff]  }
 0x5f4   : > { %4781 = vmatprep.mubr.bf16.mxu1 %v4569_v52  ;;  %8500 = vmatpush3.bf16.msra.mxu1 %v10809_v1  ;;  %v10892_v44 = vpop.f32.mrb[172].mxu1 }
 0x5f5   : > { %v4424_v49 = vmax.f32 %v4374_v9, 0.0  ;;  %v4377_v36 = vadd.f32 %v4376_v21, %v4280_v34  ;;  %v7909_v23 = vpop.f32.mrb[156].mxu0  ;;  %8501 = vmatprep.subr.bf16.mxu1 %v8877_v30  ;;  %v10894_v18 = vpop.f32.mrb[173].mxu1  ;;  %v11490_v21 = vld [vmem:[#allocation26_spill] sm:$0xff] }
 0x5f6   : > { %v7910_v7 = vpop.f32.mrb[157].mxu0  ;;  %v4485_v0 = vld [vmem:[#allocation2 + $0x11] sm:$0xff]  ;;  %v10899_v1 = vpop.f32.mrb[174].mxu1  ;;  %v11492_v34 = vld [vmem:[#allocation30_spill] sm:$0xff] }
 0x5f7   : > { %v4454_v22 = vld [vmem:[#allocation2 + $0x17] sm:$0xff]  ;;  %4440 = vst [vmem:[#allocation2 + $0x28] sm:$0xff] %v4424_v49  ;;  %v4425_v48 = vmax.f32 %v4377_v36, 0.0  ;;  %v7911_v60 = vadd.f32 %v7910_v7, %v7909_v23  ;;  %v7912_v3 = vpop.f32.mrb[158].mxu0  ;;  %v7103_v43 = vpack.c.bf16 %v4485_v0, %v4484_v4  ;;  %v10902_v29 = vpop.f32.mrb[175].mxu1  ;;  %v8881_v4 = vld [vmem:[%s11329_s6 + $0x600] sm:$0xff]  }
 0x5f8   : > { %4952 = vst [vmem:[#allocation2 + $0x10] sm:$0xff] %v11490_v21  ;;  %v7913_v59 = vpop.f32.mrb[159].mxu0  ;;  %v4455_v16 = vld [vmem:[#allocation2 + $0x1f] sm:$0xff]  ;;  %8502 = vmatpush3.bf16.msra.mxu1 %v8877_v30 }
 0x5f9   : > { %v4486_v5 = vld [vmem:[#allocation2 + $0x19] sm:$0xff]  ;;  %4441 = vst [vmem:[#allocation2 + $0x30] sm:$0xff] %v4425_v48  ;;  %v4285_v38 = vadd.f32 %v7911_v60, %v10862_v19  ;;  %v7914_v8 = vadd.f32 %v7913_v59, %v7912_v3  ;;  %8483 = vmatprep.mubr.msk.bf16.mxu0 %vm9514_vm5, %v7103_v43  ;;  %v7082_v17 = vpack.c.bf16 %v4455_v16, %v4454_v22  ;;  %v8888_v60 = vld [vmem:[%s11329_s6 + $0x6a8] sm:$0xff]   ;;  %v8885_v59 = vld [vmem:[%s11329_s6 + $0x650] sm:$0xff]  }
 0x5fa   : > { %v4572_v26 = vpack.c.bf16 %v4425_v48, %v4424_v49  ;;  %4953 = vst [vmem:[#allocation2 + $0x18] sm:$0xff] %v11491_v15  ;;  %8503 = vmatprep.subr.bf16.mxu1 %v8878_v62  ;;  %v11493_v48 = vld [vmem:[#allocation31_spill] sm:$0xff]  ;;  %v8893_v15 = vld [vmem:[%s11329_s6 + $0x6b0] sm:$0xff]  }
 0x5fb   : > { %v4382_v31 = vadd.f32 %v10869_v42, %v4285_v38  ;;  %v4288_v50 = vadd.f32 %v7914_v8, %v10862_v19  ;;  %7083 = vmatmul.mubr.msk.bf16.gmra.mrb[180].mxu1 %vm9508_vm4, %v7082_v17  ;;  %v8883_v42 = vld [vmem:[%s11329_s6 + $0x6a0] sm:$0xff]   ;;  %v8884_v3 = vld [vmem:[%s11329_s6 + $0x608] sm:$0xff]  }
 0x5fc   : > { %4789 = vmatprep.mubr.bf16.mxu1 %v4572_v26  ;;  %8504 = vmatpush3.bf16.msra.mxu1 %v8878_v62 }
 0x5fd   : > { %v4426_v47 = vmax.f32 %v4382_v31, 0.0  ;;  %v4385_v45 = vadd.f32 %v10871_v14, %v4288_v50  ;;  %v7915_v57 = vpop.f32.mrb[160].mxu0  ;;  %8505 = vmatprep.subr.bf16.mxu1 %v8879_v54  ;;  %v8882_v14 = vld [vmem:[%s11329_s6 + $0x648] sm:$0xff]  }
 0x5fe   : > { %v7916_v24 = vpop.f32.mrb[161].mxu0  ;;  %v4487_v35 = vld [vmem:[#allocation2 + $0x21] sm:$0xff] }
 0x5ff   : > { %v4456_v6 = vld [vmem:[#allocation2 + $0x27] sm:$0xff]  ;;  %4442 = vst [vmem:[#allocation2 + $0x38] sm:$0xff] %v4426_v47  ;;  %v4427_v52 = vmax.f32 %v4385_v45, 0.0  ;;  %v7917_v61 = vadd.f32 %v7916_v24, %v7915_v57  ;;  %v7918_v30 = vpop.f32.mrb[162].mxu0  ;;  %v7106_v9 = vpack.c.bf16 %v4487_v35, %v4486_v5  ;;  %v8887_v45 = vld [vmem:[%s11329_s6 + $0x658] sm:$0xff]  }
 0x600   : > { %4954 = vst [vmem:[#allocation2 + $0x20] sm:$0xff] %v11492_v34  ;;  %v7919_v49 = vpop.f32.mrb[163].mxu0  ;;  %v4457_v36 = vld [vmem:[#allocation2 + $0x2f] sm:$0xff]  ;;  %8506 = vmatpush3.bf16.msra.mxu1 %v8879_v54 }
 0x601   : > { %v4488_v23 = vld [vmem:[#allocation2 + $0x29] sm:$0xff]  ;;  %4443 = vst [vmem:[#allocation2 + $0x40] sm:$0xff] %v4427_v52  ;;  %v4293_v7 = vadd.f32 %v7917_v61, %v10862_v19  ;;  %v7920_v0 = vadd.f32 %v7919_v49, %v7918_v30  ;;  %8484 = vmatmul.mubr.msk.bf16.vlgmr.msra.gmra.mrb[176].mxu0 %vm9514_vm5, %v7106_v9  ;;  %v7085_v22 = vpack.c.bf16 %v4457_v36, %v4456_v6  ;;  %v11495_v61 = vld [vmem:[#allocation34_spill] sm:$0xff] }
 0x602   : > { %v4575_v62 = vpack.c.bf16 %v4427_v52, %v4426_v47  ;;  %4955 = vst [vmem:[#allocation2 + $0x28] sm:$0xff] %v11493_v48  ;;  %8036 = vmatpush3.bf16.msra.mxu0 %v8881_v4  ;;  %8507 = vmatprep.subr.bf16.mxu1 %v8883_v42  ;;  %v8898_v30 = vld [vmem:[%s11329_s6 + $0x6b8] sm:$0xff]   ;;  %v8890_v49 = vld [vmem:[%s11329_s6 + $0x660] sm:$0xff]  }
 0x603   : > { %v4390_v43 = vadd.f32 %v10877_v41, %v4293_v7  ;;  %v4296_v21 = vadd.f32 %v7920_v0, %v10862_v19  ;;  %7086 = vmatmul.mubr.msk.bf16.gmra.mrb[184].mxu1 %vm9508_vm4, %v7085_v22  ;;  %8037 = vmatprep.subr.bf16.mxu0 %v8882_v14  ;;  %v8886_v41 = vld [vmem:[%s11329_s6 + $0x610] sm:$0xff]   ;;  %v8889_v9 = vld [vmem:[%s11329_s6 + $0x618] sm:$0xff]  }
 0x604   : > { %4797 = vmatprep.mubr.bf16.mxu1 %v4575_v62  ;;  %8508 = vmatpush3.bf16.msra.mxu1 %v8883_v42  ;;  %v8891_v62 = vld [vmem:[%s11329_s6 + $0x620] sm:$0xff]  }
 0x605   : > { %v4428_v16 = vmax.f32 %v4390_v43, 0.0  ;;  %v4393_v5 = vadd.f32 %v10881_v28, %v4296_v21  ;;  %v7921_v38 = vpop.f32.mrb[164].mxu0  ;;  %8509 = vmatprep.subr.bf16.mxu1 %v8888_v60  ;;  %v11494_v28 = vld [vmem:[#allocation33_spill] sm:$0xff] }
 0x606   : > { %v7922_v8 = vpop.f32.mrb[165].mxu0  ;;  %v4489_v17 = vld [vmem:[#allocation2 + $0x31] sm:$0xff]  ;;  %8038 = vmatpush3.bf16.msra.mxu0 %v8884_v3 }
 0x607   : > { %v4458_v26 = vld [vmem:[#allocation2 + $0x37] sm:$0xff]  ;;  %4444 = vst [vmem:[#allocation2 + $0x48] sm:$0xff] %v4428_v16  ;;  %v4429_v54 = vmax.f32 %v4393_v5, 0.0  ;;  %v7923_v31 = vadd.f32 %v7922_v8, %v7921_v38  ;;  %v7924_v50 = vpop.f32.mrb[166].mxu0  ;;  %v7109_v47 = vpack.c.bf16 %v4489_v17, %v4488_v23  ;;  %8039 = vmatprep.subr.bf16.mxu0 %v8885_v59 }
 0x608   : > { %4956 = vst [vmem:[#allocation2 + $0x30] sm:$0xff] %v11494_v28  ;;  %v7925_v57 = vpop.f32.mrb[167].mxu0  ;;  %v4459_v4 = vld [vmem:[#allocation2 + $0x3f] sm:$0xff]  ;;  %8510 = vmatpush3.bf16.msra.mxu1 %v8888_v60  ;;  %v11496_v21 = vld [vmem:[#allocation37_spill] sm:$0xff] }
 0x609   : > { %v4490_v24 = vld [vmem:[#allocation2 + $0x39] sm:$0xff]  ;;  %4445 = vst [vmem:[#allocation2 + $0x50] sm:$0xff] %v4429_v54  ;;  %v4301_v35 = vadd.f32 %v7923_v31, %v10862_v19  ;;  %v7926_v6 = vadd.f32 %v7925_v57, %v7924_v50  ;;  %8487 = vmatprep.mubr.msk.bf16.mxu0 %vm9514_vm5, %v7109_v47  ;;  %v7088_v42 = vpack.c.bf16 %v4459_v4, %v4458_v26  ;;  %v8895_v50 = vld [vmem:[%s11329_s6 + $0x670] sm:$0xff]  }
 0x60a   : > { %v4578_v52 = vpack.c.bf16 %v4429_v54, %v4428_v16  ;;  %4957 = vst [vmem:[#allocation2 + $0x38] sm:$0xff] %v11495_v61  ;;  %8040 = vmatpush3.bf16.msra.mxu0 %v8886_v41  ;;  %8511 = vmatprep.subr.bf16.mxu1 %v8893_v15  ;;  %v11497_v26 = vld [vmem:[#allocation38_spill] sm:$0xff]  ;;  %v11498_v61 = vld [vmem:[#allocation41_spill] sm:$0xff] }
 0x60b   : > { %v4398_v34 = vadd.f32 %v10875_v25, %v4301_v35  ;;  %v4304_v14 = vadd.f32 %v7926_v6, %v10862_v19  ;;  %7089 = vmatmul.mubr.msk.bf16.gmra.mrb[188].mxu1 %vm9508_vm4, %v7088_v42  ;;  %8041 = vmatprep.subr.bf16.mxu0 %v8887_v45 }
 0x60c   : > { %4805 = vmatprep.mubr.bf16.mxu1 %v4578_v52  ;;  %8512 = vmatpush3.bf16.msra.mxu1 %v8893_v15  ;;  %v8894_v15 = vld [vmem:[%s11329_s6 + $0x628] sm:$0xff]  }
 0x60d   : > { %v4430_v36 = vmax.f32 %v4398_v34, 0.0  ;;  %v4401_v23 = vadd.f32 %v10879_v32, %v4304_v14  ;;  %v7927_v7 = vpop.f32.mrb[168].mxu0  ;;  %8513 = vmatprep.subr.bf16.mxu1 %v8898_v30  ;;  %v8892_v32 = vld [vmem:[%s11329_s6 + $0x668] sm:$0xff]  }
 0x60e   : > { %v7928_v0 = vpop.f32.mrb[169].mxu0  ;;  %v4491_v22 = vld [vmem:[#allocation2 + $0x41] sm:$0xff]  ;;  %8042 = vmatpush3.bf16.msra.mxu0 %v8889_v9 }
 0x60f   : > { %v4460_v25 = vld [vmem:[#allocation2 + $0x47] sm:$0xff]  ;;  %4446 = vst [vmem:[#allocation2 + $0x58] sm:$0xff] %v4430_v36  ;;  %v4431_v48 = vmax.f32 %v4401_v23, 0.0  ;;  %v7929_v60 = vadd.f32 %v7928_v0, %v7927_v7  ;;  %v7930_v3 = vpop.f32.mrb[170].mxu0  ;;  %v7112_v43 = vpack.c.bf16 %v4491_v22, %v4490_v24  ;;  %8043 = vmatprep.subr.bf16.mxu0 %v8890_v49  ;;  %v11499_v7 = vld [vmem:[#allocation42_spill] sm:$0xff] }
 0x610   : > { %4958 = vst [vmem:[#allocation2 + $0x40] sm:$0xff] %v11496_v21  ;;  %v7931_v59 = vpop.f32.mrb[171].mxu0  ;;  %v4461_v16 = vld [vmem:[#allocation2 + $0x4f] sm:$0xff]  ;;  %8514 = vmatpush3.bf16.msra.mxu1 %v8898_v30  ;;  %v8899_v0 = vld [vmem:[%s11329_s6 + $0x638] sm:$0xff]  }
 0x611   : > { %v4492_v5 = vld [vmem:[#allocation2 + $0x49] sm:$0xff]  ;;  %4447 = vst [vmem:[#allocation2 + $0x60] sm:$0xff] %v4431_v48  ;;  %v4309_v38 = vadd.f32 %v7929_v60, %v10862_v19  ;;  %v7932_v41 = vadd.f32 %v7931_v59, %v7930_v3  ;;  %8488 = vmatmul.mubr.msk.bf16.gmra.mrb[180].mxu0 %vm9514_vm5, %v7112_v43  ;;  %v7091_v8 = vpack.c.bf16 %v4461_v16, %v4460_v25 }
 0x612   : > { %v4581_v17 = vpack.c.bf16 %v4431_v48, %v4430_v36  ;;  %4959 = vst [vmem:[#allocation2 + $0x48] sm:$0xff] %v11497_v26  ;;  %8044 = vmatpush3.bf16.msra.mxu0 %v8891_v62 }
 0x613   : > { %v4406_v54 = vadd.f32 %v10894_v18, %v4309_v38  ;;  %v4312_v31 = vadd.f32 %v7932_v41, %v10862_v19  ;;  %7092 = vmatmul.mubr.msk.bf16.gmra.mrb[192].mxu1 %vm9508_vm4, %v7091_v8  ;;  %8045 = vmatprep.subr.bf16.mxu0 %v8892_v32  ;;  %v8896_v18 = vld [vmem:[%s11329_s6 + $0x630] sm:$0xff]   ;;  %v11502_v8 = vld [vmem:[#allocation50_spill] sm:$0xff] }
 0x614   : > { %4813 = vmatprep.mubr.bf16.mxu1 %v4581_v17  ;;  %v11500_v32 = vld [vmem:[#allocation45_spill] sm:$0xff] }
 0x615   : > { %v4432_v47 = vmax.f32 %v4406_v54, 0.0  ;;  %v4409_v28 = vadd.f32 %v10902_v29, %v4312_v31  ;;  %v7933_v45 = vpop.f32.mrb[172].mxu0  ;;  %v8897_v29 = vld [vmem:[%s11329_s6 + $0x678] sm:$0xff]  }
 0x616   : > { %v7934_v57 = vpop.f32.mrb[173].mxu0  ;;  %v4493_v4 = vld [vmem:[#allocation2 + $0x51] sm:$0xff]  ;;  %8046 = vmatpush3.bf16.msra.mxu0 %v8894_v15 }
 0x617   : > { %v4462_v24 = vld [vmem:[#allocation2 + $0x57] sm:$0xff]  ;;  %4448 = vst [vmem:[#allocation2 + $0x68] sm:$0xff] %v4432_v47  ;;  %v4433_v35 = vmax.f32 %v4409_v28, 0.0  ;;  %v7935_v6 = vadd.f32 %v7934_v57, %v7933_v45  ;;  %v7936_v42 = vpop.f32.mrb[174].mxu0  ;;  %v7115_v52 = vpack.c.bf16 %v4493_v4, %v4492_v5  ;;  %8047 = vmatprep.subr.bf16.mxu0 %v8895_v50  ;;  %v11504_v28 = vld [vmem:[#allocation52_spill] sm:$0xff] }
 0x618   : > { %4960 = vst [vmem:[#allocation2 + $0x50] sm:$0xff] %v11498_v61  ;;  %v7937_v30 = vpop.f32.mrb[175].mxu0  ;;  %v4463_v9 = vld [vmem:[#allocation2 + $0x5f] sm:$0xff]  ;;  %v5000_v17 = vld [vmem:[#allocation2 + $0x11] sm:$0xff]  ;;  %v4999_v45 = vld [vmem:[#allocation2 + $0x9] sm:$0xff] }
 0x619   : > { %v4494_v34 = vld [vmem:[#allocation2 + $0x59] sm:$0xff]  ;;  %4449 = vst [vmem:[#allocation2 + $0x70] sm:$0xff] %v4433_v35  ;;  %v4317_v14 = vadd.f32 %v7935_v6, %v10862_v19  ;;  %v7938_v49 = vadd.f32 %v7937_v30, %v7936_v42  ;;  %8491 = vmatprep.mubr.msk.bf16.mxu0 %vm9514_vm5, %v7115_v52  ;;  %v7094_v36 = vpack.c.bf16 %v4463_v9, %v4462_v24  ;;  %v4968_v24 = vld [vmem:[#allocation2 + $0xf] sm:$0xff]  ;;  %v4967_v6 = vld [vmem:[#allocation2 + $0x7] sm:$0xff] }
 0x61a   : > { %v4584_v23 = vpack.c.bf16 %v4433_v35, %v4432_v47  ;;  %4961 = vst [vmem:[#allocation2 + $0x58] sm:$0xff] %v11499_v7  ;;  %8048 = vmatpush3.bf16.msra.mxu0 %v8896_v18  ;;  %v11501_v5 = vld [vmem:[#allocation46_spill] sm:$0xff]  ;;  %v11503_v47 = vld [vmem:[#allocation51_spill] sm:$0xff]  ;;  %v7224_v57 = vpack.c.bf16 %v5000_v17, %v4999_v45  ;;  %v11505_v4 = vld [vmem:[#allocation53_spill] sm:$0xff]  ;;  %v7200_v52 = vpack.c.bf16 %v4968_v24, %v4967_v6 }
 0x61b   : > { %v4414_v22 = vadd.f32 %v10892_v44, %v4317_v14  ;;  %v4320_v25 = vadd.f32 %v7938_v49, %v10862_v19  ;;  %7095 = vmatmul.mubr.msk.bf16.gmra.mrb[196].mxu1 %vm9508_vm4, %v7094_v36  ;;  %8049 = vmatprep.subr.bf16.mxu0 %v8897_v29  ;;  %v5002_v18 = vld [vmem:[#allocation2 + $0x21] sm:$0xff]  ;;  %v5004_v35 = vld [vmem:[#allocation2 + $0x31] sm:$0xff]  ;;  %v5001_v42 = vld [vmem:[#allocation2 + $0x19] sm:$0xff] }
 0x61c   : > { %4821 = vmatprep.mubr.bf16.mxu1 %v4584_v23  ;;  %v7227_v61 = vpack.c.bf16 %v5002_v18, %v5001_v42  ;;  %v5003_v29 = vld [vmem:[#allocation2 + $0x29] sm:$0xff]  ;;  %v11506_v9 = vld [vmem:[#allocation54_spill] sm:$0xff] }
 0x61d   : > { %v4434_v62 = vmax.f32 %v4414_v22, 0.0  ;;  %v4417_v48 = vadd.f32 %v10899_v1, %v4320_v25  ;;  %v7230_v30 = vpack.c.bf16 %v5004_v35, %v5003_v29  ;;  %v5006_v14 = vld [vmem:[#allocation2 + $0x41] sm:$0xff]  ;;  %v4969_v36 = vld [vmem:[#allocation2 + $0x17] sm:$0xff]  ;;  %v11512_v35 = vld [vmem:[#allocation60_spill] sm:$0xff] }
 0x61e   : > { %v4495_v60 = vld [vmem:[#allocation2 + $0x61] sm:$0xff]  ;;  %8050 = vmatpush3.bf16.msra.mxu0 %v8899_v0  ;;  %v5005_v23 = vld [vmem:[#allocation2 + $0x39] sm:$0xff] }
 0x61f   : > { %v4464_v3 = vld [vmem:[#allocation2 + $0x67] sm:$0xff]  ;;  %4450 = vst [vmem:[#allocation2 + $0x78] sm:$0xff] %v4434_v62  ;;  %v4435_v43 = vmax.f32 %v4417_v48, 0.0  ;;  %v7118_v21 = vpack.c.bf16 %v4495_v60, %v4494_v34  ;;  %v4970_v34 = vld [vmem:[#allocation2 + $0x1f] sm:$0xff]  ;;  %v7233_v0 = vpack.c.bf16 %v5006_v14, %v5005_v23  ;;  %v4972_v48 = vld [vmem:[#allocation2 + $0x2f] sm:$0xff] }
 0x620   : > { %4962 = vst [vmem:[#allocation2 + $0x60] sm:$0xff] %v11500_v32  ;;  %v4465_v59 = vld [vmem:[#allocation2 + $0x6f] sm:$0xff]  ;;  %v7203_v7 = vpack.c.bf16 %v4970_v34, %v4969_v36  ;;  %v8901_v29 = vld [vmem:[%s11329_s6 + $0x6c0] sm:$0xff]   ;;  %v8909_v23 = vld [vmem:[%s11329_s6 + $0x6d8] sm:$0xff]  }
 0x621   : > { %v4496_v44 = vld [vmem:[#allocation2 + $0x69] sm:$0xff]  ;;  %4451 = vst [vmem:[#allocation2 + $0x80] sm:$0xff] %v4435_v43  ;;  %8492 = vmatmul.mubr.msk.bf16.gmra.mrb[184].mxu0 %vm9514_vm5, %v7118_v21  ;;  %v7097_v19 = vpack.c.bf16 %v4465_v59, %v4464_v3  ;;  %v4587_v16 = vpack.c.bf16 %v4435_v43, %v4434_v62  ;;  %v5008_v49 = vld [vmem:[#allocation2 + $0x51] sm:$0xff]  ;;  %v8903_v36 = vld [vmem:[%s11329_s6 + $0x740] sm:$0xff]  }
 0x622   : > { %4963 = vst [vmem:[#allocation2 + $0x68] sm:$0xff] %v11501_v5  ;;  %v5007_v22 = vld [vmem:[#allocation2 + $0x49] sm:$0xff]  ;;  %v4974_v5 = vld [vmem:[#allocation2 + $0x3f] sm:$0xff]  ;;  %8531 = vmatprep.subr.bf16.mxu0 %v8903_v36 }
 0x623   : > { %7098 = vmatmul.mubr.msk.bf16.gmra.mrb[200].mxu1 %vm9508_vm4, %v7097_v19  ;;  %v7236_v25 = vpack.c.bf16 %v5008_v49, %v5007_v22  ;;  %v11507_v62 = vld [vmem:[#allocation55_spill] sm:$0xff]  ;;  %v8905_v34 = vld [vmem:[%s11329_s6 + $0x710] sm:$0xff]   ;;  %v8907_v49 = vld [vmem:[%s11329_s6 + $0x718] sm:$0xff]  }
 0x624   : > { %4829 = vmatprep.mubr.bf16.mxu1 %v4587_v16  ;;  %v4971_v43 = vld [vmem:[#allocation2 + $0x27] sm:$0xff]  ;;  %v8906_v14 = vld [vmem:[%s11329_s6 + $0x6d0] sm:$0xff]  }
 0x625   : > { %v7206_v32 = vpack.c.bf16 %v4972_v48, %v4971_v43  ;;  %v11508_v16 = vld [vmem:[#allocation56_spill] sm:$0xff]  ;;  %v8917_v43 = vld [vmem:[%s11329_s6 + $0x758] sm:$0xff]  }
 0x626   : > { %v4497_v1 = vld [vmem:[#allocation2 + $0x71] sm:$0xff]  ;;  %v8908_v22 = vld [vmem:[%s11329_s6 + $0x748] sm:$0xff]  }
 0x627   : > { %v4466_v38 = vld [vmem:[#allocation2 + $0x77] sm:$0xff]  ;;  %v7121_v41 = vpack.c.bf16 %v4497_v1, %v4496_v44 }
 0x628   : > { %4964 = vst [vmem:[#allocation2 + $0x70] sm:$0xff] %v11502_v8  ;;  %v4467_v26 = vld [vmem:[#allocation2 + $0x7f] sm:$0xff]  ;;  %v8913_v48 = vld [vmem:[%s11329_s6 + $0x750] sm:$0xff]  }
 0x629   : > { %v4498_v15 = vld [vmem:[#allocation2 + $0x79] sm:$0xff]  ;;  %v4499_v54 = vld [vmem:[#allocation2 + $0x81] sm:$0xff]  ;;  %8495 = vmatprep.mubr.msk.bf16.mxu0 %vm9514_vm5, %v7121_v41  ;;  %v7100_v31 = vpack.c.bf16 %v4467_v26, %v4466_v38 }
 0x62a   : > { %v7124_v50 = vpack.c.bf16 %v4499_v54, %v4498_v15  ;;  %4965 = vst [vmem:[#allocation2 + $0x78] sm:$0xff] %v11503_v47  ;;  %4966 = vst [vmem:[#allocation2 + $0x80] sm:$0xff] %v11504_v28  ;;  %v5010_v60 = vld [vmem:[#allocation2 + $0x61] sm:$0xff]  ;;  %v5009_v21 = vld [vmem:[#allocation2 + $0x59] sm:$0xff] }
 0x62b   : > { %7101 = vmatmul.mubr.msk.bf16.gmra.mrb[204].mxu1 %vm9508_vm4, %v7100_v31  ;;  %v7239_v59 = vpack.c.bf16 %v5010_v60, %v5009_v21  ;;  %v4973_v41 = vld [vmem:[#allocation2 + $0x37] sm:$0xff]  ;;  %v4976_v15 = vld [vmem:[#allocation2 + $0x4f] sm:$0xff]  ;;  %v4975_v54 = vld [vmem:[#allocation2 + $0x47] sm:$0xff] }
 0x62c   : > { %8496 = vmatmul.mubr.msk.bf16.gmra.mrb[188].mxu0 %vm9514_vm5, %v7124_v50  ;;  %8515 = vmatprep.mubr.msk.bf16.mxu1 %vm9514_vm5, %v7224_v57  ;;  %v7209_v8 = vpack.c.bf16 %v4974_v5, %v4973_v41  ;;  %v11509_v26 = vld [vmem:[#allocation57_spill] sm:$0xff]  ;;  %v7212_v31 = vpack.c.bf16 %v4976_v15, %v4975_v54  ;;  %v11510_v50 = vld [vmem:[#allocation58_spill] sm:$0xff]  ;;  %v11511_v57 = vld [vmem:[#allocation59_spill] sm:$0xff] }
 0x62d   : > { %5280 = vmatprep.mubr.bf16.mxu0 %v11505_v4  ;;  %v4978_v47 = vld [vmem:[#allocation2 + $0x5f] sm:$0xff]  ;;  %v4977_v28 = vld [vmem:[#allocation2 + $0x57] sm:$0xff]  ;;  %v4979_v24 = vld [vmem:[#allocation2 + $0x67] sm:$0xff] }
 0x62e   : > { %v7215_v45 = vpack.c.bf16 %v4978_v47, %v4977_v28  ;;  %v8915_v60 = vld [vmem:[%s11329_s6 + $0x730] sm:$0xff]   ;;  %v8918_v21 = vld [vmem:[%s11329_s6 + $0x738] sm:$0xff]  }
 0x62f   : > { %v5011_v44 = vld [vmem:[#allocation2 + $0x69] sm:$0xff]  ;;  %v11140_v47 = vld [vmem:[#allocation10 + $0x7] ss:$0 sm:$0xff] }
 0x630   : > { %v4980_v4 = vld [vmem:[#allocation2 + $0x6f] sm:$0xff] }
 0x631   : > { %v5012_v3 = vld [vmem:[#allocation2 + $0x71] sm:$0xff]  ;;  %v5013_v1 = vld [vmem:[#allocation2 + $0x79] sm:$0xff]  ;;  %v5014_v38 = vld [vmem:[#allocation2 + $0x81] sm:$0xff]  ;;  %v7218_v18 = vpack.c.bf16 %v4980_v4, %v4979_v24 }
 0x632   : > { %v7242_v19 = vpack.c.bf16 %v5012_v3, %v5011_v44  ;;  %v7245_v17 = vpack.c.bf16 %v5014_v38, %v5013_v1  ;;  %v4981_v6 = vld [vmem:[#allocation2 + $0x77] sm:$0xff]  ;;  %v4982_v42 = vld [vmem:[#allocation2 + $0x7f] sm:$0xff]  ;;  %v8921_v44 = vld [vmem:[%s11329_s6 + $0x768] sm:$0xff]  }
 0x633   : > { %8516 = vmatmul.mubr.msk.bf16.vlgmr.msra.gmra.mrb[208].mxu1 %vm9514_vm5, %v7227_v61  ;;  %v8900_v61 = vld [vmem:[%s11329_s6 + $0x700] sm:$0xff]   ;;  %v8916_v3 = vld [vmem:[%s11329_s6 + $0x6f0] sm:$0xff]  }
 0x634   : > { %7201 = vmatmul.mubr.msk.bf16.vlgmr.msra.gmra.mrb[192].mxu0 %vm9508_vm4, %v7200_v52  ;;  %8519 = vmatprep.mubr.msk.bf16.mxu1 %vm9514_vm5, %v7230_v30  ;;  %v7221_v52 = vpack.c.bf16 %v4982_v42, %v4981_v6  ;;  %v8902_v30 = vld [vmem:[%s11329_s6 + $0x708] sm:$0xff]  }
 0x635   : > { %5288 = vmatprep.mubr.bf16.mxu0 %v11506_v9  ;;  %8115 = vmatprep.subr.bf16.mxu1 %v8900_v61  ;;  %v8904_v9 = vld [vmem:[%s11329_s6 + $0x6c8] sm:$0xff]  }
 0x636   : > { %8116 = vmatpush3.bf16.msra.mxu1 %v8901_v29  ;;  %8532 = vmatpush3.bf16.msra.mxu0 %v8903_v36 }
 0x637   : > { %8117 = vmatprep.subr.bf16.mxu1 %v8902_v30  ;;  %8533 = vmatprep.subr.bf16.mxu0 %v8908_v22 }
 0x63a   : > { %8118 = vmatpush3.bf16.msra.mxu1 %v8904_v9  ;;  %8534 = vmatpush3.bf16.msra.mxu0 %v8908_v22 }
 0x63b   : > { %8520 = vmatmul.mubr.msk.bf16.gmra.mrb[212].mxu1 %vm9514_vm5, %v7233_v0  ;;  %8119 = vmatprep.subr.bf16.mxu1 %v8905_v34  ;;  %v8911_v0 = vld [vmem:[%s11329_s6 + $0x6e0] sm:$0xff]  }
 0x63c   : > { %7204 = vmatmul.mubr.msk.bf16.gmra.mrb[196].mxu0 %vm9508_vm4, %v7203_v7  ;;  %8523 = vmatprep.mubr.msk.bf16.mxu1 %vm9514_vm5, %v7236_v25  ;;  %v8910_v7 = vld [vmem:[%s11329_s6 + $0x720] sm:$0xff]   ;;  %v8912_v25 = vld [vmem:[%s11329_s6 + $0x728] sm:$0xff]  }
 0x63d   : > { %5296 = vmatprep.mubr.bf16.mxu0 %v11507_v62  ;;  %v8914_v62 = vld [vmem:[%s11329_s6 + $0x6e8] sm:$0xff]   ;;  %8535 = vmatprep.subr.bf16.mxu0 %v8913_v48 }
 0x63e   : > { %8120 = vmatpush3.bf16.msra.mxu1 %v8906_v14  ;;  %8536 = vmatpush3.bf16.msra.mxu0 %v8913_v48 }
 0x63f   : > { %8121 = vmatprep.subr.bf16.mxu1 %v8907_v49  ;;  %8537 = vmatprep.subr.bf16.mxu0 %v8917_v43 }
 0x642   : > { %8122 = vmatpush3.bf16.msra.mxu1 %v8909_v23  ;;  %8538 = vmatpush3.bf16.msra.mxu0 %v8917_v43 }
 0x643   : > { %8524 = vmatmul.mubr.msk.bf16.gmra.mrb[216].mxu1 %vm9514_vm5, %v7239_v59  ;;  %8123 = vmatprep.subr.bf16.mxu1 %v8910_v7  ;;  %v8920_v59 = vld [vmem:[%s11329_s6 + $0x760] sm:$0xff]  }
 0x644   : > { %7207 = vmatmul.mubr.msk.bf16.gmra.mrb[200].mxu0 %vm9508_vm4, %v7206_v32  ;;  %8527 = vmatprep.mubr.msk.bf16.mxu1 %vm9514_vm5, %v7242_v19  ;;  %v8919_v32 = vld [vmem:[%s11329_s6 + $0x6f8] sm:$0xff]   ;;  %v8922_v19 = vld [vmem:[%s11329_s6 + $0x770] sm:$0xff]  }
 0x645   : > { %5304 = vmatprep.mubr.bf16.mxu0 %v11508_v16  ;;  %8539 = vmatprep.subr.bf16.mxu0 %v8920_v59  ;;  %v8923_v16 = vld [vmem:[%s11329_s6 + $0x778] sm:$0xff]  }
 0x646   : > { %8124 = vmatpush3.bf16.msra.mxu1 %v8911_v0  ;;  %8540 = vmatpush3.bf16.msra.mxu0 %v8920_v59 }
 0x647   : > { %8125 = vmatprep.subr.bf16.mxu1 %v8912_v25  ;;  %8541 = vmatprep.subr.bf16.mxu0 %v8921_v44 }
 0x64a   : > { %8126 = vmatpush3.bf16.msra.mxu1 %v8914_v62  ;;  %8542 = vmatpush3.bf16.msra.mxu0 %v8921_v44 }
 0x64b   : > { %8528 = vmatmul.mubr.msk.bf16.gmra.mrb[220].mxu1 %vm9514_vm5, %v7245_v17  ;;  %8127 = vmatprep.subr.bf16.mxu1 %v8915_v60 }
 0x64c   : > { %7210 = vmatmul.mubr.msk.bf16.gmra.mrb[204].mxu0 %vm9508_vm4, %v7209_v8  ;;  %8543 = vmatprep.subr.bf16.mxu0 %v8922_v19 }
 0x64d   : > { %5312 = vmatprep.mubr.bf16.mxu0 %v11509_v26 }
 0x64e   : > { %8128 = vmatpush3.bf16.msra.mxu1 %v8916_v3  ;;  %8544 = vmatpush3.bf16.msra.mxu0 %v8922_v19 }
 0x64f   : > { %8129 = vmatprep.subr.bf16.mxu1 %v8918_v21  ;;  %8545 = vmatprep.subr.bf16.mxu0 %v8923_v16 }
 0x652   : > { %8130 = vmatpush3.bf16.msra.mxu1 %v8919_v32  ;;  %8546 = vmatpush3.bf16.msra.mxu0 %v8923_v16 }
 0x654   : > { %7213 = vmatmul.mubr.msk.bf16.gmra.mrb[208].mxu0 %vm9508_vm4, %v7212_v31 }
 0x655   : > { %5320 = vmatprep.mubr.bf16.mxu0 %v11510_v50 }
 0x65c   : > { %7216 = vmatmul.mubr.msk.bf16.gmra.mrb[212].mxu0 %vm9508_vm4, %v7215_v45 }
 0x65d   : > { %5328 = vmatprep.mubr.bf16.mxu0 %v11511_v57 }
 0x664   : > { %7219 = vmatmul.mubr.msk.bf16.gmra.mrb[216].mxu0 %vm9508_vm4, %v7218_v18 }
 0x665   : > { %5336 = vmatprep.mubr.bf16.mxu0 %v11512_v35 }
 0x66c   : > { %7222 = vmatmul.mubr.msk.bf16.gmra.mrb[220].mxu0 %vm9508_vm4, %v7221_v52 }
 0x6c6   : > { %v7971_v5 = vpop.f32.mrb[176].mxu1 }
 0x6c7   : > { %v7972_v1 = vpop.f32.mrb[177].mxu1 }
 0x6c8   : > { %v7973_v38 = vadd.f32 %v7972_v1, %v7971_v5  ;;  %v7974_v41 = vpop.f32.mrb[178].mxu1 }
 0x6c9   : > { %v7975_v8 = vpop.f32.mrb[179].mxu1 }
 0x6ca   : > { %v7976_v17 = vadd.f32 %v7975_v8, %v7974_v41  ;;  %v4776_v4 = vadd.f32 %v7973_v38, %v11140_v47 }
 0x6cc   : > { %v4779_v61 = vadd.f32 %v7976_v17, %v11140_v47 }
 0x6ce   : > { %v7977_v26 = vpop.f32.mrb[180].mxu1 }
 0x6cf   : > { %v7978_v15 = vpop.f32.mrb[181].mxu1 }
 0x6d0   : > { %v7979_v54 = vadd.f32 %v7978_v15, %v7977_v26  ;;  %v7980_v31 = vpop.f32.mrb[182].mxu1 }
 0x6d1   : > { %v7981_v50 = vpop.f32.mrb[183].mxu1 }
 0x6d2   : > { %v7982_v28 = vadd.f32 %v7981_v50, %v7980_v31  ;;  %v4784_v45 = vadd.f32 %v7979_v54, %v11140_v47 }
 0x6d4   : > { %v8485_v57 = vpop.f32.mrb[176].mxu0  ;;  %v4787_v24 = vadd.f32 %v7982_v28, %v11140_v47 }
 0x6d5   : > { %v4881_v18 = vadd.f32 %v8485_v57, %v4784_v45  ;;  %v4872_v35 = vpop.f32.mrb[177].mxu0 }
 0x6d6   : > { %v4873_v6 = vadd.f32 %v4872_v35, %v4776_v4  ;;  %v7983_v42 = vpop.f32.mrb[184].mxu1  ;;  %v8486_v52 = vpop.f32.mrb[178].mxu0 }
 0x6d7   : > { %v4937_v29 = vadd.f32 %v4881_v18, %v11474_v10  ;;  %v4884_v30 = vadd.f32 %v8486_v52, %v4787_v24  ;;  %v7984_v9 = vpop.f32.mrb[185].mxu1  ;;  %v4875_v34 = vpop.f32.mrb[179].mxu0 }
 0x6d8   : > { %v4935_v14 = vadd.f32 %v4873_v6, %v11475_v13  ;;  %v7985_v49 = vadd.f32 %v7984_v9, %v7983_v42  ;;  %v4876_v36 = vadd.f32 %v4875_v34, %v4779_v61  ;;  %v7986_v23 = vpop.f32.mrb[186].mxu1 }
 0x6d9   : > { %5983 = vst [vmem:[%s9330_s24 + $0x50] sm:$0xff] %v4937_v29  ;;  %v4938_v7 = vadd.f32 %v4884_v30, %v11476_v56  ;;  %v7987_v0 = vpop.f32.mrb[187].mxu1 }
 0x6da   : > { %5975 = vst [vmem:[%s9330_s24 + $0x10] sm:$0xff] %v4935_v14  ;;  %v4936_v22 = vadd.f32 %v4876_v36, %v11477_v2  ;;  %v7988_v25 = vadd.f32 %v7987_v0, %v7986_v23  ;;  %v4792_v32 = vadd.f32 %v7985_v49, %v11140_v47 }
 0x6db   : > { %5987 = vst [vmem:[%s9330_s24 + $0x70] sm:$0xff] %v4938_v7 }
 0x6dc   : > { %5979 = vst [vmem:[%s9330_s24 + $0x30] sm:$0xff] %v4936_v22  ;;  %v4795_v5 = vadd.f32 %v7988_v25, %v11140_v47 }
 0x6de   : > { %v7989_v62 = vpop.f32.mrb[188].mxu1 }
 0x6df   : > { %v7990_v10 = vpop.f32.mrb[189].mxu1 }
 0x6e0   : > { %v7991_v48 = vadd.f32 %v7990_v10, %v7989_v62  ;;  %v7992_v60 = vpop.f32.mrb[190].mxu1 }
 0x6e1   : > { %v7993_v3 = vpop.f32.mrb[191].mxu1 }
 0x6e2   : > { %v7994_v43 = vadd.f32 %v7993_v3, %v7992_v60  ;;  %v4800_v13 = vadd.f32 %v7991_v48, %v11140_v47 }
 0x6e4   : > { %v8489_v21 = vpop.f32.mrb[180].mxu0  ;;  %v4803_v56 = vadd.f32 %v7994_v43, %v11140_v47 }
 0x6e5   : > { %v4897_v59 = vadd.f32 %v8489_v21, %v4800_v13  ;;  %v4888_v44 = vpop.f32.mrb[181].mxu0 }
 0x6e6   : > { %v4889_v2 = vadd.f32 %v4888_v44, %v4792_v32  ;;  %v7995_v19 = vpop.f32.mrb[192].mxu1  ;;  %v8490_v16 = vpop.f32.mrb[182].mxu0 }
 0x6e7   : > { %v4941_v1 = vadd.f32 %v4897_v59, %v9825_v11  ;;  %v4900_v38 = vadd.f32 %v8490_v16, %v4803_v56  ;;  %v7996_v41 = vpop.f32.mrb[193].mxu1  ;;  %v4891_v8 = vpop.f32.mrb[183].mxu0 }
 0x6e8   : > { %v4939_v17 = vadd.f32 %v4889_v2, %v11478_v37  ;;  %v7997_v26 = vadd.f32 %v7996_v41, %v7995_v19  ;;  %v4892_v15 = vadd.f32 %v4891_v8, %v4795_v5  ;;  %v7998_v54 = vpop.f32.mrb[194].mxu1 }
 0x6e9   : > { %5999 = vst [vmem:[%s9330_s24 + $0xd0] sm:$0xff] %v4941_v1  ;;  %v4942_v31 = vadd.f32 %v4900_v38, %v11479_v46  ;;  %v7999_v50 = vpop.f32.mrb[195].mxu1 }
 0x6ea   : > { %5991 = vst [vmem:[%s9330_s24 + $0x90] sm:$0xff] %v4939_v17  ;;  %v4940_v28 = vadd.f32 %v4892_v15, %v11480_v40  ;;  %v8000_v45 = vadd.f32 %v7999_v50, %v7998_v54  ;;  %v4808_v42 = vadd.f32 %v7997_v26, %v11140_v47  ;;  %v11187_v54 = vld [vmem:[#allocation10 + $0x8] ss:$0 sm:$0xff] }
 0x6eb   : > { %6003 = vst [vmem:[%s9330_s24 + $0xf0] sm:$0xff] %v4942_v31 }
 0x6ec   : > { %5995 = vst [vmem:[%s9330_s24 + $0xb0] sm:$0xff] %v4940_v28  ;;  %v4811_v9 = vadd.f32 %v8000_v45, %v11140_v47 }
 0x6ee   : > { %v8001_v57 = vpop.f32.mrb[196].mxu1 }
 0x6ef   : > { %v8002_v11 = vpop.f32.mrb[197].mxu1 }
 0x6f0   : > { %v8003_v4 = vadd.f32 %v8002_v11, %v8001_v57  ;;  %v8004_v24 = vpop.f32.mrb[198].mxu1 }
 0x6f1   : > { %v8005_v18 = vpop.f32.mrb[199].mxu1 }
 0x6f2   : > { %v8006_v35 = vadd.f32 %v8005_v18, %v8004_v24  ;;  %v4816_v37 = vadd.f32 %v8003_v4, %v11140_v47 }
 0x6f4   : > { %v8493_v6 = vpop.f32.mrb[184].mxu0  ;;  %v4819_v46 = vadd.f32 %v8006_v35, %v11140_v47 }
 0x6f5   : > { %v4913_v52 = vadd.f32 %v8493_v6, %v4816_v37  ;;  %v4904_v61 = vpop.f32.mrb[185].mxu0 }
 0x6f6   : > { %v4905_v40 = vadd.f32 %v4904_v61, %v4808_v42  ;;  %v8007_v29 = vpop.f32.mrb[200].mxu1  ;;  %v8494_v30 = vpop.f32.mrb[186].mxu0 }
 0x6f7   : > { %v4945_v34 = vadd.f32 %v4913_v52, %v11481_v33  ;;  %v4916_v14 = vadd.f32 %v8494_v30, %v4819_v46  ;;  %v8008_v49 = vpop.f32.mrb[201].mxu1  ;;  %v4907_v36 = vpop.f32.mrb[187].mxu0 }
 0x6f8   : > { %v4943_v23 = vadd.f32 %v4905_v40, %v11482_v55  ;;  %v8009_v7 = vadd.f32 %v8008_v49, %v8007_v29  ;;  %v4908_v0 = vadd.f32 %v4907_v36, %v4811_v9  ;;  %v8010_v22 = vpop.f32.mrb[202].mxu1 }
 0x6f9   : > { %6015 = vst [vmem:[%s9330_s24 + $0x150] sm:$0xff] %v4945_v34  ;;  %v4946_v25 = vadd.f32 %v4916_v14, %v11483_v63  ;;  %v8011_v62 = vpop.f32.mrb[203].mxu1 }
 0x6fa   : > { %6007 = vst [vmem:[%s9330_s24 + $0x110] sm:$0xff] %v4943_v23  ;;  %v4944_v10 = vadd.f32 %v4908_v0, %v11484_v12  ;;  %v8012_v48 = vadd.f32 %v8011_v62, %v8010_v22  ;;  %v4824_v3 = vadd.f32 %v8009_v7, %v11140_v47 }
 0x6fb   : > { %6019 = vst [vmem:[%s9330_s24 + $0x170] sm:$0xff] %v4946_v25 }
 0x6fc   : > { %6011 = vst [vmem:[%s9330_s24 + $0x130] sm:$0xff] %v4944_v10  ;;  %v4827_v63 = vadd.f32 %v8012_v48, %v11140_v47 }
 0x6fe   : > { %v8013_v60 = vpop.f32.mrb[204].mxu1 }
 0x6ff   : > { %v8497_v33 = vpop.f32.mrb[188].mxu0  ;;  %v8014_v43 = vpop.f32.mrb[205].mxu1 }
 0x700   : > { %v4920_v55 = vpop.f32.mrb[189].mxu0  ;;  %v8015_v13 = vadd.f32 %v8014_v43, %v8013_v60  ;;  %v8016_v32 = vpop.f32.mrb[206].mxu1 }
 0x701   : > { %v4921_v21 = vadd.f32 %v4920_v55, %v4824_v3  ;;  %v8498_v56 = vpop.f32.mrb[190].mxu0  ;;  %v8017_v59 = vpop.f32.mrb[207].mxu1 }
 0x702   : > { %v4923_v44 = vpop.f32.mrb[191].mxu0  ;;  %v4832_v12 = vadd.f32 %v8015_v13, %v11140_v47  ;;  %v8018_v19 = vadd.f32 %v8017_v59, %v8016_v32 }
 0x703   : > { %v4947_v2 = vadd.f32 %v4921_v21, %v11485_v53  ;;  %v4924_v16 = vadd.f32 %v4923_v44, %v4827_v63 }
 0x704   : > { %v4929_v5 = vadd.f32 %v8497_v33, %v4832_v12  ;;  %v4835_v1 = vadd.f32 %v8018_v19, %v11140_v47 }
 0x705   : > { %6023 = vst [vmem:[%s9330_s24 + $0x190] sm:$0xff] %v4947_v2  ;;  %v4948_v38 = vadd.f32 %v4924_v16, %v11486_v58 }
 0x706   : > { %v4949_v41 = vadd.f32 %v4929_v5, %v11487_v51  ;;  %v4932_v8 = vadd.f32 %v8498_v56, %v4835_v1  ;;  %v8517_v26 = vpop.f32.mrb[208].mxu1 }
 0x707   : > { %6027 = vst [vmem:[%s9330_s24 + $0x1b0] sm:$0xff] %v4948_v38  ;;  %v8051_v17 = vpop.f32.mrb[192].mxu0  ;;  %v5379_v31 = vpop.f32.mrb[209].mxu1 }
 0x708   : > { %v8052_v15 = vpop.f32.mrb[193].mxu0  ;;  %6031 = vst [vmem:[%s9330_s24 + $0x1d0] sm:$0xff] %v4949_v41  ;;  %v4950_v53 = vadd.f32 %v4932_v8, %v11488_v39  ;;  %v8518_v45 = vpop.f32.mrb[210].mxu1 }
 0x709   : > { %v8053_v50 = vadd.f32 %v8052_v15, %v8051_v17  ;;  %v8054_v28 = vpop.f32.mrb[194].mxu0  ;;  %v5382_v57 = vpop.f32.mrb[211].mxu1 }
 0x70a   : > { %v8055_v47 = vpop.f32.mrb[195].mxu0  ;;  %6035 = vst [vmem:[%s9330_s24 + $0x1f0] sm:$0xff] %v4950_v53 }
 0x70b   : > { %v5283_v58 = vadd.f32 %v8053_v50, %v11187_v54  ;;  %v8056_v51 = vadd.f32 %v8055_v47, %v8054_v28 }
 0x70d   : > { %v5380_v11 = vadd.f32 %v5379_v31, %v5283_v58  ;;  %v5286_v4 = vadd.f32 %v8056_v51, %v11187_v54 }
 0x70e   : > { %v11194_v37 = vpop.f32.mrb[212].mxu1 }
 0x70f   : > { %v5442_v24 = vmax.f32 %v5380_v11, 0.0  ;;  %v5383_v18 = vadd.f32 %v5382_v57, %v5286_v4  ;;  %v8057_v35 = vpop.f32.mrb[196].mxu0  ;;  %v5395_v42 = vpop.f32.mrb[213].mxu1 }
 0x710   : > { %v8058_v6 = vpop.f32.mrb[197].mxu0  ;;  %v11196_v61 = vpop.f32.mrb[214].mxu1 }
 0x711   : > { %5458 = vst [vmem:[#allocation2 + $0x8] sm:$0xff] %v5442_v24  ;;  %v5443_v39 = vmax.f32 %v5383_v18, 0.0  ;;  %v8059_v46 = vadd.f32 %v8058_v6, %v8057_v35  ;;  %v8060_v52 = vpop.f32.mrb[198].mxu0  ;;  %v5398_v29 = vpop.f32.mrb[215].mxu1 }
 0x712   : > { %v8061_v40 = vpop.f32.mrb[199].mxu0 }
 0x713   : > { %v5588_v30 = vpack.c.bf16 %v5443_v39, %v5442_v24  ;;  %5459 = vst [vmem:[#allocation2 + $0x10] sm:$0xff] %v5443_v39  ;;  %v5291_v9 = vadd.f32 %v8059_v46, %v11187_v54  ;;  %v8062_v34 = vadd.f32 %v8061_v40, %v8060_v52 }
 0x715   : > { %v5388_v14 = vadd.f32 %v8517_v26, %v5291_v9  ;;  %v5294_v49 = vadd.f32 %v8062_v34, %v11187_v54  ;;  %5795 = vmatprep.mubr.bf16.mxu1 %v5588_v30 }
 0x716   : > { %v11200_v0 = vpop.f32.mrb[216].mxu1 }
 0x717   : > { %v5444_v36 = vmax.f32 %v5388_v14, 0.0  ;;  %v5391_v23 = vadd.f32 %v8518_v45, %v5294_v49  ;;  %v8063_v7 = vpop.f32.mrb[200].mxu0  ;;  %v11202_v25 = vpop.f32.mrb[217].mxu1 }
 0x718   : > { %v8064_v22 = vpop.f32.mrb[201].mxu0  ;;  %v11204_v60 = vpop.f32.mrb[218].mxu1  ;;  %v5474_v43 = vld [vmem:[#allocation2 + $0x7] sm:$0xff] }
 0x719   : > { %5460 = vst [vmem:[#allocation2 + $0x18] sm:$0xff] %v5444_v36  ;;  %v5445_v62 = vmax.f32 %v5391_v23, 0.0  ;;  %v8065_v10 = vadd.f32 %v8064_v22, %v8063_v7  ;;  %v8066_v48 = vpop.f32.mrb[202].mxu0  ;;  %v11206_v3 = vpop.f32.mrb[219].mxu1 }
 0x71a   : > { %v8067_v33 = vpop.f32.mrb[203].mxu0  ;;  %v5475_v55 = vld [vmem:[#allocation2 + $0xf] sm:$0xff] }
 0x71b   : > { %5461 = vst [vmem:[#allocation2 + $0x20] sm:$0xff] %v5445_v62  ;;  %v5299_v13 = vadd.f32 %v8065_v10, %v11187_v54  ;;  %v8068_v21 = vadd.f32 %v8067_v33, %v8066_v48  ;;  %v7321_v32 = vpack.c.bf16 %v5475_v55, %v5474_v43  ;;  %v5591_v56 = vpack.c.bf16 %v5445_v62, %v5444_v36  ;;  %v5506_v1 = vld [vmem:[#allocation2 + $0x9] sm:$0xff] }
 0x71d   : > { %v5396_v63 = vadd.f32 %v5395_v42, %v5299_v13  ;;  %v5302_v59 = vadd.f32 %v8068_v21, %v11187_v54  ;;  %7322 = vmatmul.mubr.msk.bf16.vlgmr.msra.gmra.mrb[224].mxu1 %vm9508_vm4, %v7321_v32 }
 0x71e   : > { %5803 = vmatprep.mubr.bf16.mxu1 %v5591_v56  ;;  %v11212_v19 = vpop.f32.mrb[220].mxu1 }
 0x71f   : > { %v5446_v44 = vmax.f32 %v5396_v63, 0.0  ;;  %v5399_v12 = vadd.f32 %v5398_v29, %v5302_v59  ;;  %v8069_v2 = vpop.f32.mrb[204].mxu0  ;;  %v11214_v5 = vpop.f32.mrb[221].mxu1 }
 0x720   : > { %v8070_v16 = vpop.f32.mrb[205].mxu0  ;;  %v5507_v38 = vld [vmem:[#allocation2 + $0x11] sm:$0xff]  ;;  %v11216_v26 = vpop.f32.mrb[222].mxu1 }
 0x721   : > { %5462 = vst [vmem:[#allocation2 + $0x28] sm:$0xff] %v5446_v44  ;;  %v5447_v41 = vmax.f32 %v5399_v12, 0.0  ;;  %v8071_v8 = vadd.f32 %v8070_v16, %v8069_v2  ;;  %v8072_v17 = vpop.f32.mrb[206].mxu0  ;;  %v7345_v15 = vpack.c.bf16 %v5507_v38, %v5506_v1  ;;  %v11218_v53 = vpop.f32.mrb[223].mxu1  ;;  %v5476_v50 = vld [vmem:[#allocation2 + $0x17] sm:$0xff] }
 0x722   : > { %v8073_v31 = vpop.f32.mrb[207].mxu0  ;;  %v5477_v28 = vld [vmem:[#allocation2 + $0x1f] sm:$0xff] }
 0x723   : > { %5463 = vst [vmem:[#allocation2 + $0x30] sm:$0xff] %v5447_v41  ;;  %v5307_v45 = vadd.f32 %v8071_v8, %v11187_v54  ;;  %v8074_v47 = vadd.f32 %v8073_v31, %v8072_v17  ;;  %8547 = vmatprep.mubr.msk.bf16.mxu0 %vm9514_vm5, %v7345_v15  ;;  %v7324_v57 = vpack.c.bf16 %v5477_v28, %v5476_v50  ;;  %v5508_v6 = vld [vmem:[#allocation2 + $0x19] sm:$0xff] }
 0x724   : > { %v5594_v58 = vpack.c.bf16 %v5447_v41, %v5446_v44 }
 0x725   : > { %v5404_v51 = vadd.f32 %v11194_v37, %v5307_v45  ;;  %v5310_v11 = vadd.f32 %v8074_v47, %v11187_v54  ;;  %7325 = vmatmul.mubr.msk.bf16.gmra.mrb[228].mxu1 %vm9508_vm4, %v7324_v57 }
 0x726   : > { %5811 = vmatprep.mubr.bf16.mxu1 %v5594_v58 }
 0x727   : > { %v5448_v4 = vmax.f32 %v5404_v51, 0.0  ;;  %v5407_v24 = vadd.f32 %v11196_v61, %v5310_v11  ;;  %v8075_v18 = vpop.f32.mrb[208].mxu0 }
 0x728   : > { %v8076_v35 = vpop.f32.mrb[209].mxu0  ;;  %v5509_v42 = vld [vmem:[#allocation2 + $0x21] sm:$0xff] }
 0x729   : > { %5464 = vst [vmem:[#allocation2 + $0x38] sm:$0xff] %v5448_v4  ;;  %v5449_v39 = vmax.f32 %v5407_v24, 0.0  ;;  %v8077_v46 = vadd.f32 %v8076_v35, %v8075_v18  ;;  %v8078_v52 = vpop.f32.mrb[210].mxu0  ;;  %v7348_v40 = vpack.c.bf16 %v5509_v42, %v5508_v6  ;;  %v5478_v37 = vld [vmem:[#allocation2 + $0x27] sm:$0xff] }
 0x72a   : > { %v8079_v29 = vpop.f32.mrb[211].mxu0  ;;  %v5479_v30 = vld [vmem:[#allocation2 + $0x2f] sm:$0xff] }
 0x72b   : > { %5465 = vst [vmem:[#allocation2 + $0x40] sm:$0xff] %v5449_v39  ;;  %v5315_v9 = vadd.f32 %v8077_v46, %v11187_v54  ;;  %v8080_v34 = vadd.f32 %v8079_v29, %v8078_v52  ;;  %8548 = vmatmul.mubr.msk.bf16.vlgmr.msra.gmra.mrb[224].mxu0 %vm9514_vm5, %v7348_v40  ;;  %v7327_v61 = vpack.c.bf16 %v5479_v30, %v5478_v37  ;;  %v5510_v10 = vld [vmem:[#allocation2 + $0x29] sm:$0xff] }
 0x72c   : > { %v5597_v14 = vpack.c.bf16 %v5449_v39, %v5448_v4 }
 0x72d   : > { %v5412_v49 = vadd.f32 %v11202_v25, %v5315_v9  ;;  %v5318_v36 = vadd.f32 %v8080_v34, %v11187_v54  ;;  %7328 = vmatmul.mubr.msk.bf16.gmra.mrb[232].mxu1 %vm9508_vm4, %v7327_v61 }
 0x72e   : > { %5819 = vmatprep.mubr.bf16.mxu1 %v5597_v14 }
 0x72f   : > { %v5450_v23 = vmax.f32 %v5412_v49, 0.0  ;;  %v5415_v7 = vadd.f32 %v11206_v3, %v5318_v36  ;;  %v8081_v22 = vpop.f32.mrb[212].mxu0 }
 0x730   : > { %v8082_v62 = vpop.f32.mrb[213].mxu0  ;;  %v5511_v48 = vld [vmem:[#allocation2 + $0x31] sm:$0xff] }
 0x731   : > { %5466 = vst [vmem:[#allocation2 + $0x48] sm:$0xff] %v5450_v23  ;;  %v5451_v33 = vmax.f32 %v5415_v7, 0.0  ;;  %v8083_v43 = vadd.f32 %v8082_v62, %v8081_v22  ;;  %v8084_v55 = vpop.f32.mrb[214].mxu0  ;;  %v7351_v13 = vpack.c.bf16 %v5511_v48, %v5510_v10  ;;  %v5480_v25 = vld [vmem:[#allocation2 + $0x37] sm:$0xff] }
 0x732   : > { %v8085_v21 = vpop.f32.mrb[215].mxu0  ;;  %v5481_v32 = vld [vmem:[#allocation2 + $0x3f] sm:$0xff] }
 0x733   : > { %5467 = vst [vmem:[#allocation2 + $0x50] sm:$0xff] %v5451_v33  ;;  %v5323_v56 = vadd.f32 %v8083_v43, %v11187_v54  ;;  %v8086_v63 = vadd.f32 %v8085_v21, %v8084_v55  ;;  %8551 = vmatprep.mubr.msk.bf16.mxu0 %vm9514_vm5, %v7351_v13  ;;  %v7330_v3 = vpack.c.bf16 %v5481_v32, %v5480_v25  ;;  %v5512_v41 = vld [vmem:[#allocation2 + $0x39] sm:$0xff] }
 0x734   : > { %v5600_v59 = vpack.c.bf16 %v5451_v33, %v5450_v23 }
 0x735   : > { %v5420_v44 = vadd.f32 %v11200_v0, %v5323_v56  ;;  %v5326_v12 = vadd.f32 %v8086_v63, %v11187_v54  ;;  %7331 = vmatmul.mubr.msk.bf16.gmra.mrb[236].mxu1 %vm9508_vm4, %v7330_v3 }
 0x736   : > { %5827 = vmatprep.mubr.bf16.mxu1 %v5600_v59 }
 0x737   : > { %v5452_v2 = vmax.f32 %v5420_v44, 0.0  ;;  %v5423_v16 = vadd.f32 %v11204_v60, %v5326_v12  ;;  %v8087_v1 = vpop.f32.mrb[216].mxu0 }
 0x738   : > { %v8088_v38 = vpop.f32.mrb[217].mxu0  ;;  %v5513_v8 = vld [vmem:[#allocation2 + $0x41] sm:$0xff] }
 0x739   : > { %5468 = vst [vmem:[#allocation2 + $0x58] sm:$0xff] %v5452_v2  ;;  %v5453_v17 = vmax.f32 %v5423_v16, 0.0  ;;  %v8089_v15 = vadd.f32 %v8088_v38, %v8087_v1  ;;  %v8090_v31 = vpop.f32.mrb[218].mxu0  ;;  %v7354_v50 = vpack.c.bf16 %v5513_v8, %v5512_v41  ;;  %v5482_v0 = vld [vmem:[#allocation2 + $0x47] sm:$0xff] }
 0x73a   : > { %v8091_v28 = vpop.f32.mrb[219].mxu0  ;;  %v5483_v45 = vld [vmem:[#allocation2 + $0x4f] sm:$0xff] }
 0x73b   : > { %5469 = vst [vmem:[#allocation2 + $0x60] sm:$0xff] %v5453_v17  ;;  %v5331_v47 = vadd.f32 %v8089_v15, %v11187_v54  ;;  %v8092_v57 = vadd.f32 %v8091_v28, %v8090_v31  ;;  %8552 = vmatmul.mubr.msk.bf16.gmra.mrb[228].mxu0 %vm9514_vm5, %v7354_v50  ;;  %v7333_v60 = vpack.c.bf16 %v5483_v45, %v5482_v0  ;;  %v5514_v6 = vld [vmem:[#allocation2 + $0x49] sm:$0xff] }
 0x73c   : > { %v5603_v58 = vpack.c.bf16 %v5453_v17, %v5452_v2  ;;  %v11270_v17 = vld [vmem:[#allocation10 + $0x9] ss:$0 sm:$0xff] }
 0x73d   : > { %v5428_v51 = vadd.f32 %v11214_v5, %v5331_v47  ;;  %v5334_v11 = vadd.f32 %v8092_v57, %v11187_v54  ;;  %7334 = vmatmul.mubr.msk.bf16.gmra.mrb[240].mxu1 %vm9508_vm4, %v7333_v60 }
 0x73e   : > { %5835 = vmatprep.mubr.bf16.mxu1 %v5603_v58  ;;  %v8924_v58 = vld [vmem:[%s9330_s24 + $0x40] sm:$0xff] }
 0x73f   : > { %v5454_v4 = vmax.f32 %v5428_v51, 0.0  ;;  %v5431_v24 = vadd.f32 %v11218_v53, %v5334_v11  ;;  %v8093_v18 = vpop.f32.mrb[220].mxu0 }
 0x740   : > { %v8094_v35 = vpop.f32.mrb[221].mxu0  ;;  %v5515_v42 = vld [vmem:[#allocation2 + $0x51] sm:$0xff] }
 0x741   : > { %5470 = vst [vmem:[#allocation2 + $0x68] sm:$0xff] %v5454_v4  ;;  %v5455_v39 = vmax.f32 %v5431_v24, 0.0  ;;  %v8095_v46 = vadd.f32 %v8094_v35, %v8093_v18  ;;  %v8096_v52 = vpop.f32.mrb[222].mxu0  ;;  %v7357_v40 = vpack.c.bf16 %v5515_v42, %v5514_v6  ;;  %v5484_v5 = vld [vmem:[#allocation2 + $0x57] sm:$0xff]  ;;  %v8925_v18 = vld [vmem:[%s9330_s24] sm:$0xff] }
 0x742   : > { %v8097_v29 = vpop.f32.mrb[223].mxu0  ;;  %v5485_v37 = vld [vmem:[#allocation2 + $0x5f] sm:$0xff] }
 0x743   : > { %5471 = vst [vmem:[#allocation2 + $0x70] sm:$0xff] %v5455_v39  ;;  %v5339_v30 = vadd.f32 %v8095_v46, %v11187_v54  ;;  %v8098_v9 = vadd.f32 %v8097_v29, %v8096_v52  ;;  %8555 = vmatprep.mubr.msk.bf16.mxu0 %vm9514_vm5, %v7357_v40  ;;  %v7336_v53 = vpack.c.bf16 %v5485_v37, %v5484_v5  ;;  %v5516_v23 = vld [vmem:[#allocation2 + $0x59] sm:$0xff] }
 0x744   : > { %v5606_v34 = vpack.c.bf16 %v5455_v39, %v5454_v4  ;;  %v8926_v46 = vld [vmem:[%s9330_s24 + $0x60] sm:$0xff] }
 0x745   : > { %v5436_v61 = vadd.f32 %v11212_v19, %v5339_v30  ;;  %v5342_v14 = vadd.f32 %v8098_v9, %v11187_v54  ;;  %7337 = vmatmul.mubr.msk.bf16.gmra.mrb[244].mxu1 %vm9508_vm4, %v7336_v53  ;;  %v8927_v29 = vld [vmem:[%s9330_s24 + $0x20] sm:$0xff] }
 0x746   : > { %5843 = vmatprep.mubr.bf16.mxu1 %v5606_v34 }
 0x747   : > { %v5456_v49 = vmax.f32 %v5436_v61, 0.0  ;;  %v5439_v36 = vadd.f32 %v11216_v26, %v5342_v14 }
 0x748   : > { %v5517_v7 = vld [vmem:[#allocation2 + $0x61] sm:$0xff] }
 0x749   : > { %5472 = vst [vmem:[#allocation2 + $0x78] sm:$0xff] %v5456_v49  ;;  %v5457_v22 = vmax.f32 %v5439_v36, 0.0  ;;  %v7360_v62 = vpack.c.bf16 %v5517_v7, %v5516_v23  ;;  %v5486_v10 = vld [vmem:[#allocation2 + $0x67] sm:$0xff] }
 0x74a   : > { %v5487_v48 = vld [vmem:[#allocation2 + $0x6f] sm:$0xff] }
 0x74b   : > { %5473 = vst [vmem:[#allocation2 + $0x80] sm:$0xff] %v5457_v22  ;;  %8556 = vmatmul.mubr.msk.bf16.gmra.mrb[232].mxu0 %vm9514_vm5, %v7360_v62  ;;  %v7339_v19 = vpack.c.bf16 %v5487_v48, %v5486_v10  ;;  %v5609_v54 = vpack.c.bf16 %v5457_v22, %v5456_v49  ;;  %v5518_v33 = vld [vmem:[#allocation2 + $0x69] sm:$0xff] }
 0x74d   : > { %7340 = vmatmul.mubr.msk.bf16.gmra.mrb[248].mxu1 %vm9508_vm4, %v7339_v19 }
 0x74e   : > { %5851 = vmatprep.mubr.bf16.mxu1 %v5609_v54 }
 0x750   : > { %v5519_v43 = vld [vmem:[#allocation2 + $0x71] sm:$0xff] }
 0x751   : > { %v7363_v26 = vpack.c.bf16 %v5519_v43, %v5518_v33  ;;  %v5488_v55 = vld [vmem:[#allocation2 + $0x77] sm:$0xff]  ;;  %v8928_v33 = vld [vmem:[%s9330_s24 + $0xc0] sm:$0xff] }
 0x752   : > { %v5489_v13 = vld [vmem:[#allocation2 + $0x7f] sm:$0xff] }
 0x753   : > { %v5520_v21 = vld [vmem:[#allocation2 + $0x79] sm:$0xff]  ;;  %v5521_v25 = vld [vmem:[#allocation2 + $0x81] sm:$0xff]  ;;  %8559 = vmatprep.mubr.msk.bf16.mxu0 %vm9514_vm5, %v7363_v26  ;;  %v7342_v32 = vpack.c.bf16 %v5489_v13, %v5488_v55 }
 0x754   : > { %v7366_v56 = vpack.c.bf16 %v5521_v25, %v5520_v21  ;;  %v8929_v21 = vld [vmem:[%s9330_s24 + $0x80] sm:$0xff] }
 0x755   : > { %7343 = vmatmul.mubr.msk.bf16.gmra.mrb[252].mxu1 %vm9508_vm4, %v7342_v32 }
 0x756   : > { %8560 = vmatmul.mubr.msk.bf16.gmra.mrb[236].mxu0 %vm9514_vm5, %v7366_v56 }
 0x7f0   : > { %v8131_v63 = vpop.f32.mrb[224].mxu1 }
 0x7f1   : > { %v8132_v3 = vpop.f32.mrb[225].mxu1 }
 0x7f2   : > { %v8133_v59 = vadd.f32 %v8132_v3, %v8131_v63  ;;  %v8134_v44 = vpop.f32.mrb[226].mxu1  ;;  %v8930_v3 = vld [vmem:[%s9330_s24 + $0xe0] sm:$0xff] }
 0x7f3   : > { %v8135_v12 = vpop.f32.mrb[227].mxu1 }
 0x7f4   : > { %v8136_v2 = vadd.f32 %v8135_v12, %v8134_v44  ;;  %v5798_v31 = vadd.f32 %v8133_v59, %v11270_v17  ;;  %v8931_v12 = vld [vmem:[%s9330_s24 + $0xa0] sm:$0xff] }
 0x7f6   : > { %v5801_v60 = vadd.f32 %v8136_v2, %v11270_v17 }
 0x7f8   : > { %v8137_v16 = vpop.f32.mrb[228].mxu1 }
 0x7f9   : > { %v8138_v1 = vpop.f32.mrb[229].mxu1 }
 0x7fa   : > { %v8139_v38 = vadd.f32 %v8138_v1, %v8137_v16  ;;  %v8140_v41 = vpop.f32.mrb[230].mxu1 }
 0x7fb   : > { %v8141_v8 = vpop.f32.mrb[231].mxu1 }
 0x7fc   : > { %v8142_v15 = vadd.f32 %v8141_v8, %v8140_v41  ;;  %v5806_v20 = vadd.f32 %v8139_v38, %v11270_v17 }
 0x7fe   : > { %v8549_v27 = vpop.f32.mrb[224].mxu0  ;;  %v5809_v50 = vadd.f32 %v8142_v15, %v11270_v17 }
 0x7ff   : > { %v5903_v28 = vadd.f32 %v8549_v27, %v5806_v20  ;;  %v5894_v0 = vpop.f32.mrb[225].mxu0 }
 0x800   : > { %v5895_v45 = vadd.f32 %v5894_v0, %v5798_v31  ;;  %v8143_v47 = vpop.f32.mrb[232].mxu1  ;;  %v8550_v57 = vpop.f32.mrb[226].mxu0 }
 0x801   : > { %v5959_v51 = vadd.f32 %v8924_v58, %v5903_v28  ;;  %v5906_v11 = vadd.f32 %v8550_v57, %v5809_v50  ;;  %v8144_v4 = vpop.f32.mrb[233].mxu1  ;;  %v5897_v24 = vpop.f32.mrb[227].mxu0 }
 0x802   : > { %v5957_v35 = vadd.f32 %v8925_v18, %v5895_v45  ;;  %v8145_v6 = vadd.f32 %v8144_v4, %v8143_v47  ;;  %v5898_v42 = vadd.f32 %v5897_v24, %v5801_v60  ;;  %v8146_v39 = vpop.f32.mrb[234].mxu1 }
 0x803   : > { %5984 = vst [vmem:[%s9330_s24 + $0x58] sm:$0xff] %v5959_v51  ;;  %v5960_v52 = vadd.f32 %v8926_v46, %v5906_v11  ;;  %v8147_v40 = vpop.f32.mrb[235].mxu1  ;;  %v8932_v51 = vld [vmem:[%s9330_s24 + $0x140] sm:$0xff] }
 0x804   : > { %5976 = vst [vmem:[%s9330_s24 + $0x18] sm:$0xff] %v5957_v35  ;;  %v5958_v5 = vadd.f32 %v8927_v29, %v5898_v42  ;;  %v8148_v37 = vadd.f32 %v8147_v40, %v8146_v39  ;;  %v5814_v23 = vadd.f32 %v8145_v6, %v11270_v17  ;;  %v8933_v35 = vld [vmem:[%s9330_s24 + $0x100] sm:$0xff] }
 0x805   : > { %5988 = vst [vmem:[%s9330_s24 + $0x78] sm:$0xff] %v5960_v52  ;;  %v8934_v52 = vld [vmem:[%s9330_s24 + $0x160] sm:$0xff] }
 0x806   : > { %5980 = vst [vmem:[%s9330_s24 + $0x38] sm:$0xff] %v5958_v5  ;;  %v5817_v54 = vadd.f32 %v8148_v37, %v11270_v17  ;;  %v8935_v5 = vld [vmem:[%s9330_s24 + $0x120] sm:$0xff] }
 0x808   : > { %v8149_v30 = vpop.f32.mrb[236].mxu1 }
 0x809   : > { %v8150_v9 = vpop.f32.mrb[237].mxu1 }
 0x80a   : > { %v8151_v53 = vadd.f32 %v8150_v9, %v8149_v30  ;;  %v8152_v34 = vpop.f32.mrb[238].mxu1 }
 0x80b   : > { %v8153_v61 = vpop.f32.mrb[239].mxu1 }
 0x80c   : > { %v8154_v14 = vadd.f32 %v8153_v61, %v8152_v34  ;;  %v5822_v49 = vadd.f32 %v8151_v53, %v11270_v17 }
 0x80e   : > { %v8553_v36 = vpop.f32.mrb[228].mxu0  ;;  %v5825_v7 = vadd.f32 %v8154_v14, %v11270_v17 }
 0x80f   : > { %v5919_v22 = vadd.f32 %v8553_v36, %v5822_v49  ;;  %v5910_v62 = vpop.f32.mrb[229].mxu0 }
 0x810   : > { %v5911_v10 = vadd.f32 %v5910_v62, %v5814_v23  ;;  %v8155_v48 = vpop.f32.mrb[240].mxu1  ;;  %v8554_v19 = vpop.f32.mrb[230].mxu0 }
 0x811   : > { %v5963_v43 = vadd.f32 %v8928_v33, %v5919_v22  ;;  %v5922_v26 = vadd.f32 %v8554_v19, %v5825_v7  ;;  %v8156_v55 = vpop.f32.mrb[241].mxu1  ;;  %v5913_v13 = vpop.f32.mrb[231].mxu0  ;;  %v8936_v19 = vld [vmem:[%s9330_s24 + $0x180] sm:$0xff] }
 0x812   : > { %v5961_v25 = vadd.f32 %v8929_v21, %v5911_v10  ;;  %v8157_v32 = vadd.f32 %v8156_v55, %v8155_v48  ;;  %v5914_v56 = vadd.f32 %v5913_v13, %v5817_v54  ;;  %v8158_v63 = vpop.f32.mrb[242].mxu1  ;;  %v8937_v13 = vld [vmem:[%s9330_s24 + $0x1a0] sm:$0xff] }
 0x813   : > { %6000 = vst [vmem:[%s9330_s24 + $0xd8] sm:$0xff] %v5963_v43  ;;  %v5964_v59 = vadd.f32 %v8930_v3, %v5922_v26  ;;  %v8159_v44 = vpop.f32.mrb[243].mxu1 }
 0x814   : > { %5992 = vst [vmem:[%s9330_s24 + $0x98] sm:$0xff] %v5961_v25  ;;  %v5962_v2 = vadd.f32 %v8931_v12, %v5914_v56  ;;  %v8160_v16 = vadd.f32 %v8159_v44, %v8158_v63  ;;  %v5830_v50 = vadd.f32 %v8157_v32, %v11270_v17  ;;  %v8938_v25 = vld [vmem:[%s9330_s24 + $0x1c0] sm:$0xff] }
 0x815   : > { %6004 = vst [vmem:[%s9330_s24 + $0xf8] sm:$0xff] %v5964_v59  ;;  %v8939_v63 = vld [vmem:[%s9330_s24 + $0x1e0] sm:$0xff] }
 0x816   : > { %5996 = vst [vmem:[%s9330_s24 + $0xb8] sm:$0xff] %v5962_v2  ;;  %v5833_v58 = vadd.f32 %v8160_v16, %v11270_v17 }
 0x818   : > { %v8161_v1 = vpop.f32.mrb[244].mxu1 }
 0x819   : > { %v8162_v38 = vpop.f32.mrb[245].mxu1 }
 0x81a   : > { %v8163_v41 = vadd.f32 %v8162_v38, %v8161_v1  ;;  %v8164_v8 = vpop.f32.mrb[246].mxu1 }
 0x81b   : > { %v8165_v15 = vpop.f32.mrb[247].mxu1 }
 0x81c   : > { %v8166_v20 = vadd.f32 %v8165_v15, %v8164_v8  ;;  %v5838_v27 = vadd.f32 %v8163_v41, %v11270_v17 }
 0x81e   : > { %v8557_v31 = vpop.f32.mrb[232].mxu0  ;;  %v5841_v28 = vadd.f32 %v8166_v20, %v11270_v17 }
 0x81f   : > { %v5935_v0 = vadd.f32 %v8557_v31, %v5838_v27  ;;  %v5926_v45 = vpop.f32.mrb[233].mxu0 }
 0x820   : > { %v5927_v47 = vadd.f32 %v5926_v45, %v5830_v50  ;;  %v8167_v57 = vpop.f32.mrb[248].mxu1  ;;  %v8558_v60 = vpop.f32.mrb[234].mxu0 }
 0x821   : > { %v5967_v11 = vadd.f32 %v8932_v51, %v5935_v0  ;;  %v5938_v4 = vadd.f32 %v8558_v60, %v5841_v28  ;;  %v8168_v24 = vpop.f32.mrb[249].mxu1  ;;  %v5929_v18 = vpop.f32.mrb[235].mxu0 }
 0x822   : > { %v5965_v6 = vadd.f32 %v8933_v35, %v5927_v47  ;;  %v8169_v42 = vadd.f32 %v8168_v24, %v8167_v57  ;;  %v5930_v39 = vadd.f32 %v5929_v18, %v5833_v58  ;;  %v8170_v46 = vpop.f32.mrb[250].mxu1 }
 0x823   : > { %6016 = vst [vmem:[%s9330_s24 + $0x158] sm:$0xff] %v5967_v11  ;;  %v5968_v40 = vadd.f32 %v8934_v52, %v5938_v4  ;;  %v8171_v29 = vpop.f32.mrb[251].mxu1 }
 0x824   : > { %6008 = vst [vmem:[%s9330_s24 + $0x118] sm:$0xff] %v5965_v6  ;;  %v5966_v37 = vadd.f32 %v8935_v5, %v5930_v39  ;;  %v8172_v30 = vadd.f32 %v8171_v29, %v8170_v46  ;;  %v5846_v34 = vadd.f32 %v8169_v42, %v11270_v17 }
 0x825   : > { %6020 = vst [vmem:[%s9330_s24 + $0x178] sm:$0xff] %v5968_v40 }
 0x826   : > { %6012 = vst [vmem:[%s9330_s24 + $0x138] sm:$0xff] %v5966_v37  ;;  %v5849_v22 = vadd.f32 %v8172_v30, %v11270_v17 }
 0x828   : > { %v8173_v9 = vpop.f32.mrb[252].mxu1 }
 0x829   : > { %v8561_v53 = vpop.f32.mrb[236].mxu0  ;;  %v8174_v61 = vpop.f32.mrb[253].mxu1 }
 0x82a   : > { %v5942_v14 = vpop.f32.mrb[237].mxu0  ;;  %v8175_v49 = vadd.f32 %v8174_v61, %v8173_v9  ;;  %v8176_v23 = vpop.f32.mrb[254].mxu1 }
 0x82b   : > { %v5943_v36 = vadd.f32 %v5942_v14, %v5846_v34  ;;  %v8562_v7 = vpop.f32.mrb[238].mxu0  ;;  %v8177_v62 = vpop.f32.mrb[255].mxu1 }
 0x82c   : > { %v5945_v10 = vpop.f32.mrb[239].mxu0  ;;  %v5854_v48 = vadd.f32 %v8175_v49, %v11270_v17  ;;  %v8178_v33 = vadd.f32 %v8177_v62, %v8176_v23 }
 0x82d   : > { %v5969_v54 = vadd.f32 %v8936_v19, %v5943_v36  ;;  %v5946_v43 = vadd.f32 %v5945_v10, %v5849_v22 }
 0x82e   : > { %v5951_v26 = vadd.f32 %v8561_v53, %v5854_v48  ;;  %v5857_v55 = vadd.f32 %v8178_v33, %v11270_v17 }
 0x82f   : > { %6024 = vst [vmem:[%s9330_s24 + $0x198] sm:$0xff] %v5969_v54  ;;  %v5970_v21 = vadd.f32 %v8937_v13, %v5946_v43 }
 0x830   : > { %v5971_v32 = vadd.f32 %v8938_v25, %v5951_v26  ;;  %v5954_v56 = vadd.f32 %v8562_v7, %v5857_v55 }
 0x831   : > { %6028 = vst [vmem:[%s9330_s24 + $0x1b8] sm:$0xff] %v5970_v21 }
 0x832   : > { %6032 = vst [vmem:[%s9330_s24 + $0x1d8] sm:$0xff] %v5971_v32  ;;  %v5972_v3 = vadd.f32 %v8939_v63, %v5954_v56 }
 0x834   : > { %6036 = vst [vmem:[%s9330_s24 + $0x1f8] sm:$0xff] %v5972_v3 }
 0x835 PF: > { %s21_s27 = sadd.s32 1, %s9098_s27  }
 0x836   : > { %p18_p9 = scmp.ge.s32.totalorder %s21_s27, 4  }
 0x838   :  { %20 = sbr.rel (!%p18_p9) target bundleno = 3 (0x3), region = 128 }
 0x83f   :  { %6061 = vsyncpa [#allocation4], 1 }
 0x840   :  { %6063 = vsyncpa [#allocation4 + $0x1], 1 }
 0x841   :  { %6064 = vsyncpa [#allocation6], 1 }
 0x842   :  { %6065 = vsyncpa [#allocation9], 1 }

</bundles_post_ra>
